<compile_context>
chip_gen: v5e
topology: v5e:2x2
jax: 0.10.0
libtpu: 0.0.40
codegen_flags: <defaults>
</compile_context>

<pallas_src>
import functools

import numpy as np
import jax
import jax.numpy as jnp
from jax.experimental import pallas as pl
from jax.experimental.pallas import tpu as pltpu


def _round_up(x, m):
    return (x + m - 1) // m * m


# ----------------------------- fused kernel ---------------------------------

def _decoder_kernel(x_ref,
                    u1_ref, w1_ref, b1_ref,
                    u2_ref, w2_ref, b2_ref,
                    u3_ref, w3_ref, b3_ref,
                    o_ref, *, taps):
    f32 = jnp.float32

    def conv_t(x, u_ref, w_ref, b_ref, kk):
        # (1) spread + all k*k tap shifts fused into ONE matmul against the
        #     precomputed 0/1 matrix U: (rows, R_src) @ (R_src, kk*R_out_pad).
        r = u_ref.shape[1] // kk                      # R_out_pad, multiple of 128
        y = jnp.dot(x, u_ref[...], preferred_element_type=f32)
        # (2) 128-aligned lane-block -> sublane restack: (rows, kk*R) -> (kk*rows, R).
        z = jnp.concatenate([y[:, t * r:(t + 1) * r] for t in range(kk)], axis=0)
        # (3) single packed (block-diagonal over batch) weight matmul + bias.
        return jnp.dot(w_ref[...], z, preferred_element_type=f32) + b_ref[...]

    x = x_ref[...].astype(f32)                                        # (NB*C1, R_in)
    h = jnp.maximum(conv_t(x, u1_ref, w1_ref, b1_ref, taps[0]), 0.0)  # ConvT(3,s2)+ReLU
    h = jnp.maximum(conv_t(h, u2_ref, w2_ref, b2_ref, taps[1]), 0.0)  # ConvT(2,s2,p1)+ReLU
    h = conv_t(h, u3_ref, w3_ref, b3_ref, taps[2])                    # ConvT(3,p1)
    # sigmoid on valid lanes only: exp on the EUP, approx reciprocal on the EUP
    o_ref[...] = pl.reciprocal(1.0 + jnp.exp(-h), approx=True).astype(o_ref.dtype)


# ----------------------- one-time parameter preparation ----------------------

def init_params(key, input_channels, feature_maps):
    f0, f1 = feature_maps
    ks = jax.random.split(key, 6)
    s = 0.1
    return {
        # PyTorch ConvTranspose2d weight layout: (Cin, Cout, kh, kw)
        "d1_w": s * jax.random.normal(ks[0], (f1, f1, 3, 3), jnp.float32),
        "d1_b": s * jax.random.normal(ks[1], (f1,), jnp.float32),
        "d2_w": s * jax.random.normal(ks[2], (f1, f0, 2, 2), jnp.float32),
        "d2_b": s * jax.random.normal(ks[3], (f0,), jnp.float32),
        "d3_w": s * jax.random.normal(ks[4], (f0, input_channels, 3, 3), jnp.float32),
        "d3_b": s * jax.random.normal(ks[5], (input_channels,), jnp.float32),
    }


def _build_layer(w_pt, b, stride, pad, src_h, src_w, src_rows, nb):
    """Per-layer constants for the fused kernel.

    U   : (src_rows, k*k*r_out_pad) 0/1 matrix; column block t holds the tap-t
          shifted, zero-upsampled, zero-padded gather of the dense source.
          Junk/padding lanes of the source are never referenced (zero rows).
    Wbig: (nb*c_out, k*k*nb*c_in) packed, batch-block-diagonal flipped weights.
    bias: (nb*c_out, 1).
    """
    c_in, c_out, k, _ = w_pt.shape
    q = k - 1 - pad                           # equivalent forward-conv padding
    assert q >= 0
    out_h = (src_h - 1) * stride + k - 2 * pad
    out_w = (src_w - 1) * stride + k - 2 * pad
    r_out = out_h * out_w
    r_out_pad = _round_up(r_out, 128)
    kk = k * k

    oy, ox = np.meshgrid(np.arange(out_h), np.arange(out_w), indexing="ij")
    oy = oy.ravel()
    ox = ox.ravel()
    u = np.zeros((src_rows, kk * r_out_pad), np.float32)
    for dy in range(k):
        for dx in range(k):
            sy2 = oy + dy - q
            sx2 = ox + dx - q
            valid = ((sy2 >= 0) & (sx2 >= 0)
                     & (sy2 % stride == 0) & (sx2 % stride == 0)
                     & (sy2 // stride < src_h) & (sx2 // stride < src_w))
            sy = sy2[valid] // stride
            sx = sx2[valid] // stride
            src_idx = sy * src_w + sx
            dst_idx = (dy * k + dx) * r_out_pad + (oy[valid] * out_w + ox[valid])
            u[src_idx, dst_idx] = 1.0

    wbig = np.zeros((nb * c_out, kk * nb * c_in), np.float32)
    for dy in range(k):
        for dx in range(k):
            t = dy * k + dx
            wt = w_pt[:, :, k - 1 - dy, k - 1 - dx].T        # (c_out, c_in), flipped
            for bb in range(nb):
                r0 = bb * c_out
                c0 = t * nb * c_in + bb * c_in
                wbig[r0:r0 + c_out, c0:c0 + c_in] = wt
    bias = np.tile(np.asarray(b, np.float32).reshape(c_out, 1), (nb, 1))
    return u, wbig, bias, kk, out_h, out_w, r_out_pad


def prepare_decoder(params, spatial_in, batch_block):
    """Precompute (once) the per-layer U / packed-weight / bias constants."""
    cfgs = [
        (np.asarray(params["d1_w"]), np.asarray(params["d1_b"]), 2, 0),  # ConvT(3,s2)
        (np.asarray(params["d2_w"]), np.asarray(params["d2_b"]), 2, 1),  # ConvT(2,s2,p1)
        (np.asarray(params["d3_w"]), np.asarray(params["d3_b"]), 1, 1),  # ConvT(3,p1)
    ]
    src_h = src_w = spatial_in
    src_rows = spatial_in * spatial_in        # layer-1 reads the raw latent lanes
    ops, taps = [], []
    for w, b, s, p in cfgs:
        u, wbig, bias, kk, out_h, out_w, r_out_pad = _build_layer(
            w, b, s, p, src_h, src_w, src_rows, batch_block)
        ops += [jnp.asarray(u), jnp.asarray(wbig), jnp.asarray(bias)]
        taps.append(kk)
        src_h, src_w, src_rows = out_h, out_w, r_out_pad
    return {
        "operands": tuple(ops),
        "taps": tuple(taps),
        "batch_block": batch_block,
        "out_c": cfgs[-1][0].shape[1],
        "out_hw": (src_h, src_w),
        "out_rows_pad": src_rows,
    }


# ------------------------------ forward pass ---------------------------------

def decoder_forward(z, prep):
    n, c1, h_in, w_in = z.shape
    nb = prep["batch_block"]
    assert n % nb == 0, "batch must be divisible by batch_block"
    out_h, out_w = prep["out_hw"]
    c_out = prep["out_c"]
    r_in = h_in * w_in
    r_out_pad = prep["out_rows_pad"]

    x2 = z.reshape(n * c1, r_in)              # channels-first, spatial in lanes
    operands = prep["operands"]

    def const_spec(a):                        # whole-array, grid-invariant block
        return pl.BlockSpec(a.shape, lambda i: (0,) * a.ndim)

    out2 = pl.pallas_call(
        functools.partial(_decoder_kernel, taps=prep["taps"]),
        out_shape=jax.ShapeDtypeStruct((n * c_out, r_out_pad), jnp.float32),
        grid=(n // nb,),
        in_specs=[pl.BlockSpec((nb * c1, r_in), lambda i: (i, 0))]
                + [const_spec(a) for a in operands],
        out_specs=pl.BlockSpec((nb * c_out, r_out_pad), lambda i: (i, 0)),
        compiler_params=pltpu.CompilerParams(
            dimension_semantics=("parallel",),
            vmem_limit_bytes=32 * 1024 * 1024,
        ),
    )(x2, *operands)

    out2 = out2[:, :out_h * out_w]            # no-op here (256 == 16*16)
    return out2.reshape(n, c_out, out_h, out_w)


# --------------------------- pure-JAX reference ------------------------------

def decoder_reference(z, params):
    def conv_t(x, w, b, stride, pad, act):
        k = w.shape[2]
        wf = jnp.flip(w, axis=(2, 3)).transpose(1, 0, 2, 3)   # (Cout, Cin, k, k)
        y = jax.lax.conv_general_dilated(
            x, wf, window_strides=(1, 1),
            padding=[(k - 1 - pad, k - 1 - pad)] * 2,
            lhs_dilation=(stride, stride),
            dimension_numbers=("NCHW", "OIHW", "NCHW"),
            precision=jax.lax.Precision.HIGHEST)
        return act(y + b.reshape(1, -1, 1, 1))
    h = conv_t(z, params["d1_w"], params["d1_b"], 2, 0, jax.nn.relu)
    h = conv_t(h, params["d2_w"], params["d2_b"], 2, 1, jax.nn.relu)
    return conv_t(h, params["d3_w"], params["d3_b"], 1, 1, jax.nn.sigmoid)


# ----------------------------------- main ------------------------------------

if __name__ == "__main__":
    key = jax.random.PRNGKey(0)
    k_z, k_p = jax.random.split(key)

    input_channels = 4
    feature_maps = [8, 16]
    latent_dim = 32          # unused by the forward pass (matches the PyTorch module)

    n, h_lat, w_lat = 2, 4, 4
    z = jax.random.normal(k_z, (n, feature_maps[1], h_lat, w_lat), jnp.float32)
    params = init_params(k_p, input_channels, feature_maps)

    # Whole batch stacked along sublanes -> a single grid step (best on the
    # single-TensorCore v5e/v6e; use batch_block = n // 2 to split over v7x's 2 TCs).
    prep = prepare_decoder(params, h_lat, batch_block=n)
    forward = jax.jit(lambda zz: decoder_forward(zz, prep))

    x_hat = forward(z)
    jax.block_until_ready(x_hat)

    assert x_hat.shape == (n, input_channels, 16, 16), x_hat.shape

    ref = decoder_reference(z, params)
    err = float(jnp.max(jnp.abs(x_hat - ref)))
    assert err < 2e-3, f"max |pallas - reference| = {err}"
    assert bool(jnp.all(jnp.isfinite(x_hat)))

    print("KERNEL_OK")
</pallas_src>

<mosaic_0001>
module attributes {stable_mosaic.version = 11 : i64} {
  func.func @_decoder_kernel(%arg0: i32, %arg1: memref<32x16xf32, #tpu.memory_space<vmem>>, %arg2: memref<16x1152xf32, #tpu.memory_space<vmem>>, %arg3: memref<32x288xf32, #tpu.memory_space<vmem>>, %arg4: memref<32x1xf32, #tpu.memory_space<vmem>>, %arg5: memref<128x1024xf32, #tpu.memory_space<vmem>>, %arg6: memref<16x128xf32, #tpu.memory_space<vmem>>, %arg7: memref<16x1xf32, #tpu.memory_space<vmem>>, %arg8: memref<256x2304xf32, #tpu.memory_space<vmem>>, %arg9: memref<8x144xf32, #tpu.memory_space<vmem>>, %arg10: memref<8x1xf32, #tpu.memory_space<vmem>>, %arg11: memref<8x256xf32, #tpu.memory_space<vmem>>) attributes {dimension_semantics = [#tpu.dimension_semantics<parallel>], iteration_bounds = array<i64: 1>, scalar_prefetch = 0 : i64, scratch_operands = 0 : i64, tpu.core_type = #tpu.core_type<tc>, window_params = [{transform_indices = @transform_0, window_bounds = array<i64: 32, 16>}, {pipeline_mode = #tpu.pipeline_mode<synchronous>, transform_indices = @transform_1, window_bounds = array<i64: 16, 1152>}, {pipeline_mode = #tpu.pipeline_mode<synchronous>, transform_indices = @transform_2, window_bounds = array<i64: 32, 288>}, {pipeline_mode = #tpu.pipeline_mode<synchronous>, transform_indices = @transform_3, window_bounds = array<i64: 32, 1>}, {pipeline_mode = #tpu.pipeline_mode<synchronous>, transform_indices = @transform_4, window_bounds = array<i64: 128, 1024>}, {pipeline_mode = #tpu.pipeline_mode<synchronous>, transform_indices = @transform_5, window_bounds = array<i64: 16, 128>}, {pipeline_mode = #tpu.pipeline_mode<synchronous>, transform_indices = @transform_6, window_bounds = array<i64: 16, 1>}, {pipeline_mode = #tpu.pipeline_mode<synchronous>, transform_indices = @transform_7, window_bounds = array<i64: 256, 2304>}, {pipeline_mode = #tpu.pipeline_mode<synchronous>, transform_indices = @transform_8, window_bounds = array<i64: 8, 144>}, {pipeline_mode = #tpu.pipeline_mode<synchronous>, transform_indices = @transform_9, window_bounds = array<i64: 8, 1>}, {transform_indices = @transform_10, window_bounds = array<i64: 8, 256>}]} {
    %c0 = arith.constant 0 : index
    %c0_0 = arith.constant 0 : index
    %0 = vector.load %arg1[%c0, %c0_0] : memref<32x16xf32, #tpu.memory_space<vmem>>, vector<32x16xf32>
    %c0_1 = arith.constant 0 : index
    %c0_2 = arith.constant 0 : index
    %1 = vector.load %arg2[%c0_1, %c0_2] : memref<16x1152xf32, #tpu.memory_space<vmem>>, vector<16x1152xf32>
    %cst = arith.constant dense<0.000000e+00> : vector<32x1152xf32>
    %2 = tpu.matmul %0, %1, %cst {dimension_numbers = #tpu.dot_dimension_numbers<[1], [0], [0], [1], [0, 0, 1, 1], [], []>} : vector<32x16xf32>, vector<16x1152xf32>, vector<32x1152xf32> -> vector<32x1152xf32>
    %3 = vector.extract_strided_slice %2 {offsets = [0, 0], sizes = [32, 128], strides = [1, 1]} : vector<32x1152xf32> to vector<32x128xf32>
    %4 = vector.extract_strided_slice %2 {offsets = [0, 128], sizes = [32, 128], strides = [1, 1]} : vector<32x1152xf32> to vector<32x128xf32>
    %5 = vector.extract_strided_slice %2 {offsets = [0, 256], sizes = [32, 128], strides = [1, 1]} : vector<32x1152xf32> to vector<32x128xf32>
    %6 = vector.extract_strided_slice %2 {offsets = [0, 384], sizes = [32, 128], strides = [1, 1]} : vector<32x1152xf32> to vector<32x128xf32>
    %7 = vector.extract_strided_slice %2 {offsets = [0, 512], sizes = [32, 128], strides = [1, 1]} : vector<32x1152xf32> to vector<32x128xf32>
    %8 = vector.extract_strided_slice %2 {offsets = [0, 640], sizes = [32, 128], strides = [1, 1]} : vector<32x1152xf32> to vector<32x128xf32>
    %9 = vector.extract_strided_slice %2 {offsets = [0, 768], sizes = [32, 128], strides = [1, 1]} : vector<32x1152xf32> to vector<32x128xf32>
    %10 = vector.extract_strided_slice %2 {offsets = [0, 896], sizes = [32, 128], strides = [1, 1]} : vector<32x1152xf32> to vector<32x128xf32>
    %11 = vector.extract_strided_slice %2 {offsets = [0, 1024], sizes = [32, 128], strides = [1, 1]} : vector<32x1152xf32> to vector<32x128xf32>
    %12 = tpu.concatenate %3, %4, %5, %6, %7, %8, %9, %10, %11 in 0 : vector<32x128xf32>, vector<32x128xf32>, vector<32x128xf32>, vector<32x128xf32>, vector<32x128xf32>, vector<32x128xf32>, vector<32x128xf32>, vector<32x128xf32>, vector<32x128xf32> -> vector<288x128xf32>
    %c0_3 = arith.constant 0 : index
    %c0_4 = arith.constant 0 : index
    %13 = vector.load %arg3[%c0_3, %c0_4] : memref<32x288xf32, #tpu.memory_space<vmem>>, vector<32x288xf32>
    %cst_5 = arith.constant dense<0.000000e+00> : vector<32x128xf32>
    %14 = tpu.matmul %13, %12, %cst_5 {dimension_numbers = #tpu.dot_dimension_numbers<[1], [0], [0], [1], [0, 0, 1, 1], [], []>} : vector<32x288xf32>, vector<288x128xf32>, vector<32x128xf32> -> vector<32x128xf32>
    %c0_6 = arith.constant 0 : index
    %c0_7 = arith.constant 0 : index
    %15 = vector.load %arg4[%c0_6, %c0_7] : memref<32x1xf32, #tpu.memory_space<vmem>>, vector<32x1xf32>
    %16 = vector.broadcast %15 : vector<32x1xf32> to vector<32x128xf32>
    %17 = arith.addf %14, %16 : vector<32x128xf32>
    %cst_8 = arith.constant 0.000000e+00 : f32
    %18 = vector.broadcast %cst_8 : f32 to vector<32x128xf32>
    %19 = arith.maximumf %17, %18 : vector<32x128xf32>
    %c0_9 = arith.constant 0 : index
    %c0_10 = arith.constant 0 : index
    %20 = vector.load %arg5[%c0_9, %c0_10] : memref<128x1024xf32, #tpu.memory_space<vmem>>, vector<128x1024xf32>
    %cst_11 = arith.constant dense<0.000000e+00> : vector<32x1024xf32>
    %21 = tpu.matmul %19, %20, %cst_11 {dimension_numbers = #tpu.dot_dimension_numbers<[1], [0], [0], [1], [0, 0, 1, 1], [], []>} : vector<32x128xf32>, vector<128x1024xf32>, vector<32x1024xf32> -> vector<32x1024xf32>
    %22 = vector.extract_strided_slice %21 {offsets = [0, 0], sizes = [32, 256], strides = [1, 1]} : vector<32x1024xf32> to vector<32x256xf32>
    %23 = vector.extract_strided_slice %21 {offsets = [0, 256], sizes = [32, 256], strides = [1, 1]} : vector<32x1024xf32> to vector<32x256xf32>
    %24 = vector.extract_strided_slice %21 {offsets = [0, 512], sizes = [32, 256], strides = [1, 1]} : vector<32x1024xf32> to vector<32x256xf32>
    %25 = vector.extract_strided_slice %21 {offsets = [0, 768], sizes = [32, 256], strides = [1, 1]} : vector<32x1024xf32> to vector<32x256xf32>
    %26 = tpu.concatenate %22, %23, %24, %25 in 0 : vector<32x256xf32>, vector<32x256xf32>, vector<32x256xf32>, vector<32x256xf32> -> vector<128x256xf32>
    %c0_12 = arith.constant 0 : index
    %c0_13 = arith.constant 0 : index
    %27 = vector.load %arg6[%c0_12, %c0_13] : memref<16x128xf32, #tpu.memory_space<vmem>>, vector<16x128xf32>
    %cst_14 = arith.constant dense<0.000000e+00> : vector<16x256xf32>
    %28 = tpu.matmul %27, %26, %cst_14 {dimension_numbers = #tpu.dot_dimension_numbers<[1], [0], [0], [1], [0, 0, 1, 1], [], []>} : vector<16x128xf32>, vector<128x256xf32>, vector<16x256xf32> -> vector<16x256xf32>
    %c0_15 = arith.constant 0 : index
    %c0_16 = arith.constant 0 : index
    %29 = vector.load %arg7[%c0_15, %c0_16] : memref<16x1xf32, #tpu.memory_space<vmem>>, vector<16x1xf32>
    %30 = vector.broadcast %29 : vector<16x1xf32> to vector<16x256xf32>
    %31 = arith.addf %28, %30 : vector<16x256xf32>
    %cst_17 = arith.constant 0.000000e+00 : f32
    %32 = vector.broadcast %cst_17 : f32 to vector<16x256xf32>
    %33 = arith.maximumf %31, %32 : vector<16x256xf32>
    %c0_18 = arith.constant 0 : index
    %c0_19 = arith.constant 0 : index
    %34 = vector.load %arg8[%c0_18, %c0_19] : memref<256x2304xf32, #tpu.memory_space<vmem>>, vector<256x2304xf32>
    %cst_20 = arith.constant dense<0.000000e+00> : vector<16x2304xf32>
    %35 = tpu.matmul %33, %34, %cst_20 {dimension_numbers = #tpu.dot_dimension_numbers<[1], [0], [0], [1], [0, 0, 1, 1], [], []>} : vector<16x256xf32>, vector<256x2304xf32>, vector<16x2304xf32> -> vector<16x2304xf32>
    %36 = vector.extract_strided_slice %35 {offsets = [0, 0], sizes = [16, 256], strides = [1, 1]} : vector<16x2304xf32> to vector<16x256xf32>
    %37 = vector.extract_strided_slice %35 {offsets = [0, 256], sizes = [16, 256], strides = [1, 1]} : vector<16x2304xf32> to vector<16x256xf32>
    %38 = vector.extract_strided_slice %35 {offsets = [0, 512], sizes = [16, 256], strides = [1, 1]} : vector<16x2304xf32> to vector<16x256xf32>
    %39 = vector.extract_strided_slice %35 {offsets = [0, 768], sizes = [16, 256], strides = [1, 1]} : vector<16x2304xf32> to vector<16x256xf32>
    %40 = vector.extract_strided_slice %35 {offsets = [0, 1024], sizes = [16, 256], strides = [1, 1]} : vector<16x2304xf32> to vector<16x256xf32>
    %41 = vector.extract_strided_slice %35 {offsets = [0, 1280], sizes = [16, 256], strides = [1, 1]} : vector<16x2304xf32> to vector<16x256xf32>
    %42 = vector.extract_strided_slice %35 {offsets = [0, 1536], sizes = [16, 256], strides = [1, 1]} : vector<16x2304xf32> to vector<16x256xf32>
    %43 = vector.extract_strided_slice %35 {offsets = [0, 1792], sizes = [16, 256], strides = [1, 1]} : vector<16x2304xf32> to vector<16x256xf32>
    %44 = vector.extract_strided_slice %35 {offsets = [0, 2048], sizes = [16, 256], strides = [1, 1]} : vector<16x2304xf32> to vector<16x256xf32>
    %45 = tpu.concatenate %36, %37, %38, %39, %40, %41, %42, %43, %44 in 0 : vector<16x256xf32>, vector<16x256xf32>, vector<16x256xf32>, vector<16x256xf32>, vector<16x256xf32>, vector<16x256xf32>, vector<16x256xf32>, vector<16x256xf32>, vector<16x256xf32> -> vector<144x256xf32>
    %c0_21 = arith.constant 0 : index
    %c0_22 = arith.constant 0 : index
    %46 = vector.load %arg9[%c0_21, %c0_22] : memref<8x144xf32, #tpu.memory_space<vmem>>, vector<8x144xf32>
    %cst_23 = arith.constant dense<0.000000e+00> : vector<8x256xf32>
    %47 = tpu.matmul %46, %45, %cst_23 {dimension_numbers = #tpu.dot_dimension_numbers<[1], [0], [0], [1], [0, 0, 1, 1], [], []>} : vector<8x144xf32>, vector<144x256xf32>, vector<8x256xf32> -> vector<8x256xf32>
    %c0_24 = arith.constant 0 : index
    %c0_25 = arith.constant 0 : index
    %48 = vector.load %arg10[%c0_24, %c0_25] : memref<8x1xf32, #tpu.memory_space<vmem>>, vector<8x1xf32>
    %49 = vector.broadcast %48 : vector<8x1xf32> to vector<8x256xf32>
    %50 = arith.addf %47, %49 : vector<8x256xf32>
    %cst_26 = arith.constant 0.000000e+00 : f32
    %51 = vector.broadcast %cst_26 : f32 to vector<8x256xf32>
    %52 = arith.subf %51, %50 : vector<8x256xf32>
    %53 = math.exp %52 : vector<8x256xf32>
    %cst_27 = arith.constant 1.000000e+00 : f32
    %54 = vector.broadcast %cst_27 : f32 to vector<8x256xf32>
    %55 = arith.addf %54, %53 : vector<8x256xf32>
    %56 = tpu.reciprocal %55 {approx = true} : vector<8x256xf32> -> vector<8x256xf32>
    %c0_28 = arith.constant 0 : index
    %c0_29 = arith.constant 0 : index
    %57 = vector.load %arg11[%c0_28, %c0_29] : memref<8x256xf32, #tpu.memory_space<vmem>>, vector<8x256xf32>
    tpu.vector_store %arg11[%c0_28, %c0_29], %56 {strides = array<i32>} : memref<8x256xf32, #tpu.memory_space<vmem>>, vector<8x256xf32>,
    return
  }
  func.func @transform_0(%arg0: i32) -> (i32, i32) {
    %c0_i32 = arith.constant 0 : i32
    %c0_i32_0 = arith.constant 0 : i32
    return %arg0, %c0_i32 : i32, i32
  }
  func.func @transform_1(%arg0: i32) -> (i32, i32) {
    %c0_i32 = arith.constant 0 : i32
    %c0_i32_0 = arith.constant 0 : i32
    %c0_i32_1 = arith.constant 0 : i32
    return %c0_i32, %c0_i32_0 : i32, i32
  }
  func.func @transform_2(%arg0: i32) -> (i32, i32) {
    %c0_i32 = arith.constant 0 : i32
    %c0_i32_0 = arith.constant 0 : i32
    %c0_i32_1 = arith.constant 0 : i32
    return %c0_i32, %c0_i32_0 : i32, i32
  }
  func.func @transform_3(%arg0: i32) -> (i32, i32) {
    %c0_i32 = arith.constant 0 : i32
    %c0_i32_0 = arith.constant 0 : i32
    %c0_i32_1 = arith.constant 0 : i32
    return %c0_i32, %c0_i32_0 : i32, i32
  }
  func.func @transform_4(%arg0: i32) -> (i32, i32) {
    %c0_i32 = arith.constant 0 : i32
    %c0_i32_0 = arith.constant 0 : i32
    %c0_i32_1 = arith.constant 0 : i32
    return %c0_i32, %c0_i32_0 : i32, i32
  }
  func.func @transform_5(%arg0: i32) -> (i32, i32) {
    %c0_i32 = arith.constant 0 : i32
    %c0_i32_0 = arith.constant 0 : i32
    %c0_i32_1 = arith.constant 0 : i32
    return %c0_i32, %c0_i32_0 : i32, i32
  }
  func.func @transform_6(%arg0: i32) -> (i32, i32) {
    %c0_i32 = arith.constant 0 : i32
    %c0_i32_0 = arith.constant 0 : i32
    %c0_i32_1 = arith.constant 0 : i32
    return %c0_i32, %c0_i32_0 : i32, i32
  }
  func.func @transform_7(%arg0: i32) -> (i32, i32) {
    %c0_i32 = arith.constant 0 : i32
    %c0_i32_0 = arith.constant 0 : i32
    %c0_i32_1 = arith.constant 0 : i32
    return %c0_i32, %c0_i32_0 : i32, i32
  }
  func.func @transform_8(%arg0: i32) -> (i32, i32) {
    %c0_i32 = arith.constant 0 : i32
    %c0_i32_0 = arith.constant 0 : i32
    %c0_i32_1 = arith.constant 0 : i32
    return %c0_i32, %c0_i32_0 : i32, i32
  }
  func.func @transform_9(%arg0: i32) -> (i32, i32) {
    %c0_i32 = arith.constant 0 : i32
    %c0_i32_0 = arith.constant 0 : i32
    %c0_i32_1 = arith.constant 0 : i32
    return %c0_i32, %c0_i32_0 : i32, i32
  }
  func.func @transform_10(%arg0: i32) -> (i32, i32) {
    %c0_i32 = arith.constant 0 : i32
    %c0_i32_0 = arith.constant 0 : i32
    return %arg0, %c0_i32 : i32, i32
  }
}

</mosaic_0001>

<bundles_post_ra>
// kernel: _lambda_.1
= control target key start
LH: loop header
LB: loop body
LE: loop exit
PB: predicated region body
PF: predicated region fallthrough
CT: control target
= control target key end

     0   :  { %15 = vsyncpa [#allocation3], 0  ;;  %s3216_s0 = inlined_call_operand.vmem [shape: f32[32,16], index: 0, kind: input, shape index: {}]   ;;  %s3217_s1 = inlined_call_operand.hbm [shape: f32[16,1152], index: 1, kind: input, shape index: {}]   ;;  %s3218_s2 = inlined_call_operand.hbm [shape: f32[32,288], index: 2, kind: input, shape index: {}]   ;;  %s3219_s3 = inlined_call_operand.hbm [shape: f32[32,1], index: 3, kind: input, shape index: {}]   ;;  %s3220_s4 = inlined_call_operand.hbm [shape: f32[128,1024], index: 4, kind: input, shape index: {}]   ;;  %s3221_s5 = inlined_call_operand.hbm [shape: f32[16,128], index: 5, kind: input, shape index: {}]   ;;  %s3222_s6 = inlined_call_operand.hbm [shape: f32[16,1], index: 6, kind: input, shape index: {}]   ;;  %s3223_s7 = inlined_call_operand.hbm [shape: f32[256,2304], index: 7, kind: input, shape index: {}]   ;;  %s3224_s8 = inlined_call_operand.hbm [shape: f32[8,144], index: 8, kind: input, shape index: {}]   ;;  %s3225_s9 = inlined_call_operand.hbm [shape: f32[8,1], index: 9, kind: input, shape index: {}]   ;;  %s3226_s10 = inlined_call_operand.vmem [shape: f32[8,256], index: 10, kind: output, shape index: {}]  }
   0x1   :  { %16 = vsyncpa [#allocation5], 0 }
   0x2   :  { %17 = vsyncpa [#allocation8], 0 }
   0x3   :  { %18 = vsyncpa [#allocation11], 0  ;;  %s39_s15 = sshll.u32 %s3218_s2, 4  ;;  %s40_s15 = int_to_ptr.hbm [resolvable:$true] %s39_s15 }
   0x4   :  { %19 = vsyncpa [#allocation14], 0  ;;  %s2846_s16 = smov [#allocation4]   ;;  %s65_s20 = sshll.u32 %s3220_s4, 4  ;;  %s66_s20 = int_to_ptr.hbm [resolvable:$true] %s65_s20 }
   0x5   :  { %s41_s17 = sshll.u32 %s2846_s16, 4  ;;  %s2847_s21 = smov 384   ;;  %s42_s17 = int_to_ptr.vmem [resolvable:$true] %s41_s17 }
   0x6   :  { %s2848_s22 = smov 24   ;;  %s2849_s23 = smov [#allocation7]  }
   0x7   :  { %47 = dma.hbm_to_vmem [thread:$0]  %s40_s15, 1536, %s42_s17, [#allocation5], %s2847_s21, %s2847_s21, %s2848_s22  }
   0x8   :  { %s67_s24 = sshll.u32 %s2849_s23, 4  ;;  %s2850_s25 = smov 1024   ;;  %s68_s24 = int_to_ptr.vmem [resolvable:$true] %s67_s24 }
   0x9   :  { %s2851_s26 = smov 64   ;;  %s91_s28 = sshll.u32 %s3222_s6, 4  ;;  %s92_s28 = int_to_ptr.hbm [resolvable:$true] %s91_s28 }
   0xa   :  { %73 = dma.hbm_to_vmem [thread:$0]  %s66_s20, 16384, %s68_s24, [#allocation8], %s2850_s25, %s2850_s25, %s2851_s26  }
   0xb   :  { %s2852_s29 = smov [#allocation10]   ;;  %s118_s12 = sshll.u32 %s3224_s8, 4  ;;  %s119_s12 = int_to_ptr.hbm [resolvable:$true] %s118_s12 }
   0xc   :  { %s93_s30 = sshll.u32 %s2852_s29, 4  ;;  %s2853_s13 = smov 128   ;;  %s94_s30 = int_to_ptr.vmem [resolvable:$true] %s93_s30 }
   0xd   :  { %s2854_s14 = smov 8   ;;  %s2855_s15 = smov [#allocation13]  }
   0xe   :  { %99 = dma.hbm_to_vmem [thread:$0]  %s92_s28, 256, %s94_s30, [#allocation11], %s2853_s13, %s2853_s13, %s2854_s14  }
   0xf   :  { %s120_s16 = sshll.u32 %s2855_s15, 4  ;;  %s26_s6 = sshll.u32 %s3217_s1, 4  ;;  %s121_s16 = int_to_ptr.vmem [resolvable:$true] %s120_s16  ;;  %s27_s6 = int_to_ptr.hbm [resolvable:$true] %s26_s6 }
  0x10   :  { %123 = dma.hbm_to_vmem [thread:$0]  %s119_s12, 256, %s121_s16, [#allocation14]  }
  0x11   :  { %s2856_s19 = smov [#allocation2]   ;;  %s52_s22 = sshll.u32 %s3219_s3, 4  ;;  %s53_s22 = int_to_ptr.hbm [resolvable:$true] %s52_s22 }
  0x12   :  { %s28_s20 = sshll.u32 %s2856_s19, 4  ;;  %s2857_s23 = smov 1152   ;;  %s29_s20 = int_to_ptr.vmem [resolvable:$true] %s28_s20 }
  0x13   :  { %s2858_s24 = smov 72   ;;  %s2859_s25 = smov [#allocation6]  }
  0x14   :  { %34 = dma.hbm_to_vmem [thread:$0]  %s27_s6, 2304, %s29_s20, [#allocation3], %s2857_s23, %s2857_s23, %s2858_s24  }
  0x15   :  { %s54_s26 = sshll.u32 %s2859_s25, 4  ;;  %s78_s1 = sshll.u32 %s3221_s5, 4  ;;  %s55_s26 = int_to_ptr.vmem [resolvable:$true] %s54_s26  ;;  %s79_s1 = int_to_ptr.hbm [resolvable:$true] %s78_s1 }
  0x16   :  { %60 = dma.hbm_to_vmem [thread:$0]  %s53_s22, 512, %s55_s26, [#allocation5], %s2853_s13, %s2853_s13, %s2854_s14  }
  0x17   :  { %s104_s3 = sshll.u32 %s3223_s7, 4  ;;  %s2860_s30 = smov [#allocation9]   ;;  %s105_s3 = int_to_ptr.hbm [resolvable:$true] %s104_s3 }
  0x18   :  { %s80_s11 = sshll.u32 %s2860_s30, 4  ;;  %s2861_s4 = smov [#allocation12]   ;;  %s81_s11 = int_to_ptr.vmem [resolvable:$true] %s80_s11 }
  0x19   :  { %86 = dma.hbm_to_vmem [thread:$0]  %s79_s1, 256, %s81_s11, [#allocation8], %s2853_s13, %s2853_s13, %s2854_s14  }
  0x1a   :  { %s106_s5 = sshll.u32 %s2861_s4, 4  ;;  %s2862_s12 = smov 2304   ;;  %s107_s5 = int_to_ptr.vmem [resolvable:$true] %s106_s5 }
  0x1b   :  { %s2863_s15 = smov 144   ;;  %s129_s18 = sshll.u32 %s3225_s9, 4  ;;  %s130_s18 = int_to_ptr.hbm [resolvable:$true] %s129_s18 }
  0x1c   :  { %112 = dma.hbm_to_vmem [thread:$0]  %s105_s3, 73728, %s107_s5, [#allocation11], %s2862_s12, %s2862_s12, %s2863_s15  }
  0x1d   :  { %s2864_s7 = smov [#allocation15]  }
  0x1e   :  { %s131_s6 = sshll.u32 %s2864_s7, 4  ;;  %s132_s6 = int_to_ptr.vmem [resolvable:$true] %s131_s6 }
  0x1f   :  { %134 = dma.hbm_to_vmem [thread:$0]  %s130_s18, 128, %s132_s6, [#allocation14]  }
  0x20   :  { %2836 = dma.done.wait [#allocation3], 2304  }
  0x21   :  { %2837 = vsyncadd [#allocation3], 4294964992 }
  0x22   :  { %2838 = dma.done.wait [#allocation5], 2048  }
  0x23   :  { %2839 = vsyncadd [#allocation5], 4294965248 }
  0x24   :  { %2840 = dma.done.wait [#allocation8], 16640  }
  0x25   :  { %2841 = vsyncadd [#allocation8], 4294950656 }
  0x26   :  { %2842 = dma.done.wait [#allocation11], 73984  }
  0x27   :  { %2843 = vsyncadd [#allocation11], 4294893312 }
  0x28   :  { %2844 = dma.done.wait [#allocation14], 384  }
  0x29   :  { %2845 = vsyncadd [#allocation14], 4294966912  ;;  %v184_v0 = vld [vmem:[#allocation2 + $0x48] sm:$0xff]  ;;  %v187_v1 = vld [vmem:[#allocation2 + $0x60] sm:$0xff]  ;;  %vm193_vm0 = vcmask 130048   ;;  %v2865_v52 = vmov 0  }
  0x2a   :  { %v175_v2 = vld [vmem:[#allocation2] sm:$0xff]  ;;  %220 = vmatpush.msra.mxu0 %v184_v0  ;;  %307 = vmatpush.msra.mxu3 %v187_v1  ;;  %v178_v3 = vld [vmem:[#allocation2 + $0x18] sm:$0xff]  ;;  %v177_v6 = vld [vmem:[#allocation2 + $0x10] sm:$0xff]  ;;  %vm503_vm1 = vcmask 261120  }
  0x2b   :  { %v2960_v4 = vld [vmem:[%s3216_s0] sm:$0xff]  ;;  %v186_v5 = vld [vmem:[#allocation2 + $0x58] sm:$0xff]  ;;  %v185_v7 = vld [vmem:[#allocation2 + $0x50] sm:$0xff]  ;;  %2609 = vset.pattern.permute.xlu0 %v2865_v52  ;;  %2610 = vset.pattern.permute.xlu1 %v2865_v52 }
  0x2c   :  { %278 = vmatpush.msra.mxu2 %v186_v5  ;;  %221 = vmatpush.msra.mxu0 %v175_v2  ;;  %v176_v8 = vld [vmem:[#allocation2 + $0x8] sm:$0xff]  ;;  %v191_v10 = vld [vmem:[#allocation2 + $0x80] sm:$0xff]  ;;  %v182_v12 = vld [vmem:[#allocation2 + $0x38] sm:$0xff] }
  0x2d   :  { %308 = vmatpush.msra.mxu3 %v178_v3  ;;  %2547 = vmatmul.msk.f32.vlgmr.msra.gmra.mxu0 %vm193_vm0, %v2960_v4  ;;  %v188_v9 = vld [vmem:[#allocation2 + $0x68] sm:$0xff]  ;;  %v179_v11 = vld [vmem:[#allocation2 + $0x20] sm:$0xff]  ;;  %v190_v13 = vld [vmem:[#allocation2 + $0x78] sm:$0xff] }
  0x2e   :  { %2559 = vmatmul.msk.f32.vlgmr.msra.gmra.mxu3 %vm193_vm0, %v2960_v4  ;;  %279 = vmatpush.msra.mxu2 %v177_v6  ;;  %v181_v14 = vld [vmem:[#allocation2 + $0x30] sm:$0xff]  ;;  %v172_v15 = vld [vmem:[%s3216_s0 + $0x8] sm:$0xff]  ;;  %v174_v19 = vld [vmem:[%s3216_s0 + $0x18] sm:$0xff] }
  0x2f   :  { %249 = vmatpush.msra.mxu1 %v185_v7  ;;  %2555 = vmatmul.msk.f32.vlgmr.msra.gmra.mxu2 %vm193_vm0, %v2960_v4  ;;  %v173_v16 = vld [vmem:[%s3216_s0 + $0x10] sm:$0xff]  ;;  %v180_v18 = vld [vmem:[#allocation2 + $0x28] sm:$0xff]  ;;  %v183_v21 = vld [vmem:[#allocation2 + $0x40] sm:$0xff] }
  0x30   :  { %336 = vmatpush.msrb.mxu0 %v188_v9  ;;  %423 = vmatpush.msrb.mxu3 %v191_v10  ;;  %v189_v17 = vld [vmem:[#allocation2 + $0x70] sm:$0xff]  ;;  %v192_v20 = vld [vmem:[#allocation2 + $0x88] sm:$0xff]  ;;  %v480_v56 = vld [vmem:[#allocation6 + $0x8] sm:$0xff] }
  0x31   :  { %250 = vmatpush.msra.mxu1 %v176_v8  ;;  %394 = vmatpush.msrb.mxu2 %v190_v13  ;;  %v467_v50 = vld [vmem:[#allocation4] sm:$0xff]  ;;  %v470_v57 = vld [vmem:[#allocation4 + $0x18] sm:$0xff]  ;;  %v2437_v60 = vld [vmem:[#allocation15] sm:$0xff] }
  0x32   :  { %2551 = vmatmul.msk.f32.vlgmr.msra.gmra.mxu1 %vm193_vm0, %v2960_v4  ;;  %337 = vmatpush.msrb.mxu0 %v179_v11  ;;  %v479_v51 = vld [vmem:[#allocation6] sm:$0xff]  ;;  %v473_v61 = vld [vmem:[#allocation4 + $0x30] sm:$0xff]  ;;  %v476_v1 = vld [vmem:[#allocation4 + $0x48] sm:$0xff] }
  0x33   :  { %424 = vmatpush.msrb.mxu3 %v182_v12  ;;  %395 = vmatpush.msrb.mxu2 %v181_v14  ;;  %v481_v0 = vld [vmem:[#allocation6 + $0x10] sm:$0xff]  ;;  %v482_v3 = vld [vmem:[#allocation6 + $0x18] sm:$0xff]  ;;  %v728_v5 = vld [vmem:[#allocation7 + $0x3c8] sm:$0xff] }
  0x34   :  { %365 = vmatpush.msrb.mxu1 %v189_v17  ;;  %452 = vmatpush.msra.mxu0 %v192_v20  ;;  %v719_v6 = vld [vmem:[#allocation7 + $0x380] sm:$0xff]  ;;  %v468_v7 = vld [vmem:[#allocation4 + $0x8] sm:$0xff]  ;;  %v729_v9 = vld [vmem:[#allocation7 + $0x3d0] sm:$0xff] }
  0x35   :  { %2548 = vmatmul.msk.f32.gmra.mxu0 %vm193_vm0, %v172_v15  ;;  %485 = vperm.xlu0 %2609, %v479_v51   ;;  %v720_v8 = vld [vmem:[#allocation7 + $0x388] sm:$0xff]  ;;  %v469_v10 = vld [vmem:[#allocation4 + $0x10] sm:$0xff]  ;;  %v711_v11 = vld [vmem:[#allocation7 + $0x340] sm:$0xff] }
  0x36   :  { %2560 = vmatmul.msk.f32.gmra.mxu3 %vm193_vm0, %v172_v15  ;;  %366 = vmatpush.msrb.mxu1 %v180_v18  ;;  %v730_v12 = vld [vmem:[#allocation7 + $0x3d8] sm:$0xff]  ;;  %v721_v13 = vld [vmem:[#allocation7 + $0x390] sm:$0xff]  ;;  %v712_v14 = vld [vmem:[#allocation7 + $0x348] sm:$0xff] }
  0x37   :  { %2556 = vmatmul.msk.f32.gmra.mxu2 %vm193_vm0, %v172_v15  ;;  %453 = vmatpush.msra.mxu0 %v183_v21  ;;  %v714_v17 = vld [vmem:[#allocation7 + $0x358] sm:$0xff]  ;;  %v471_v18 = vld [vmem:[#allocation4 + $0x20] sm:$0xff] }
  0x38   :  { %2611 = vset.pattern.permute.xlu2 %v2865_v52  ;;  %495 = vperm.xlu1 %2610, %v481_v0   ;;  %v474_v20 = vld [vmem:[#allocation4 + $0x38] sm:$0xff]  ;;  %v475_v21 = vld [vmem:[#allocation4 + $0x40] sm:$0xff] }
  0x39   :  { %v658_v51 = vld [vmem:[#allocation7 + $0x198] sm:$0xff]  ;;  %v647_v52 = vld [vmem:[#allocation7 + $0x140] sm:$0xff] }
  0x3a   :  { %2552 = vmatmul.msk.f32.gmra.mxu1 %vm193_vm0, %v172_v15  ;;  %v623_v0 = vld [vmem:[#allocation7 + $0x80] sm:$0xff] }
  0x3d   :  { %2549 = vmatmul.msk.f32.gmra.mxu0 %vm193_vm0, %v173_v16  ;;  %490 = vperm.xlu0 %2609, %v480_v56   ;;  %v639_v56 = vld [vmem:[#allocation7 + $0x100] sm:$0xff] }
  0x3e   :  { %2561 = vmatmul.msk.f32.gmra.mxu3 %vm193_vm0, %v173_v16 }
  0x3f   :  { %2557 = vmatmul.msk.f32.gmra.mxu2 %vm193_vm0, %v173_v16 }
  0x40   :  { %500 = vperm.xlu1 %2610, %v482_v3   ;;  %v626_v3 = vld [vmem:[#allocation7 + $0x98] sm:$0xff] }
  0x42   :  { %2553 = vmatmul.msk.f32.gmra.mxu1 %vm193_vm0, %v173_v16 }
  0x45   :  { %2550 = vmatmul.msk.f32.gmra.mxu0 %vm193_vm0, %v174_v19  ;;  %2440 = vperm.xlu0 %2609, %v2437_v60   ;;  %v631_v60 = vld [vmem:[#allocation7 + $0xc0] sm:$0xff] }
  0x46   :  { %2562 = vmatmul.msk.f32.gmra.mxu3 %vm193_vm0, %v174_v19 }
  0x47   :  { %2558 = vmatmul.msk.f32.gmra.mxu2 %vm193_vm0, %v174_v19 }
  0x4a   :  { %2554 = vmatmul.msk.f32.gmra.mxu1 %vm193_vm0, %v174_v19 }
  0x4d   :  { %2563 = vmatmul.msk.f32.vlgmr.msrb.gmra.mxu0 %vm193_vm0, %v2960_v4 }
  0x4e   :  { %2575 = vmatmul.msk.f32.vlgmr.msrb.gmra.mxu3 %vm193_vm0, %v2960_v4 }
  0x4f   :  { %2571 = vmatmul.msk.f32.vlgmr.msrb.gmra.mxu2 %vm193_vm0, %v2960_v4 }
  0x52   :  { %2567 = vmatmul.msk.f32.vlgmr.msrb.gmra.mxu1 %vm193_vm0, %v2960_v4 }
  0x55   :  { %2564 = vmatmul.msk.f32.gmra.mxu0 %vm193_vm0, %v172_v15 }
  0x56   :  { %2576 = vmatmul.msk.f32.gmra.mxu3 %vm193_vm0, %v172_v15 }
  0x57   :  { %2572 = vmatmul.msk.f32.gmra.mxu2 %vm193_vm0, %v172_v15 }
  0x5a   :  { %2568 = vmatmul.msk.f32.gmra.mxu1 %vm193_vm0, %v172_v15 }
  0x5d   :  { %2565 = vmatmul.msk.f32.gmra.mxu0 %vm193_vm0, %v173_v16 }
  0x5e   :  { %2577 = vmatmul.msk.f32.gmra.mxu3 %vm193_vm0, %v173_v16 }
  0x5f   :  { %2573 = vmatmul.msk.f32.gmra.mxu2 %vm193_vm0, %v173_v16 }
  0x62   :  { %2569 = vmatmul.msk.f32.gmra.mxu1 %vm193_vm0, %v173_v16 }
  0x65   :  { %2566 = vmatmul.msk.f32.gmra.mxu0 %vm193_vm0, %v174_v19 }
  0x66   :  { %2578 = vmatmul.msk.f32.gmra.mxu3 %vm193_vm0, %v174_v19 }
  0x67   :  { %2574 = vmatmul.msk.f32.gmra.mxu2 %vm193_vm0, %v174_v19 }
  0x6a   :  { %2570 = vmatmul.msk.f32.gmra.mxu1 %vm193_vm0, %v174_v19 }
  0x6d   :  { %2579 = vmatmul.msk.f32.vlgmr.msra.gmra.mxu0 %vm193_vm0, %v2960_v4  ;;  %v727_v4 = vld [vmem:[#allocation7 + $0x3c0] sm:$0xff] }
  0x6e   :  { %735 = vmatpush.msrb.mxu0 %v727_v4  ;;  %v615_v4 = vld [vmem:[#allocation7 + $0x40] sm:$0xff] }
  0x70   :  { %736 = vmatpush.msrb.mxu0 %v719_v6  ;;  %v617_v6 = vld [vmem:[#allocation7 + $0x50] sm:$0xff] }
  0x72   :  { %737 = vmatpush.msrb.mxu0 %v711_v11  ;;  %v610_v11 = vld [vmem:[#allocation7 + $0x18] sm:$0xff] }
  0x75   :  { %2580 = vmatmul.msk.f32.gmra.mxu0 %vm193_vm0, %v172_v15  ;;  %v722_v15 = vld [vmem:[#allocation7 + $0x398] sm:$0xff] }
  0x7d   :  { %2581 = vmatmul.msk.f32.gmra.mxu0 %vm193_vm0, %v173_v16  ;;  %v713_v16 = vld [vmem:[#allocation7 + $0x350] sm:$0xff] }
  0x85   :  { %2582 = vmatmul.msk.f32.gmra.mxu0 %vm193_vm0, %v174_v19  ;;  %v472_v19 = vld [vmem:[#allocation4 + $0x28] sm:$0xff] }
  0xaa   :  { %v223_v22 = vpop.f32.mrf.mxu0 }
  0xaf   :  { %v252_v23 = vpop.f32.mrf.mxu1 }
  0xb1   :  { %v310_v24 = vpop.f32.mrf.mxu3 }
  0xb2   :  { %v226_v25 = vpop.f32.mrf.mxu0  ;;  %v281_v26 = vpop.f32.mrf.mxu2 }
  0xb7   :  { %v255_v28 = vpop.f32.mrf.mxu1 }
  0xb9   :  { %v313_v27 = vpop.f32.mrf.mxu3 }
  0xba   :  { %v229_v29 = vpop.f32.mrf.mxu0  ;;  %v284_v30 = vpop.f32.mrf.mxu2 }
  0xbf   :  { %v258_v34 = vpop.f32.mrf.mxu1 }
  0xc1   :  { %v316_v31 = vpop.f32.mrf.mxu3 }
  0xc2   :  { %v232_v32 = vpop.f32.mrf.mxu0  ;;  %v287_v33 = vpop.f32.mrf.mxu2 }
  0xc7   :  { %v261_v38 = vpop.f32.mrf.mxu1 }
  0xc9   :  { %v319_v35 = vpop.f32.mrf.mxu3 }
  0xca   :  { %516 = vmatpush.msra.mxu1 %v319_v35  ;;  %v3016_v36 = vpop.f32.mrf.mxu0  ;;  %v290_v37 = vpop.f32.mrf.mxu2  ;;  %v690_v35 = vld [vmem:[#allocation7 + $0x298] sm:$0xff] }
  0xcc   :  { %517 = vmatpush.msra.mxu1 %v316_v31  ;;  %v698_v31 = vld [vmem:[#allocation7 + $0x2d8] sm:$0xff] }
  0xce   :  { %518 = vmatpush.msra.mxu1 %v313_v27  ;;  %v706_v27 = vld [vmem:[#allocation7 + $0x318] sm:$0xff] }
  0xcf   :  { %v368_v43 = vpop.f32.mrf.mxu1 }
  0xd0   :  { %519 = vmatpush.msra.mxu1 %v310_v24  ;;  %v703_v24 = vld [vmem:[#allocation7 + $0x300] sm:$0xff] }
  0xd1   :  { %v426_v39 = vpop.f32.mrf.mxu3  ;;  %738 = vmatpush.msrb.mxu0 %v703_v24  ;;  %v707_v24 = vld [vmem:[#allocation7 + $0x320] sm:$0xff] }
  0xd2   :  { %520 = vmatpush.msra.mxu1 %v290_v37  ;;  %v3018_v40 = vpop.f32.mrf.mxu0  ;;  %v397_v41 = vpop.f32.mrf.mxu2  ;;  %v680_v37 = vld [vmem:[#allocation7 + $0x248] sm:$0xff] }
  0xd4   :  { %521 = vmatpush.msra.mxu1 %v287_v33  ;;  %v688_v33 = vld [vmem:[#allocation7 + $0x288] sm:$0xff] }
  0xd6   :  { %522 = vmatpush.msra.mxu1 %v284_v30  ;;  %v697_v30 = vld [vmem:[#allocation7 + $0x2d0] sm:$0xff] }
  0xd7   :  { %v371_v48 = vpop.f32.mrf.mxu1 }
  0xd8   :  { %523 = vmatpush.msra.mxu1 %v281_v26  ;;  %v705_v26 = vld [vmem:[#allocation7 + $0x310] sm:$0xff] }
  0xd9   :  { %v429_v42 = vpop.f32.mrf.mxu3 }
  0xda   :  { %524 = vmatpush.msra.mxu1 %v261_v38  ;;  %v345_v44 = vpop.f32.mrf.mxu0  ;;  %v400_v45 = vpop.f32.mrf.mxu2  ;;  %v681_v38 = vld [vmem:[#allocation7 + $0x250] sm:$0xff] }
  0xdc   :  { %525 = vmatpush.msra.mxu1 %v258_v34  ;;  %v689_v34 = vld [vmem:[#allocation7 + $0x290] sm:$0xff] }
  0xde   :  { %526 = vmatpush.msra.mxu1 %v255_v28  ;;  %v695_v28 = vld [vmem:[#allocation7 + $0x2c0] sm:$0xff] }
  0xdf   :  { %v374_v55 = vpop.f32.mrf.mxu1  ;;  %739 = vmatpush.msrb.mxu0 %v695_v28  ;;  %v699_v28 = vld [vmem:[#allocation7 + $0x2e0] sm:$0xff] }
  0xe0   :  { %527 = vmatpush.msra.mxu1 %v252_v23  ;;  %v478_v23 = vld [vmem:[#allocation4 + $0x58] sm:$0xff] }
  0xe1   :  { %v432_v46 = vpop.f32.mrf.mxu3 }
  0xe2   :  { %528 = vmatpush.msra.mxu1 %v232_v32  ;;  %v348_v47 = vpop.f32.mrf.mxu0  ;;  %v403_v49 = vpop.f32.mrf.mxu2  ;;  %v687_v32 = vld [vmem:[#allocation7 + $0x280] sm:$0xff] }
  0xe3   :  { %740 = vmatpush.msrb.mxu0 %v687_v32  ;;  %v691_v32 = vld [vmem:[#allocation7 + $0x2a0] sm:$0xff] }
  0xe4   :  { %529 = vmatpush.msra.mxu1 %v229_v29  ;;  %v696_v29 = vld [vmem:[#allocation7 + $0x2c8] sm:$0xff] }
  0xe6   :  { %530 = vmatpush.msra.mxu1 %v226_v25  ;;  %v704_v25 = vld [vmem:[#allocation7 + $0x308] sm:$0xff] }
  0xe7   :  { %v377_v62 = vpop.f32.mrf.mxu1 }
  0xe8   :  { %531 = vmatpush.msra.mxu1 %v223_v22  ;;  %v477_v22 = vld [vmem:[#allocation4 + $0x50] sm:$0xff] }
  0xe9   :  { %v435_v53 = vpop.f32.mrf.mxu3  ;;  %532 = vmatmul.f32.vlgmr.msra.gmra.mxu1 %v467_v50  ;;  %v657_v50 = vld [vmem:[#allocation7 + $0x190] sm:$0xff] }
  0xea   :  { %545 = vmatpush.msra.mxu2 %v435_v53  ;;  %v455_v54 = vpop.f32.mrf.mxu0  ;;  %v406_v58 = vpop.f32.mrf.mxu2  ;;  %764 = vmatpush.msrb.mxu1 %v728_v5  ;;  %v648_v53 = vld [vmem:[#allocation7 + $0x148] sm:$0xff] }
  0xeb   :  { %v616_v5 = vld [vmem:[#allocation7 + $0x48] sm:$0xff] }
  0xec   :  { %546 = vmatpush.msra.mxu2 %v432_v46  ;;  %765 = vmatpush.msrb.mxu1 %v720_v8  ;;  %v665_v46 = vld [vmem:[#allocation7 + $0x1d0] sm:$0xff]  ;;  %v607_v8 = vld [vmem:[#allocation7] sm:$0xff] }
  0xee   :  { %547 = vmatpush.msra.mxu2 %v429_v42  ;;  %766 = vmatpush.msrb.mxu1 %v712_v14  ;;  %v673_v42 = vld [vmem:[#allocation7 + $0x210] sm:$0xff] }
  0xef   :  { %v733_v14 = vld [vmem:[#allocation7 + $0x3f0] sm:$0xff] }
  0xf0   :  { %548 = vmatpush.msra.mxu2 %v426_v39  ;;  %767 = vmatpush.msrb.mxu1 %v704_v25  ;;  %v682_v39 = vld [vmem:[#allocation7 + $0x258] sm:$0xff]  ;;  %v708_v25 = vld [vmem:[#allocation7 + $0x328] sm:$0xff] }
  0xf1   :  { %535 = vmatmul.f32.gmra.mxu1 %v470_v57  ;;  %v640_v57 = vld [vmem:[#allocation7 + $0x108] sm:$0xff] }
  0xf2   :  { %549 = vmatpush.msra.mxu2 %v406_v58  ;;  %v458_v59 = vpop.f32.mrf.mxu0  ;;  %768 = vmatpush.msrb.mxu1 %v696_v29  ;;  %v641_v58 = vld [vmem:[#allocation7 + $0x110] sm:$0xff]  ;;  %v700_v29 = vld [vmem:[#allocation7 + $0x2e8] sm:$0xff] }
  0xf4   :  { %550 = vmatpush.msra.mxu2 %v403_v49  ;;  %769 = vmatpush.msrb.mxu1 %v688_v33  ;;  %v656_v49 = vld [vmem:[#allocation7 + $0x188] sm:$0xff] }
  0xf5   :  { %v692_v33 = vld [vmem:[#allocation7 + $0x2a8] sm:$0xff] }
  0xf6   :  { %551 = vmatpush.msra.mxu2 %v400_v45  ;;  %770 = vmatpush.msrb.mxu1 %v680_v37  ;;  %v664_v45 = vld [vmem:[#allocation7 + $0x1c8] sm:$0xff] }
  0xf7   :  { %v684_v37 = vld [vmem:[#allocation7 + $0x268] sm:$0xff] }
  0xf8   :  { %552 = vmatpush.msra.mxu2 %v397_v41  ;;  %v672_v41 = vld [vmem:[#allocation7 + $0x208] sm:$0xff] }
  0xf9   :  { %538 = vmatmul.f32.gmra.mxu1 %v473_v61  ;;  %v632_v61 = vld [vmem:[#allocation7 + $0xc8] sm:$0xff] }
  0xfa   :  { %553 = vmatpush.msra.mxu2 %v377_v62  ;;  %v461_v63 = vpop.f32.mrf.mxu0  ;;  %771 = vmatpush.msrb.mxu1 %v672_v41  ;;  %v633_v62 = vld [vmem:[#allocation7 + $0xd0] sm:$0xff]  ;;  %v676_v41 = vld [vmem:[#allocation7 + $0x228] sm:$0xff] }
  0xfc   :  { %554 = vmatpush.msra.mxu2 %v374_v55  ;;  %772 = vmatpush.msrb.mxu1 %v664_v45  ;;  %v650_v55 = vld [vmem:[#allocation7 + $0x158] sm:$0xff]  ;;  %v667_v45 = vld [vmem:[#allocation7 + $0x1e0] sm:$0xff] }
  0xfe   :  { %555 = vmatpush.msra.mxu2 %v371_v48  ;;  %v655_v48 = vld [vmem:[#allocation7 + $0x180] sm:$0xff]  ;;  %773 = vmatpush.msrb.mxu1 %v656_v49 }
  0xff   :  { %v659_v49 = vld [vmem:[#allocation7 + $0x1a0] sm:$0xff] }
 0x100   :  { %556 = vmatpush.msra.mxu2 %v368_v43  ;;  %v674_v43 = vld [vmem:[#allocation7 + $0x218] sm:$0xff]  ;;  %774 = vmatpush.msrb.mxu1 %v648_v53  ;;  %v486_v53 = vpop.permute.xlu0 %485 }
 0x101   :  { %541 = vmatmul.f32.gmra.mxu1 %v476_v1  ;;  %v624_v1 = vld [vmem:[#allocation7 + $0x88] sm:$0xff] }
 0x102   :  { %557 = vmatpush.msra.mxu2 %v348_v47  ;;  %v464_v2 = vpop.f32.mrf.mxu0  ;;  %v666_v47 = vld [vmem:[#allocation7 + $0x1d8] sm:$0xff]  ;;  %775 = vmatpush.msrb.mxu1 %v640_v57 }
 0x103   :  { %586 = vmatpush.msra.mxu3 %v464_v2  ;;  %v625_v2 = vld [vmem:[#allocation7 + $0x90] sm:$0xff] }
 0x104   :  { %558 = vmatpush.msra.mxu2 %v345_v44  ;;  %v663_v44 = vld [vmem:[#allocation7 + $0x1c0] sm:$0xff]  ;;  %776 = vmatpush.msrb.mxu1 %v632_v61  ;;  %v645_v61 = vld [vmem:[#allocation7 + $0x130] sm:$0xff] }
 0x105   :  { %587 = vmatpush.msra.mxu3 %v461_v63  ;;  %v634_v63 = vld [vmem:[#allocation7 + $0xd8] sm:$0xff] }
 0x106   :  { %559 = vmatpush.msra.mxu2 %v3018_v40  ;;  %v671_v40 = vld [vmem:[#allocation7 + $0x200] sm:$0xff]  ;;  %777 = vmatpush.msrb.mxu1 %v624_v1 }
 0x107   :  { %588 = vmatpush.msra.mxu3 %v458_v59  ;;  %v642_v59 = vld [vmem:[#allocation7 + $0x118] sm:$0xff]  ;;  %v635_v1 = vld [vmem:[#allocation7 + $0xe0] sm:$0xff] }
 0x108   :  { %560 = vmatpush.msra.mxu2 %v3016_v36  ;;  %v679_v36 = vld [vmem:[#allocation7 + $0x240] sm:$0xff]  ;;  %778 = vmatpush.msrb.mxu1 %v616_v5  ;;  %v638_v5 = vld [vmem:[#allocation7 + $0xf8] sm:$0xff] }
 0x109   :  { %561 = vmatmul.f32.vlgmr.msra.gmra.mxu2 %v468_v7  ;;  %589 = vmatpush.msra.mxu3 %v455_v54  ;;  %v649_v54 = vld [vmem:[#allocation7 + $0x150] sm:$0xff]  ;;  %v618_v7 = vld [vmem:[#allocation7 + $0x58] sm:$0xff] }
 0x10a   :  { %793 = vmatpush.msrb.mxu2 %v729_v9  ;;  %2583 = vmatmul.msk.f32.vlgmr.msra.gmra.mxu3 %vm503_vm1, %v469_v10  ;;  %v608_v9 = vld [vmem:[#allocation7 + $0x8] sm:$0xff]  ;;  %v609_v10 = vld [vmem:[#allocation7 + $0x10] sm:$0xff] }
 0x10b   :  { %822 = vmatpush.msrb.mxu3 %v730_v12  ;;  %741 = vmatpush.msrb.mxu0 %v679_v36  ;;  %v731_v12 = vld [vmem:[#allocation7 + $0x3e0] sm:$0xff] }
 0x10c   :  { %794 = vmatpush.msrb.mxu2 %v721_v13  ;;  %779 = vmatpush.msrb.mxu1 %v608_v9  ;;  %v732_v13 = vld [vmem:[#allocation7 + $0x3e8] sm:$0xff]  ;;  %v683_v36 = vld [vmem:[#allocation7 + $0x260] sm:$0xff]  ;;  %v629_v9 = vld [vmem:[#allocation7 + $0xb0] sm:$0xff] }
 0x10d   :  { %823 = vmatpush.msrb.mxu3 %v722_v15  ;;  %742 = vmatpush.msrb.mxu0 %v671_v40  ;;  %v734_v15 = vld [vmem:[#allocation7 + $0x3f8] sm:$0xff]  ;;  %v675_v40 = vld [vmem:[#allocation7 + $0x220] sm:$0xff] }
 0x10e   :  { %795 = vmatpush.msrb.mxu2 %v713_v16  ;;  %880 = vmatpush.msra.mxu1 %v732_v13  ;;  %v723_v16 = vld [vmem:[#allocation7 + $0x3a0] sm:$0xff]  ;;  %v620_v13 = vld [vmem:[#allocation7 + $0x68] sm:$0xff] }
 0x10f   :  { %824 = vmatpush.msrb.mxu3 %v714_v17  ;;  %743 = vmatpush.msrb.mxu0 %v663_v44  ;;  %v724_v17 = vld [vmem:[#allocation7 + $0x3a8] sm:$0xff]  ;;  %v678_v44 = vld [vmem:[#allocation7 + $0x238] sm:$0xff] }
 0x110   :  { %796 = vmatpush.msrb.mxu2 %v705_v26  ;;  %881 = vmatpush.msra.mxu1 %v724_v17  ;;  %v709_v26 = vld [vmem:[#allocation7 + $0x330] sm:$0xff]  ;;  %v491_v17 = vpop.permute.xlu0 %490 }
 0x111   :  { %564 = vmatmul.f32.gmra.mxu2 %v471_v18  ;;  %825 = vmatpush.msrb.mxu3 %v706_v27  ;;  %v725_v18 = vld [vmem:[#allocation7 + $0x3b0] sm:$0xff]  ;;  %v710_v27 = vld [vmem:[#allocation7 + $0x338] sm:$0xff] }
 0x112   :  { %2584 = vmatmul.msk.f32.gmra.mxu3 %vm503_vm1, %v472_v19  ;;  %797 = vmatpush.msrb.mxu2 %v697_v30  ;;  %v726_v19 = vld [vmem:[#allocation7 + $0x3b8] sm:$0xff]  ;;  %v701_v30 = vld [vmem:[#allocation7 + $0x2f0] sm:$0xff] }
 0x113   :  { %826 = vmatpush.msrb.mxu3 %v698_v31  ;;  %744 = vmatpush.msrb.mxu0 %v655_v48  ;;  %v702_v31 = vld [vmem:[#allocation7 + $0x2f8] sm:$0xff] }
 0x114   :  { %798 = vmatpush.msrb.mxu2 %v689_v34  ;;  %v693_v34 = vld [vmem:[#allocation7 + $0x2b0] sm:$0xff]  ;;  %v670_v48 = vld [vmem:[#allocation7 + $0x1f8] sm:$0xff] }
 0x115   :  { %827 = vmatpush.msrb.mxu3 %v690_v35  ;;  %745 = vmatpush.msrb.mxu0 %v647_v52  ;;  %v694_v35 = vld [vmem:[#allocation7 + $0x2b8] sm:$0xff] }
 0x116   :  { %799 = vmatpush.msrb.mxu2 %v681_v38  ;;  %v685_v38 = vld [vmem:[#allocation7 + $0x270] sm:$0xff]  ;;  %v662_v52 = vld [vmem:[#allocation7 + $0x1b8] sm:$0xff] }
 0x117   :  { %828 = vmatpush.msrb.mxu3 %v682_v39  ;;  %746 = vmatpush.msrb.mxu0 %v639_v56  ;;  %v686_v39 = vld [vmem:[#allocation7 + $0x278] sm:$0xff]  ;;  %v653_v56 = vld [vmem:[#allocation7 + $0x170] sm:$0xff] }
 0x118   :  { %800 = vmatpush.msrb.mxu2 %v673_v42 }
 0x119   :  { %567 = vmatmul.f32.gmra.mxu2 %v474_v20  ;;  %829 = vmatpush.msrb.mxu3 %v674_v43  ;;  %v715_v20 = vld [vmem:[#allocation7 + $0x360] sm:$0xff]  ;;  %v677_v43 = vld [vmem:[#allocation7 + $0x230] sm:$0xff] }
 0x11a   :  { %2585 = vmatmul.msk.f32.gmra.mxu3 %vm503_vm1, %v475_v21  ;;  %801 = vmatpush.msrb.mxu2 %v665_v46  ;;  %v716_v21 = vld [vmem:[#allocation7 + $0x368] sm:$0xff] }
 0x11b   :  { %830 = vmatpush.msrb.mxu3 %v666_v47  ;;  %747 = vmatpush.msrb.mxu0 %v631_v60  ;;  %v668_v46 = vld [vmem:[#allocation7 + $0x1e8] sm:$0xff]  ;;  %v669_v47 = vld [vmem:[#allocation7 + $0x1f0] sm:$0xff] }
 0x11c   :  { %802 = vmatpush.msrb.mxu2 %v657_v50  ;;  %882 = vmatpush.msra.mxu1 %v716_v21  ;;  %v660_v50 = vld [vmem:[#allocation7 + $0x1a8] sm:$0xff]  ;;  %v613_v21 = vld [vmem:[#allocation7 + $0x30] sm:$0xff] }
 0x11d   :  { %831 = vmatpush.msrb.mxu3 %v658_v51  ;;  %748 = vmatpush.msrb.mxu0 %v623_v0  ;;  %v661_v51 = vld [vmem:[#allocation7 + $0x1b0] sm:$0xff]  ;;  %v644_v60 = vld [vmem:[#allocation7 + $0x128] sm:$0xff] }
 0x11e   :  { %803 = vmatpush.msrb.mxu2 %v649_v54  ;;  %883 = vmatpush.msra.mxu1 %v708_v25  ;;  %v651_v54 = vld [vmem:[#allocation7 + $0x160] sm:$0xff] }
 0x11f   :  { %832 = vmatpush.msrb.mxu3 %v650_v55  ;;  %749 = vmatpush.msrb.mxu0 %v615_v4  ;;  %v652_v55 = vld [vmem:[#allocation7 + $0x168] sm:$0xff] }
 0x120   :  { %804 = vmatpush.msrb.mxu2 %v641_v58  ;;  %884 = vmatpush.msra.mxu1 %v700_v29  ;;  %v654_v58 = vld [vmem:[#allocation7 + $0x178] sm:$0xff] }
 0x121   :  { %570 = vmatmul.f32.gmra.mxu2 %v477_v22  ;;  %833 = vmatpush.msrb.mxu3 %v642_v59  ;;  %v717_v22 = vld [vmem:[#allocation7 + $0x370] sm:$0xff]  ;;  %v643_v59 = vld [vmem:[#allocation7 + $0x120] sm:$0xff] }
 0x122   :  { %2586 = vmatmul.msk.f32.gmra.mxu3 %vm503_vm1, %v478_v23  ;;  %805 = vmatpush.msrb.mxu2 %v633_v62  ;;  %v718_v23 = vld [vmem:[#allocation7 + $0x378] sm:$0xff] }
 0x123   :  { %834 = vmatpush.msrb.mxu3 %v634_v63  ;;  %750 = vmatpush.msrb.mxu0 %v607_v8  ;;  %v646_v62 = vld [vmem:[#allocation7 + $0x138] sm:$0xff] }
 0x124   :  { %806 = vmatpush.msrb.mxu2 %v625_v2  ;;  %885 = vmatpush.msra.mxu1 %v692_v33  ;;  %v636_v2 = vld [vmem:[#allocation7 + $0xe8] sm:$0xff] }
 0x125   :  { %835 = vmatpush.msrb.mxu3 %v626_v3  ;;  %851 = vmatpush.msra.mxu0 %v731_v12  ;;  %v637_v3 = vld [vmem:[#allocation7 + $0xf0] sm:$0xff] }
 0x126   :  { %807 = vmatpush.msrb.mxu2 %v617_v6  ;;  %886 = vmatpush.msra.mxu1 %v684_v37  ;;  %v627_v6 = vld [vmem:[#allocation7 + $0xa0] sm:$0xff] }
 0x127   :  { %836 = vmatpush.msrb.mxu3 %v618_v7  ;;  %852 = vmatpush.msra.mxu0 %v723_v16  ;;  %v628_v7 = vld [vmem:[#allocation7 + $0xa8] sm:$0xff] }
 0x128   :  { %808 = vmatpush.msrb.mxu2 %v609_v10  ;;  %887 = vmatpush.msra.mxu1 %v676_v41  ;;  %v630_v10 = vld [vmem:[#allocation7 + $0xb8] sm:$0xff] }
 0x129   :  { %837 = vmatpush.msrb.mxu3 %v610_v11  ;;  %853 = vmatpush.msra.mxu0 %v715_v20  ;;  %v619_v11 = vld [vmem:[#allocation7 + $0x60] sm:$0xff] }
 0x12a   :  { %909 = vmatpush.msra.mxu2 %v733_v14  ;;  %888 = vmatpush.msra.mxu1 %v668_v46  ;;  %v621_v14 = vld [vmem:[#allocation7 + $0x70] sm:$0xff] }
 0x12b   :  { %938 = vmatpush.msra.mxu3 %v734_v15  ;;  %854 = vmatpush.msra.mxu0 %v707_v24  ;;  %v622_v15 = vld [vmem:[#allocation7 + $0x78] sm:$0xff]  ;;  %v496_v24 = vpop.permute.xlu1 %495 }
 0x12c   :  { %910 = vmatpush.msra.mxu2 %v725_v18  ;;  %889 = vmatpush.msra.mxu1 %v660_v50  ;;  %v611_v18 = vld [vmem:[#allocation7 + $0x20] sm:$0xff] }
 0x12d   :  { %939 = vmatpush.msra.mxu3 %v726_v19  ;;  %855 = vmatpush.msra.mxu0 %v699_v28  ;;  %v612_v19 = vld [vmem:[#allocation7 + $0x28] sm:$0xff] }
 0x12e   :  { %911 = vmatpush.msra.mxu2 %v717_v22  ;;  %890 = vmatpush.msra.mxu1 %v652_v55  ;;  %v614_v22 = vld [vmem:[#allocation7 + $0x38] sm:$0xff] }
 0x12f   :  { %940 = vmatpush.msra.mxu3 %v718_v23  ;;  %856 = vmatpush.msra.mxu0 %v691_v32 }
 0x130   :  { %912 = vmatpush.msra.mxu2 %v709_v26  ;;  %891 = vmatpush.msra.mxu1 %v644_v60 }
 0x131   :  { %941 = vmatpush.msra.mxu3 %v710_v27  ;;  %857 = vmatpush.msra.mxu0 %v683_v36 }
 0x132   :  { %913 = vmatpush.msra.mxu2 %v701_v30  ;;  %892 = vmatpush.msra.mxu1 %v636_v2 }
 0x133   :  { %942 = vmatpush.msra.mxu3 %v702_v31  ;;  %858 = vmatpush.msra.mxu0 %v675_v40 }
 0x134   :  { %914 = vmatpush.msra.mxu2 %v693_v34  ;;  %893 = vmatpush.msra.mxu1 %v628_v7 }
 0x135   :  { %943 = vmatpush.msra.mxu3 %v694_v35  ;;  %859 = vmatpush.msra.mxu0 %v667_v45  ;;  %v501_v35 = vpop.permute.xlu1 %500 }
 0x136   :  { %915 = vmatpush.msra.mxu2 %v685_v38  ;;  %894 = vmatpush.msra.mxu1 %v620_v13  ;;  %v1301_v13 = vld [vmem:[#allocation12 + $0x870] sm:$0xff] }
 0x137   :  { %944 = vmatpush.msra.mxu3 %v686_v39  ;;  %860 = vmatpush.msra.mxu0 %v659_v49 }
 0x138   :  { %916 = vmatpush.msra.mxu2 %v677_v43  ;;  %895 = vmatpush.msra.mxu1 %v612_v19  ;;  %v1247_v19 = vld [vmem:[#allocation12 + $0x6c0] sm:$0xff] }
 0x139   :  { %945 = vmatpush.msra.mxu3 %v678_v44  ;;  %861 = vmatpush.msra.mxu0 %v651_v54 }
 0x13a   :  { %917 = vmatpush.msra.mxu2 %v669_v47 }
 0x13b   :  { %946 = vmatpush.msra.mxu3 %v670_v48  ;;  %862 = vmatpush.msra.mxu0 %v643_v59 }
 0x13c   :  { %918 = vmatpush.msra.mxu2 %v661_v51 }
 0x13d   :  { %947 = vmatpush.msra.mxu3 %v662_v52  ;;  %863 = vmatpush.msra.mxu0 %v635_v1 }
 0x13e   :  { %919 = vmatpush.msra.mxu2 %v653_v56 }
 0x13f   :  { %948 = vmatpush.msra.mxu3 %v654_v58  ;;  %864 = vmatpush.msra.mxu0 %v627_v6 }
 0x140   :  { %920 = vmatpush.msra.mxu2 %v645_v61 }
 0x141   :  { %949 = vmatpush.msra.mxu3 %v646_v62  ;;  %865 = vmatpush.msra.mxu0 %v619_v11 }
 0x142   :  { %921 = vmatpush.msra.mxu2 %v637_v3 }
 0x143   :  { %950 = vmatpush.msra.mxu3 %v638_v5  ;;  %866 = vmatpush.msra.mxu0 %v611_v18  ;;  %v1553_v18 = vld [vmem:[#allocation12 + $0x1050] sm:$0xff] }
 0x144   :  { %922 = vmatpush.msra.mxu2 %v629_v9 }
 0x145   :  { %951 = vmatpush.msra.mxu3 %v630_v10 }
 0x146   :  { %923 = vmatpush.msra.mxu2 %v621_v14  ;;  %v1589_v14 = vld [vmem:[#allocation12 + $0x1170] sm:$0xff] }
 0x147   :  { %952 = vmatpush.msra.mxu3 %v622_v15  ;;  %v1283_v15 = vld [vmem:[#allocation12 + $0x7e0] sm:$0xff] }
 0x148   :  { %924 = vmatpush.msra.mxu2 %v613_v21  ;;  %v1535_v21 = vld [vmem:[#allocation12 + $0xfc0] sm:$0xff] }
 0x149   :  { %953 = vmatpush.msra.mxu3 %v614_v22  ;;  %v1229_v22 = vld [vmem:[#allocation12 + $0x630] sm:$0xff] }
 0x166   :  { %v533_v42 = vpop.f32.mrf.mxu1 }
 0x167   :  { %v534_v57 = vadd.f32 %v533_v42, %v486_v53 }
 0x16e   :  { %v536_v63 = vpop.f32.mrf.mxu1 }
 0x16f   :  { %v537_v20 = vadd.f32 %v536_v63, %v491_v17  ;;  %v1265_v17 = vld [vmem:[#allocation12 + $0x750] sm:$0xff] }
 0x176   :  { %v539_v26 = vpop.f32.mrf.mxu1 }
 0x177   :  { %v540_v29 = vadd.f32 %v539_v26, %v496_v24  ;;  %v1211_v24 = vld [vmem:[#allocation12 + $0x5a0] sm:$0xff]  ;;  %v1193_v26 = vld [vmem:[#allocation12 + $0x510] sm:$0xff] }
 0x17e   :  { %v542_v36 = vpop.f32.mrf.mxu1 }
 0x17f   :  { %v543_v38 = vadd.f32 %v542_v36, %v501_v35  ;;  %v1302_v35 = vld [vmem:[#allocation12 + $0x878] sm:$0xff] }
 0x180   :  { %v1590_v36 = vld [vmem:[#allocation12 + $0x1178] sm:$0xff] }
 0x18c   :  { %v562_v0 = vpop.f32.mrf.mxu2 }
 0x18d   :  { %v563_v4 = vadd.f32 %v562_v0, %v534_v57  ;;  %v591_v8 = vpop.f32.mrf.mxu3 }
 0x18f   :  { %v592_v12 = vadd.f32 %v591_v8, %v563_v4 }
 0x191   :  { %v603_v16 = vmax.f32 %v592_v12, 0.0  ;;  %v969_v12 = vld [vmem:[#allocation10] sm:$0xff] }
 0x192   :  { %973 = vperm.xlu2 %2611, %v969_v12   ;;  %v1249_v12 = vld [vmem:[#allocation12 + $0x6d0] sm:$0xff] }
 0x193   :  { %751 = vmatmul.f32.vlgmr.msrb.gmra.mxu0 %v603_v16  ;;  %780 = vmatmul.f32.vlgmr.msrb.gmra.mxu1 %v603_v16 }
 0x194   :  { %809 = vmatmul.f32.vlgmr.msrb.gmra.mxu2 %v603_v16  ;;  %838 = vmatmul.f32.vlgmr.msrb.gmra.mxu3 %v603_v16  ;;  %v565_v23 = vpop.f32.mrf.mxu2 }
 0x195   :  { %v566_v25 = vadd.f32 %v565_v23, %v537_v20  ;;  %v594_v27 = vpop.f32.mrf.mxu3  ;;  %1607 = vmatpush.msrb.mxu2 %v1301_v13  ;;  %1630 = vmatpush.msrb.mxu3 %v1589_v14  ;;  %v970_v20 = vld [vmem:[#allocation10 + $0x8] sm:$0xff]  ;;  %v1517_v23 = vld [vmem:[#allocation12 + $0xf30] sm:$0xff]  ;;  %v1104_v14 = vld [vmem:[#allocation12 + $0x248] sm:$0xff] }
 0x196   :  { %v1537_v13 = vld [vmem:[#allocation12 + $0xfd0] sm:$0xff] }
 0x197   :  { %v595_v28 = vadd.f32 %v594_v27, %v566_v25  ;;  %1608 = vmatpush.msrb.mxu2 %v1283_v15  ;;  %v1499_v25 = vld [vmem:[#allocation12 + $0xea0] sm:$0xff]  ;;  %v1481_v27 = vld [vmem:[#allocation12 + $0xe10] sm:$0xff]  ;;  %v1392_v15 = vld [vmem:[#allocation12 + $0xb48] sm:$0xff] }
 0x199   :  { %v604_v30 = vmax.f32 %v595_v28, 0.0  ;;  %1609 = vmatpush.msrb.mxu2 %v1265_v17  ;;  %v1175_v28 = vld [vmem:[#allocation12 + $0x480] sm:$0xff] }
 0x19a   :  { %978 = vperm.xlu2 %2611, %v970_v20   ;;  %v1519_v17 = vld [vmem:[#allocation12 + $0xf40] sm:$0xff]  ;;  %v1213_v20 = vld [vmem:[#allocation12 + $0x5b0] sm:$0xff] }
 0x19b   :  { %754 = vmatmul.f32.gmra.mxu0 %v604_v30  ;;  %783 = vmatmul.f32.gmra.mxu1 %v604_v30 }
 0x19c   :  { %812 = vmatmul.f32.gmra.mxu2 %v604_v30  ;;  %841 = vmatmul.f32.gmra.mxu3 %v604_v30  ;;  %v568_v31 = vpop.f32.mrf.mxu2 }
 0x19d   :  { %v569_v32 = vadd.f32 %v568_v31, %v540_v29  ;;  %v597_v33 = vpop.f32.mrf.mxu3  ;;  %1610 = vmatpush.msrb.mxu2 %v1247_v19  ;;  %v1463_v29 = vld [vmem:[#allocation12 + $0xd80] sm:$0xff]  ;;  %v1445_v31 = vld [vmem:[#allocation12 + $0xcf0] sm:$0xff]  ;;  %v1374_v19 = vld [vmem:[#allocation12 + $0xab8] sm:$0xff] }
 0x19f   :  { %v598_v34 = vadd.f32 %v597_v33, %v569_v32  ;;  %1611 = vmatpush.msrb.mxu2 %v1229_v22  ;;  %v1139_v32 = vld [vmem:[#allocation12 + $0x360] sm:$0xff]  ;;  %v1068_v22 = vld [vmem:[#allocation12 + $0x128] sm:$0xff] }
 0x1a0   :  { %v1427_v33 = vld [vmem:[#allocation12 + $0xc60] sm:$0xff] }
 0x1a1   :  { %v605_v37 = vmax.f32 %v598_v34, 0.0  ;;  %1612 = vmatpush.msrb.mxu2 %v1211_v24  ;;  %v967_v34 = vld [vmem:[#allocation9] sm:$0xff] }
 0x1a2   :  { %v1195_v24 = vld [vmem:[#allocation12 + $0x520] sm:$0xff] }
 0x1a3   :  { %757 = vmatmul.f32.gmra.mxu0 %v605_v37  ;;  %786 = vmatmul.f32.gmra.mxu1 %v605_v37 }
 0x1a4   :  { %815 = vmatmul.f32.gmra.mxu2 %v605_v37  ;;  %844 = vmatmul.f32.gmra.mxu3 %v605_v37  ;;  %v571_v39 = vpop.f32.mrf.mxu2 }
 0x1a5   :  { %v572_v40 = vadd.f32 %v571_v39, %v543_v38  ;;  %v600_v41 = vpop.f32.mrf.mxu3  ;;  %1613 = vmatpush.msrb.mxu2 %v1193_v26  ;;  %v1409_v38 = vld [vmem:[#allocation12 + $0xbd0] sm:$0xff]  ;;  %v1284_v39 = vld [vmem:[#allocation12 + $0x7e8] sm:$0xff]  ;;  %v1050_v26 = vld [vmem:[#allocation12 + $0x98] sm:$0xff] }
 0x1a7   :  { %v601_v42 = vadd.f32 %v600_v41, %v572_v40  ;;  %1614 = vmatpush.msrb.mxu2 %v1175_v28  ;;  %v1572_v40 = vld [vmem:[#allocation12 + $0x10e8] sm:$0xff]  ;;  %v1103_v41 = vld [vmem:[#allocation12 + $0x240] sm:$0xff]  ;;  %v1177_v28 = vld [vmem:[#allocation12 + $0x490] sm:$0xff] }
 0x1a9   :  { %v606_v43 = vmax.f32 %v601_v42, 0.0  ;;  %v1391_v42 = vld [vmem:[#allocation12 + $0xb40] sm:$0xff] }
 0x1ab   :  { %760 = vmatmul.f32.gmra.mxu0 %v606_v43  ;;  %789 = vmatmul.f32.gmra.mxu1 %v606_v43 }
 0x1ac   :  { %818 = vmatmul.f32.gmra.mxu2 %v606_v43  ;;  %847 = vmatmul.f32.gmra.mxu3 %v606_v43 }
 0x1b3   :  { %867 = vmatmul.f32.vlgmr.msra.gmra.mxu0 %v603_v16  ;;  %896 = vmatmul.f32.vlgmr.msra.gmra.mxu1 %v603_v16 }
 0x1b4   :  { %925 = vmatmul.f32.vlgmr.msra.gmra.mxu2 %v603_v16  ;;  %954 = vmatmul.f32.vlgmr.msra.gmra.mxu3 %v603_v16  ;;  %v1571_v16 = vld [vmem:[#allocation12 + $0x10e0] sm:$0xff] }
 0x1b5   :  { %1631 = vmatpush.msrb.mxu3 %v1571_v16  ;;  %v1231_v16 = vld [vmem:[#allocation12 + $0x640] sm:$0xff] }
 0x1b7   :  { %1632 = vmatpush.msrb.mxu3 %v1553_v18  ;;  %v1086_v18 = vld [vmem:[#allocation12 + $0x1b8] sm:$0xff] }
 0x1b9   :  { %1633 = vmatpush.msrb.mxu3 %v1535_v21  ;;  %v1501_v21 = vld [vmem:[#allocation12 + $0xeb0] sm:$0xff] }
 0x1bb   :  { %870 = vmatmul.f32.gmra.mxu0 %v604_v30  ;;  %899 = vmatmul.f32.gmra.mxu1 %v604_v30 }
 0x1bc   :  { %928 = vmatmul.f32.gmra.mxu2 %v604_v30  ;;  %957 = vmatmul.f32.gmra.mxu3 %v604_v30  ;;  %v1157_v30 = vld [vmem:[#allocation12 + $0x3f0] sm:$0xff] }
 0x1bd   :  { %1634 = vmatpush.msrb.mxu3 %v1517_v23  ;;  %1615 = vmatpush.msrb.mxu2 %v1157_v30  ;;  %v1356_v23 = vld [vmem:[#allocation12 + $0xa28] sm:$0xff] }
 0x1be   :  { %v1032_v30 = vld [vmem:[#allocation12 + $0x8] sm:$0xff] }
 0x1bf   :  { %1635 = vmatpush.msrb.mxu3 %v1499_v25  ;;  %1616 = vmatpush.msrb.mxu2 %v1139_v32  ;;  %v1483_v25 = vld [vmem:[#allocation12 + $0xe20] sm:$0xff]  ;;  %v1304_v32 = vld [vmem:[#allocation12 + $0x888] sm:$0xff] }
 0x1c1   :  { %1636 = vmatpush.msrb.mxu3 %v1481_v27  ;;  %v1338_v27 = vld [vmem:[#allocation12 + $0x998] sm:$0xff] }
 0x1c3   :  { %873 = vmatmul.f32.gmra.mxu0 %v605_v37  ;;  %902 = vmatmul.f32.gmra.mxu1 %v605_v37 }
 0x1c4   :  { %931 = vmatmul.f32.gmra.mxu2 %v605_v37  ;;  %960 = vmatmul.f32.gmra.mxu3 %v605_v37  ;;  %v1121_v37 = vld [vmem:[#allocation12 + $0x2d0] sm:$0xff] }
 0x1c5   :  { %1637 = vmatpush.msrb.mxu3 %v1463_v29  ;;  %1617 = vmatpush.msrb.mxu2 %v1121_v37  ;;  %v1465_v29 = vld [vmem:[#allocation12 + $0xd90] sm:$0xff]  ;;  %v1574_v37 = vld [vmem:[#allocation12 + $0x10f8] sm:$0xff] }
 0x1c7   :  { %1638 = vmatpush.msrb.mxu3 %v1445_v31  ;;  %1618 = vmatpush.msrb.mxu2 %v1103_v41  ;;  %v1320_v31 = vld [vmem:[#allocation12 + $0x908] sm:$0xff]  ;;  %v1538_v41 = vld [vmem:[#allocation12 + $0xfd8] sm:$0xff] }
 0x1c9   :  { %1639 = vmatpush.msrb.mxu3 %v1427_v33  ;;  %v1592_v33 = vld [vmem:[#allocation12 + $0x1188] sm:$0xff] }
 0x1cb   :  { %876 = vmatmul.f32.gmra.mxu0 %v606_v43  ;;  %905 = vmatmul.f32.gmra.mxu1 %v606_v43 }
 0x1cc   :  { %934 = vmatmul.f32.gmra.mxu2 %v606_v43  ;;  %963 = vmatmul.f32.gmra.mxu3 %v606_v43  ;;  %v1266_v43 = vld [vmem:[#allocation12 + $0x758] sm:$0xff] }
 0x1cd   :  { %1640 = vmatpush.msrb.mxu3 %v1409_v38  ;;  %v1268_v38 = vld [vmem:[#allocation12 + $0x768] sm:$0xff] }
 0x1cf   :  { %1641 = vmatpush.msrb.mxu3 %v1391_v42  ;;  %v1232_v42 = vld [vmem:[#allocation12 + $0x648] sm:$0xff] }
 0x210   :  { %v3026_v44 = vpop.f32.mrf.mxu0  ;;  %v3028_v45 = vpop.f32.mrf.mxu1 }
 0x217   :  { %v3030_v46 = vpop.f32.mrf.mxu2  ;;  %v3032_v47 = vpop.f32.mrf.mxu3 }
 0x218   :  { %v3034_v48 = vpop.f32.mrf.mxu0  ;;  %v3036_v49 = vpop.f32.mrf.mxu1 }
 0x21f   :  { %v3038_v50 = vpop.f32.mrf.mxu2  ;;  %v3040_v51 = vpop.f32.mrf.mxu3 }
 0x220   :  { %v3042_v52 = vpop.f32.mrf.mxu0  ;;  %v3044_v53 = vpop.f32.mrf.mxu1 }
 0x227   :  { %v816_v54 = vpop.f32.mrf.mxu2  ;;  %v845_v55 = vpop.f32.mrf.mxu3 }
 0x228   :  { %v3046_v56 = vpop.f32.mrf.mxu0  ;;  %v3048_v57 = vpop.f32.mrf.mxu1 }
 0x22f   :  { %v819_v58 = vpop.f32.mrf.mxu2  ;;  %v848_v59 = vpop.f32.mrf.mxu3 }
 0x230   :  { %v868_v62 = vpop.f32.mrf.mxu0  ;;  %v897_v63 = vpop.f32.mrf.mxu1 }
 0x237   :  { %v926_v60 = vpop.f32.mrf.mxu2  ;;  %v955_v61 = vpop.f32.mrf.mxu3 }
 0x238   :  { %v871_v2 = vpop.f32.mrf.mxu0  ;;  %v900_v3 = vpop.f32.mrf.mxu1 }
 0x23f   :  { %v929_v0 = vpop.f32.mrf.mxu2  ;;  %v958_v1 = vpop.f32.mrf.mxu3 }
 0x240   :  { %v874_v6 = vpop.f32.mrf.mxu0  ;;  %v903_v7 = vpop.f32.mrf.mxu1 }
 0x247   :  { %v932_v4 = vpop.f32.mrf.mxu2  ;;  %v961_v5 = vpop.f32.mrf.mxu3 }
 0x248   :  { %v877_v10 = vpop.f32.mrf.mxu0  ;;  %v906_v11 = vpop.f32.mrf.mxu1 }
 0x24f   :  { %v935_v8 = vpop.f32.mrf.mxu2  ;;  %v964_v9 = vpop.f32.mrf.mxu3 }
 0x250   :  { %981 = vmatpush.msrb.mxu0 %v935_v8  ;;  %1004 = vmatpush.msrb.mxu1 %v964_v9  ;;  %v1267_v8 = vld [vmem:[#allocation12 + $0x760] sm:$0xff] }
 0x251   :  { %v1555_v9 = vld [vmem:[#allocation12 + $0x1060] sm:$0xff] }
 0x252   :  { %982 = vmatpush.msrb.mxu0 %v932_v4  ;;  %1005 = vmatpush.msrb.mxu1 %v961_v5  ;;  %v1285_v4 = vld [vmem:[#allocation12 + $0x7f0] sm:$0xff] }
 0x253   :  { %v1573_v5 = vld [vmem:[#allocation12 + $0x10f0] sm:$0xff] }
 0x254   :  { %983 = vmatpush.msrb.mxu0 %v929_v0  ;;  %1006 = vmatpush.msrb.mxu1 %v958_v1  ;;  %v1303_v0 = vld [vmem:[#allocation12 + $0x880] sm:$0xff] }
 0x255   :  { %v1591_v1 = vld [vmem:[#allocation12 + $0x1180] sm:$0xff] }
 0x256   :  { %984 = vmatpush.msrb.mxu0 %v926_v60  ;;  %1007 = vmatpush.msrb.mxu1 %v955_v61  ;;  %v1031_v60 = vld [vmem:[#allocation12] sm:$0xff] }
 0x257   :  { %v1319_v61 = vld [vmem:[#allocation12 + $0x900] sm:$0xff] }
 0x258   :  { %985 = vmatpush.msrb.mxu0 %v877_v10  ;;  %1008 = vmatpush.msrb.mxu1 %v906_v11  ;;  %v1122_v10 = vld [vmem:[#allocation12 + $0x2d8] sm:$0xff] }
 0x259   :  { %v1410_v11 = vld [vmem:[#allocation12 + $0xbd8] sm:$0xff] }
 0x25a   :  { %986 = vmatpush.msrb.mxu0 %v874_v6  ;;  %1009 = vmatpush.msrb.mxu1 %v903_v7  ;;  %v1140_v6 = vld [vmem:[#allocation12 + $0x368] sm:$0xff] }
 0x25b   :  { %v1428_v7 = vld [vmem:[#allocation12 + $0xc68] sm:$0xff] }
 0x25c   :  { %987 = vmatpush.msrb.mxu0 %v871_v2  ;;  %1010 = vmatpush.msrb.mxu1 %v900_v3  ;;  %v1158_v2 = vld [vmem:[#allocation12 + $0x3f8] sm:$0xff] }
 0x25d   :  { %v1446_v3 = vld [vmem:[#allocation12 + $0xcf8] sm:$0xff] }
 0x25e   :  { %988 = vmatpush.msrb.mxu0 %v868_v62  ;;  %1011 = vmatpush.msrb.mxu1 %v897_v63  ;;  %v1176_v62 = vld [vmem:[#allocation12 + $0x488] sm:$0xff] }
 0x25f   :  { %v1464_v63 = vld [vmem:[#allocation12 + $0xd88] sm:$0xff] }
 0x260   :  { %989 = vmatpush.msrb.mxu0 %v819_v58  ;;  %1012 = vmatpush.msrb.mxu1 %v848_v59  ;;  %v1194_v58 = vld [vmem:[#allocation12 + $0x518] sm:$0xff] }
 0x261   :  { %v1482_v59 = vld [vmem:[#allocation12 + $0xe18] sm:$0xff] }
 0x262   :  { %990 = vmatpush.msrb.mxu0 %v816_v54  ;;  %1013 = vmatpush.msrb.mxu1 %v845_v55  ;;  %v1212_v54 = vld [vmem:[#allocation12 + $0x5a8] sm:$0xff] }
 0x263   :  { %v1500_v55 = vld [vmem:[#allocation12 + $0xea8] sm:$0xff] }
 0x264   :  { %991 = vmatpush.msrb.mxu0 %v3038_v50  ;;  %1014 = vmatpush.msrb.mxu1 %v3040_v51  ;;  %v1230_v50 = vld [vmem:[#allocation12 + $0x638] sm:$0xff] }
 0x265   :  { %v1518_v51 = vld [vmem:[#allocation12 + $0xf38] sm:$0xff] }
 0x266   :  { %992 = vmatpush.msrb.mxu0 %v3030_v46  ;;  %1015 = vmatpush.msrb.mxu1 %v3032_v47  ;;  %v1554_v46 = vld [vmem:[#allocation12 + $0x1058] sm:$0xff]  ;;  %v1085_v47 = vld [vmem:[#allocation12 + $0x1b0] sm:$0xff] }
 0x267   :  { %1619 = vmatpush.msrb.mxu2 %v1085_v47  ;;  %v1520_v47 = vld [vmem:[#allocation12 + $0xf48] sm:$0xff] }
 0x268   :  { %993 = vmatpush.msrb.mxu0 %v3046_v56  ;;  %1016 = vmatpush.msrb.mxu1 %v3048_v57  ;;  %v1049_v56 = vld [vmem:[#allocation12 + $0x90] sm:$0xff] }
 0x269   :  { %v1337_v57 = vld [vmem:[#allocation12 + $0x990] sm:$0xff] }
 0x26a   :  { %994 = vmatpush.msrb.mxu0 %v3042_v52  ;;  %1017 = vmatpush.msrb.mxu1 %v3044_v53  ;;  %v1067_v52 = vld [vmem:[#allocation12 + $0x120] sm:$0xff] }
 0x26b   :  { %v1355_v53 = vld [vmem:[#allocation12 + $0xa20] sm:$0xff]  ;;  %1620 = vmatpush.msrb.mxu2 %v1067_v52 }
 0x26c   :  { %995 = vmatpush.msrb.mxu0 %v3034_v48  ;;  %1018 = vmatpush.msrb.mxu1 %v3036_v49  ;;  %v1248_v48 = vld [vmem:[#allocation12 + $0x6c8] sm:$0xff]  ;;  %v1087_v52 = vld [vmem:[#allocation12 + $0x1c0] sm:$0xff] }
 0x26d   :  { %v968_v49 = vld [vmem:[#allocation9 + $0x8] sm:$0xff]  ;;  %1621 = vmatpush.msrb.mxu2 %v1049_v56  ;;  %v1178_v56 = vld [vmem:[#allocation12 + $0x498] sm:$0xff] }
 0x26e   :  { %996 = vmatpush.msrb.mxu0 %v3026_v44  ;;  %1019 = vmatpush.msrb.mxu1 %v3028_v45  ;;  %v1373_v44 = vld [vmem:[#allocation12 + $0xab0] sm:$0xff]  ;;  %v1536_v45 = vld [vmem:[#allocation12 + $0xfc8] sm:$0xff] }
 0x26f   :  { %997 = vmatmul.f32.vlgmr.msrb.gmra.mxu0 %v967_v34  ;;  %1020 = vmatmul.f32.vlgmr.msrb.gmra.mxu1 %v967_v34  ;;  %v1159_v34 = vld [vmem:[#allocation12 + $0x400] sm:$0xff] }
 0x270   :  { %1653 = vmatpush.msra.mxu0 %v1302_v35  ;;  %1676 = vmatpush.msra.mxu1 %v1590_v36  ;;  %v1447_v35 = vld [vmem:[#allocation12 + $0xd00] sm:$0xff]  ;;  %v1286_v36 = vld [vmem:[#allocation12 + $0x7f8] sm:$0xff] }
 0x271   :  { %1642 = vmatpush.msrb.mxu3 %v1373_v44  ;;  %1622 = vmatpush.msrb.mxu2 %v1031_v60  ;;  %v1123_v44 = vld [vmem:[#allocation12 + $0x2e0] sm:$0xff]  ;;  %v1142_v60 = vld [vmem:[#allocation12 + $0x378] sm:$0xff] }
 0x272   :  { %1654 = vmatpush.msra.mxu0 %v1284_v39  ;;  %1677 = vmatpush.msra.mxu1 %v1572_v40  ;;  %v1556_v39 = vld [vmem:[#allocation12 + $0x1068] sm:$0xff]  ;;  %v1250_v40 = vld [vmem:[#allocation12 + $0x6d8] sm:$0xff] }
 0x273   :  { %1643 = vmatpush.msrb.mxu3 %v1355_v53  ;;  %1699 = vmatpush.msra.mxu2 %v1303_v0  ;;  %v1375_v53 = vld [vmem:[#allocation12 + $0xac0] sm:$0xff]  ;;  %v1106_v0 = vld [vmem:[#allocation12 + $0x258] sm:$0xff] }
 0x274   :  { %1655 = vmatpush.msra.mxu0 %v1266_v43  ;;  %1678 = vmatpush.msra.mxu1 %v1554_v46  ;;  %v1141_v43 = vld [vmem:[#allocation12 + $0x370] sm:$0xff] }
 0x275   :  { %1644 = vmatpush.msrb.mxu3 %v1337_v57  ;;  %1700 = vmatpush.msra.mxu2 %v1285_v4  ;;  %v1429_v46 = vld [vmem:[#allocation12 + $0xc70] sm:$0xff]  ;;  %v1466_v57 = vld [vmem:[#allocation12 + $0xd98] sm:$0xff] }
 0x276   :  { %1656 = vmatpush.msra.mxu0 %v1248_v48  ;;  %1679 = vmatpush.msra.mxu1 %v1536_v45  ;;  %v1411_v48 = vld [vmem:[#allocation12 + $0xbe0] sm:$0xff]  ;;  %v1105_v45 = vld [vmem:[#allocation12 + $0x250] sm:$0xff] }
 0x277   :  { %1000 = vmatmul.f32.gmra.mxu0 %v968_v49  ;;  %1023 = vmatmul.f32.gmra.mxu1 %v968_v49  ;;  %v1214_v49 = vld [vmem:[#allocation12 + $0x5b8] sm:$0xff]  ;;  %v1069_v4 = vld [vmem:[#allocation12 + $0x130] sm:$0xff] }
 0x278   :  { %1657 = vmatpush.msra.mxu0 %v1230_v50  ;;  %1680 = vmatpush.msra.mxu1 %v1518_v51  ;;  %v1502_v50 = vld [vmem:[#allocation12 + $0xeb8] sm:$0xff]  ;;  %v1393_v51 = vld [vmem:[#allocation12 + $0xb50] sm:$0xff] }
 0x279   :  { %1645 = vmatpush.msrb.mxu3 %v1319_v61  ;;  %1701 = vmatpush.msra.mxu2 %v1267_v8  ;;  %v1430_v61 = vld [vmem:[#allocation12 + $0xc78] sm:$0xff]  ;;  %v1051_v8 = vld [vmem:[#allocation12 + $0xa0] sm:$0xff] }
 0x27a   :  { %1658 = vmatpush.msra.mxu0 %v1212_v54  ;;  %1681 = vmatpush.msra.mxu1 %v1500_v55  ;;  %v1196_v54 = vld [vmem:[#allocation12 + $0x528] sm:$0xff] }
 0x27b   :  { %1722 = vmatpush.msra.mxu3 %v1591_v1  ;;  %1702 = vmatpush.msra.mxu2 %v1249_v12  ;;  %v1484_v55 = vld [vmem:[#allocation12 + $0xe28] sm:$0xff]  ;;  %v1394_v1 = vld [vmem:[#allocation12 + $0xb58] sm:$0xff]  ;;  %v1033_v12 = vld [vmem:[#allocation12 + $0x10] sm:$0xff] }
 0x27c   :  { %1659 = vmatpush.msra.mxu0 %v1194_v58  ;;  %1682 = vmatpush.msra.mxu1 %v1482_v59  ;;  %v1160_v58 = vld [vmem:[#allocation12 + $0x408] sm:$0xff] }
 0x27d   :  { %1723 = vmatpush.msra.mxu3 %v1573_v5  ;;  %1703 = vmatpush.msra.mxu2 %v1231_v16  ;;  %v1448_v59 = vld [vmem:[#allocation12 + $0xd08] sm:$0xff]  ;;  %v1357_v5 = vld [vmem:[#allocation12 + $0xa30] sm:$0xff]  ;;  %v974_v16 = vpop.permute.xlu2 %973 }
 0x27e   :  { %1660 = vmatpush.msra.mxu0 %v1176_v62  ;;  %1683 = vmatpush.msra.mxu1 %v1464_v63  ;;  %v1124_v62 = vld [vmem:[#allocation12 + $0x2e8] sm:$0xff] }
 0x27f   :  { %1724 = vmatpush.msra.mxu3 %v1555_v9  ;;  %1704 = vmatpush.msra.mxu2 %v1213_v20  ;;  %v1412_v63 = vld [vmem:[#allocation12 + $0xbe8] sm:$0xff]  ;;  %v1339_v9 = vld [vmem:[#allocation12 + $0x9a0] sm:$0xff] }
 0x280   :  { %1661 = vmatpush.msra.mxu0 %v1158_v2  ;;  %1684 = vmatpush.msra.mxu1 %v1446_v3  ;;  %v1088_v2 = vld [vmem:[#allocation12 + $0x1c8] sm:$0xff] }
 0x281   :  { %1725 = vmatpush.msra.mxu3 %v1537_v13  ;;  %1705 = vmatpush.msra.mxu2 %v1195_v24  ;;  %v1376_v3 = vld [vmem:[#allocation12 + $0xac8] sm:$0xff]  ;;  %v1321_v13 = vld [vmem:[#allocation12 + $0x910] sm:$0xff] }
 0x282   :  { %1662 = vmatpush.msra.mxu0 %v1140_v6  ;;  %1685 = vmatpush.msra.mxu1 %v1428_v7  ;;  %v1070_v6 = vld [vmem:[#allocation12 + $0x138] sm:$0xff]  ;;  %v1593_v24 = vld [vmem:[#allocation12 + $0x1190] sm:$0xff] }
 0x283   :  { %1726 = vmatpush.msra.mxu3 %v1519_v17  ;;  %1706 = vmatpush.msra.mxu2 %v1177_v28  ;;  %v1358_v7 = vld [vmem:[#allocation12 + $0xa38] sm:$0xff]  ;;  %v1575_v28 = vld [vmem:[#allocation12 + $0x1100] sm:$0xff] }
 0x284   :  { %1663 = vmatpush.msra.mxu0 %v1122_v10  ;;  %1686 = vmatpush.msra.mxu1 %v1410_v11  ;;  %v1052_v10 = vld [vmem:[#allocation12 + $0xa8] sm:$0xff] }
 0x285   :  { %1727 = vmatpush.msra.mxu3 %v1501_v21  ;;  %1707 = vmatpush.msra.mxu2 %v1159_v34  ;;  %v1340_v11 = vld [vmem:[#allocation12 + $0x9a8] sm:$0xff]  ;;  %v1269_v34 = vld [vmem:[#allocation12 + $0x770] sm:$0xff] }
 0x286   :  { %1664 = vmatpush.msra.mxu0 %v1104_v14  ;;  %1687 = vmatpush.msra.mxu1 %v1392_v15  ;;  %v1034_v14 = vld [vmem:[#allocation12 + $0x18] sm:$0xff] }
 0x287   :  { %1728 = vmatpush.msra.mxu3 %v1483_v25  ;;  %1708 = vmatpush.msra.mxu2 %v1141_v43  ;;  %v1322_v15 = vld [vmem:[#allocation12 + $0x918] sm:$0xff] }
 0x288   :  { %1665 = vmatpush.msra.mxu0 %v1086_v18  ;;  %1688 = vmatpush.msra.mxu1 %v1374_v19  ;;  %v1306_v25 = vld [vmem:[#allocation12 + $0x898] sm:$0xff] }
 0x289   :  { %1729 = vmatpush.msra.mxu3 %v1465_v29  ;;  %1709 = vmatpush.msra.mxu2 %v1123_v44  ;;  %v979_v29 = vpop.permute.xlu2 %978  ;;  %v1233_v44 = vld [vmem:[#allocation12 + $0x650] sm:$0xff] }
 0x28a   :  { %1666 = vmatpush.msra.mxu0 %v1068_v22  ;;  %1689 = vmatpush.msra.mxu1 %v1356_v23  ;;  %v1305_v23 = vld [vmem:[#allocation12 + $0x890] sm:$0xff] }
 0x28b   :  { %1730 = vmatpush.msra.mxu3 %v1447_v35  ;;  %1710 = vmatpush.msra.mxu2 %v1105_v45  ;;  %v1557_v35 = vld [vmem:[#allocation12 + $0x1070] sm:$0xff]  ;;  %v1234_v45 = vld [vmem:[#allocation12 + $0x658] sm:$0xff] }
 0x28c   :  { %1667 = vmatpush.msra.mxu0 %v1050_v26  ;;  %1690 = vmatpush.msra.mxu1 %v1338_v27  ;;  %v1594_v26 = vld [vmem:[#allocation12 + $0x1198] sm:$0xff]  ;;  %v1287_v27 = vld [vmem:[#allocation12 + $0x800] sm:$0xff] }
 0x28d   :  { %1731 = vmatpush.msra.mxu3 %v1429_v46  ;;  %1711 = vmatpush.msra.mxu2 %v1087_v52  ;;  %v1252_v46 = vld [vmem:[#allocation12 + $0x6e8] sm:$0xff] }
 0x28e   :  { %1668 = vmatpush.msra.mxu0 %v1032_v30  ;;  %1691 = vmatpush.msra.mxu1 %v1320_v31  ;;  %v1288_v30 = vld [vmem:[#allocation12 + $0x808] sm:$0xff] }
 0x28f   :  { %1732 = vmatpush.msra.mxu3 %v1411_v48  ;;  %1712 = vmatpush.msra.mxu2 %v1069_v4  ;;  %v1576_v31 = vld [vmem:[#allocation12 + $0x1108] sm:$0xff]  ;;  %v1521_v48 = vld [vmem:[#allocation12 + $0xf50] sm:$0xff] }
 0x290   :  { %1745 = vmatpush.msrb.mxu0 %v1304_v32  ;;  %1768 = vmatpush.msrb.mxu1 %v1592_v33  ;;  %v1216_v52 = vld [vmem:[#allocation12 + $0x5c8] sm:$0xff] }
 0x291   :  { %1733 = vmatpush.msra.mxu3 %v1393_v51  ;;  %1713 = vmatpush.msra.mxu2 %v1051_v8  ;;  %v1503_v51 = vld [vmem:[#allocation12 + $0xec0] sm:$0xff]  ;;  %v1144_v4 = vld [vmem:[#allocation12 + $0x388] sm:$0xff]  ;;  %v1126_v8 = vld [vmem:[#allocation12 + $0x2f8] sm:$0xff] }
 0x292   :  { %1746 = vmatpush.msrb.mxu0 %v1286_v36  ;;  %1769 = vmatpush.msrb.mxu1 %v1574_v37 }
 0x293   :  { %1734 = vmatpush.msra.mxu3 %v1375_v53  ;;  %1714 = vmatpush.msra.mxu2 %v1033_v12  ;;  %v1504_v53 = vld [vmem:[#allocation12 + $0xec8] sm:$0xff] }
 0x294   :  { %1747 = vmatpush.msrb.mxu0 %v1268_v38  ;;  %1770 = vmatpush.msrb.mxu1 %v1556_v39  ;;  %v1270_v38 = vld [vmem:[#allocation12 + $0x778] sm:$0xff]  ;;  %v1108_v12 = vld [vmem:[#allocation12 + $0x268] sm:$0xff] }
 0x295   :  { %1735 = vmatpush.msra.mxu3 %v1357_v5  ;;  %v1558_v39 = vld [vmem:[#allocation12 + $0x1078] sm:$0xff]  ;;  %v1432_v5 = vld [vmem:[#allocation12 + $0xc88] sm:$0xff] }
 0x296   :  { %1748 = vmatpush.msrb.mxu0 %v1250_v40  ;;  %1771 = vmatpush.msrb.mxu1 %v1538_v41  ;;  %v1251_v40 = vld [vmem:[#allocation12 + $0x6e0] sm:$0xff] }
 0x297   :  { %1736 = vmatpush.msra.mxu3 %v1339_v9  ;;  %v1539_v41 = vld [vmem:[#allocation12 + $0xfe0] sm:$0xff]  ;;  %v1414_v9 = vld [vmem:[#allocation12 + $0xbf8] sm:$0xff] }
 0x298   :  { %1749 = vmatpush.msrb.mxu0 %v1232_v42  ;;  %1772 = vmatpush.msrb.mxu1 %v1520_v47  ;;  %v1540_v47 = vld [vmem:[#allocation12 + $0xfe8] sm:$0xff] }
 0x299   :  { %1737 = vmatpush.msra.mxu3 %v1321_v13  ;;  %v1396_v13 = vld [vmem:[#allocation12 + $0xb68] sm:$0xff] }
 0x29a   :  { %1750 = vmatpush.msrb.mxu0 %v1214_v49  ;;  %1773 = vmatpush.msrb.mxu1 %v1502_v50  ;;  %v1522_v49 = vld [vmem:[#allocation12 + $0xf58] sm:$0xff]  ;;  %v1215_v50 = vld [vmem:[#allocation12 + $0x5c0] sm:$0xff] }
 0x29c   :  { %1751 = vmatpush.msrb.mxu0 %v1196_v54  ;;  %1774 = vmatpush.msrb.mxu1 %v1484_v55  ;;  %v1197_v54 = vld [vmem:[#allocation12 + $0x530] sm:$0xff] }
 0x29d   :  { %v1485_v55 = vld [vmem:[#allocation12 + $0xe30] sm:$0xff] }
 0x29e   :  { %1752 = vmatpush.msrb.mxu0 %v1178_v56  ;;  %1775 = vmatpush.msrb.mxu1 %v1466_v57  ;;  %v1198_v56 = vld [vmem:[#allocation12 + $0x538] sm:$0xff] }
 0x29f   :  { %v1486_v57 = vld [vmem:[#allocation12 + $0xe38] sm:$0xff] }
 0x2a0   :  { %1753 = vmatpush.msrb.mxu0 %v1160_v58  ;;  %1776 = vmatpush.msrb.mxu1 %v1448_v59  ;;  %v1179_v58 = vld [vmem:[#allocation12 + $0x4a0] sm:$0xff] }
 0x2a1   :  { %v1467_v59 = vld [vmem:[#allocation12 + $0xda0] sm:$0xff] }
 0x2a2   :  { %1754 = vmatpush.msrb.mxu0 %v1142_v60  ;;  %1777 = vmatpush.msrb.mxu1 %v1430_v61  ;;  %v1180_v60 = vld [vmem:[#allocation12 + $0x4a8] sm:$0xff] }
 0x2a3   :  { %v1468_v61 = vld [vmem:[#allocation12 + $0xda8] sm:$0xff] }
 0x2a4   :  { %1755 = vmatpush.msrb.mxu0 %v1124_v62  ;;  %1778 = vmatpush.msrb.mxu1 %v1412_v63  ;;  %v1161_v62 = vld [vmem:[#allocation12 + $0x410] sm:$0xff] }
 0x2a5   :  { %v1449_v63 = vld [vmem:[#allocation12 + $0xd10] sm:$0xff] }
 0x2a6   :  { %1756 = vmatpush.msrb.mxu0 %v1106_v0  ;;  %1779 = vmatpush.msrb.mxu1 %v1394_v1  ;;  %v1162_v0 = vld [vmem:[#allocation12 + $0x418] sm:$0xff] }
 0x2a7   :  { %v1450_v1 = vld [vmem:[#allocation12 + $0xd18] sm:$0xff] }
 0x2a8   :  { %1757 = vmatpush.msrb.mxu0 %v1088_v2  ;;  %1780 = vmatpush.msrb.mxu1 %v1376_v3  ;;  %v1143_v2 = vld [vmem:[#allocation12 + $0x380] sm:$0xff] }
 0x2a9   :  { %v1431_v3 = vld [vmem:[#allocation12 + $0xc80] sm:$0xff] }
 0x2aa   :  { %1758 = vmatpush.msrb.mxu0 %v1070_v6  ;;  %1781 = vmatpush.msrb.mxu1 %v1358_v7  ;;  %v1125_v6 = vld [vmem:[#allocation12 + $0x2f0] sm:$0xff] }
 0x2ab   :  { %v1413_v7 = vld [vmem:[#allocation12 + $0xbf0] sm:$0xff] }
 0x2ac   :  { %1759 = vmatpush.msrb.mxu0 %v1052_v10  ;;  %1782 = vmatpush.msrb.mxu1 %v1340_v11  ;;  %v1107_v10 = vld [vmem:[#allocation12 + $0x260] sm:$0xff] }
 0x2ad   :  { %v1395_v11 = vld [vmem:[#allocation12 + $0xb60] sm:$0xff] }
 0x2ae   :  { %1760 = vmatpush.msrb.mxu0 %v1034_v14  ;;  %1783 = vmatpush.msrb.mxu1 %v1322_v15  ;;  %v1089_v14 = vld [vmem:[#allocation12 + $0x1d0] sm:$0xff] }
 0x2af   :  { %v1377_v15 = vld [vmem:[#allocation12 + $0xad0] sm:$0xff] }
 0x2ec   :  { %v998_v17 = vpop.f32.mrf.mxu0  ;;  %v1021_v18 = vpop.f32.mrf.mxu1 }
 0x2ed   :  { %v999_v19 = vadd.f32 %v998_v17, %v974_v16  ;;  %v1022_v20 = vadd.f32 %v1021_v18, %v974_v16  ;;  %v1090_v16 = vld [vmem:[#allocation12 + $0x1d8] sm:$0xff]  ;;  %v1071_v18 = vld [vmem:[#allocation12 + $0x140] sm:$0xff] }
 0x2ee   :  { %v1378_v17 = vld [vmem:[#allocation12 + $0xad8] sm:$0xff] }
 0x2ef   :  { %v3062_v21 = vmax.f32 %v999_v19, 0.0  ;;  %v3064_v22 = vmax.f32 %v1022_v20, 0.0  ;;  %v1359_v19 = vld [vmem:[#allocation12 + $0xa40] sm:$0xff]  ;;  %v1072_v20 = vld [vmem:[#allocation12 + $0x148] sm:$0xff] }
 0x2f1   :  { %1623 = vmatmul.f32.vlgmr.msrb.gmra.mxu2 %v3062_v21  ;;  %1646 = vmatmul.f32.vlgmr.msrb.gmra.mxu3 %v3064_v22 }
 0x2f2   :  { %1669 = vmatmul.f32.vlgmr.msra.gmra.mxu0 %v3062_v21  ;;  %1692 = vmatmul.f32.vlgmr.msra.gmra.mxu1 %v3064_v22 }
 0x2f3   :  { %1791 = vmatpush.msrb.mxu2 %v1305_v23  ;;  %1814 = vmatpush.msrb.mxu3 %v1593_v24  ;;  %v1360_v23 = vld [vmem:[#allocation12 + $0xa48] sm:$0xff]  ;;  %v1053_v24 = vld [vmem:[#allocation12 + $0xb0] sm:$0xff] }
 0x2f4   :  { %1837 = vmatpush.msra.mxu0 %v1306_v25  ;;  %1860 = vmatpush.msra.mxu1 %v1594_v26  ;;  %v1001_v32 = vpop.f32.mrf.mxu0  ;;  %v1024_v33 = vpop.f32.mrf.mxu1  ;;  %v1341_v25 = vld [vmem:[#allocation12 + $0x9b0] sm:$0xff]  ;;  %v1054_v26 = vld [vmem:[#allocation12 + $0xb8] sm:$0xff] }
 0x2f5   :  { %1792 = vmatpush.msrb.mxu2 %v1287_v27  ;;  %1815 = vmatpush.msrb.mxu3 %v1575_v28  ;;  %v1002_v36 = vadd.f32 %v1001_v32, %v979_v29  ;;  %v1025_v37 = vadd.f32 %v1024_v33, %v979_v29  ;;  %v1342_v27 = vld [vmem:[#allocation12 + $0x9b8] sm:$0xff]  ;;  %v1035_v28 = vld [vmem:[#allocation12 + $0x20] sm:$0xff] }
 0x2f6   :  { %1838 = vmatpush.msra.mxu0 %v1288_v30  ;;  %1861 = vmatpush.msra.mxu1 %v1576_v31  ;;  %v1323_v29 = vld [vmem:[#allocation12 + $0x920] sm:$0xff]  ;;  %v1036_v30 = vld [vmem:[#allocation12 + $0x28] sm:$0xff] }
 0x2f7   :  { %v3070_v42 = vmax.f32 %v1002_v36, 0.0  ;;  %v3072_v43 = vmax.f32 %v1025_v37, 0.0  ;;  %1793 = vmatpush.msrb.mxu2 %v1269_v34  ;;  %1816 = vmatpush.msrb.mxu3 %v1557_v35  ;;  %v1324_v31 = vld [vmem:[#allocation12 + $0x928] sm:$0xff]  ;;  %v1307_v32 = vld [vmem:[#allocation12 + $0x8a0] sm:$0xff]  ;;  %v1289_v36 = vld [vmem:[#allocation12 + $0x810] sm:$0xff] }
 0x2f8   :  { %1839 = vmatpush.msra.mxu0 %v1270_v38  ;;  %1862 = vmatpush.msra.mxu1 %v1558_v39  ;;  %v1595_v33 = vld [vmem:[#allocation12 + $0x11a0] sm:$0xff]  ;;  %v1308_v34 = vld [vmem:[#allocation12 + $0x8a8] sm:$0xff]  ;;  %v1577_v37 = vld [vmem:[#allocation12 + $0x1110] sm:$0xff] }
 0x2f9   :  { %1794 = vmatpush.msrb.mxu2 %v1251_v40  ;;  %1817 = vmatpush.msrb.mxu3 %v1539_v41  ;;  %v1596_v35 = vld [vmem:[#allocation12 + $0x11a8] sm:$0xff]  ;;  %v1290_v38 = vld [vmem:[#allocation12 + $0x818] sm:$0xff]  ;;  %v1271_v40 = vld [vmem:[#allocation12 + $0x780] sm:$0xff] }
 0x2fa   :  { %1840 = vmatpush.msra.mxu0 %v1252_v46  ;;  %1863 = vmatpush.msra.mxu1 %v1540_v47  ;;  %v1578_v39 = vld [vmem:[#allocation12 + $0x1118] sm:$0xff]  ;;  %v1559_v41 = vld [vmem:[#allocation12 + $0x1080] sm:$0xff]  ;;  %v1272_v46 = vld [vmem:[#allocation12 + $0x788] sm:$0xff] }
 0x2fb   :  { %1626 = vmatmul.f32.gmra.mxu2 %v3070_v42  ;;  %1649 = vmatmul.f32.gmra.mxu3 %v3072_v43  ;;  %v1560_v47 = vld [vmem:[#allocation12 + $0x1088] sm:$0xff] }
 0x2fc   :  { %1672 = vmatmul.f32.gmra.mxu0 %v3070_v42  ;;  %1695 = vmatmul.f32.gmra.mxu1 %v3072_v43 }
 0x2fd   :  { %1795 = vmatpush.msrb.mxu2 %v1233_v44  ;;  %1818 = vmatpush.msrb.mxu3 %v1521_v48  ;;  %v1253_v44 = vld [vmem:[#allocation12 + $0x6f0] sm:$0xff] }
 0x2fe   :  { %1841 = vmatpush.msra.mxu0 %v1234_v45  ;;  %1864 = vmatpush.msra.mxu1 %v1522_v49  ;;  %v1541_v48 = vld [vmem:[#allocation12 + $0xff0] sm:$0xff]  ;;  %v1254_v45 = vld [vmem:[#allocation12 + $0x6f8] sm:$0xff] }
 0x2ff   :  { %1796 = vmatpush.msrb.mxu2 %v1215_v50  ;;  %1819 = vmatpush.msrb.mxu3 %v1503_v51  ;;  %v1542_v49 = vld [vmem:[#allocation12 + $0xff8] sm:$0xff]  ;;  %v1235_v50 = vld [vmem:[#allocation12 + $0x660] sm:$0xff] }
 0x300   :  { %1842 = vmatpush.msra.mxu0 %v1216_v52  ;;  %1865 = vmatpush.msra.mxu1 %v1504_v53  ;;  %v1523_v51 = vld [vmem:[#allocation12 + $0xf60] sm:$0xff]  ;;  %v1236_v52 = vld [vmem:[#allocation12 + $0x668] sm:$0xff] }
 0x301   :  { %1797 = vmatpush.msrb.mxu2 %v1197_v54  ;;  %1820 = vmatpush.msrb.mxu3 %v1485_v55  ;;  %v1524_v53 = vld [vmem:[#allocation12 + $0xf68] sm:$0xff]  ;;  %v1217_v54 = vld [vmem:[#allocation12 + $0x5d0] sm:$0xff] }
 0x302   :  { %1843 = vmatpush.msra.mxu0 %v1198_v56  ;;  %1866 = vmatpush.msra.mxu1 %v1486_v57  ;;  %v1505_v55 = vld [vmem:[#allocation12 + $0xed0] sm:$0xff]  ;;  %v1218_v56 = vld [vmem:[#allocation12 + $0x5d8] sm:$0xff] }
 0x303   :  { %1798 = vmatpush.msrb.mxu2 %v1179_v58  ;;  %1821 = vmatpush.msrb.mxu3 %v1467_v59  ;;  %v1506_v57 = vld [vmem:[#allocation12 + $0xed8] sm:$0xff]  ;;  %v1199_v58 = vld [vmem:[#allocation12 + $0x540] sm:$0xff] }
 0x304   :  { %1844 = vmatpush.msra.mxu0 %v1180_v60  ;;  %1867 = vmatpush.msra.mxu1 %v1468_v61  ;;  %v1487_v59 = vld [vmem:[#allocation12 + $0xe40] sm:$0xff]  ;;  %v1200_v60 = vld [vmem:[#allocation12 + $0x548] sm:$0xff] }
 0x305   :  { %1715 = vmatmul.f32.vlgmr.msra.gmra.mxu2 %v3062_v21  ;;  %1738 = vmatmul.f32.vlgmr.msra.gmra.mxu3 %v3064_v22  ;;  %v1488_v61 = vld [vmem:[#allocation12 + $0xe48] sm:$0xff] }
 0x306   :  { %1761 = vmatmul.f32.vlgmr.msrb.gmra.mxu0 %v3062_v21  ;;  %1784 = vmatmul.f32.vlgmr.msrb.gmra.mxu1 %v3064_v22 }
 0x307   :  { %1799 = vmatpush.msrb.mxu2 %v1161_v62  ;;  %1822 = vmatpush.msrb.mxu3 %v1449_v63  ;;  %v1181_v62 = vld [vmem:[#allocation12 + $0x4b0] sm:$0xff] }
 0x308   :  { %1845 = vmatpush.msra.mxu0 %v1162_v0  ;;  %1868 = vmatpush.msra.mxu1 %v1450_v1  ;;  %v1469_v63 = vld [vmem:[#allocation12 + $0xdb0] sm:$0xff]  ;;  %v1182_v0 = vld [vmem:[#allocation12 + $0x4b8] sm:$0xff] }
 0x309   :  { %1800 = vmatpush.msrb.mxu2 %v1143_v2  ;;  %1823 = vmatpush.msrb.mxu3 %v1431_v3  ;;  %v1470_v1 = vld [vmem:[#allocation12 + $0xdb8] sm:$0xff]  ;;  %v1163_v2 = vld [vmem:[#allocation12 + $0x420] sm:$0xff] }
 0x30a   :  { %1846 = vmatpush.msra.mxu0 %v1144_v4  ;;  %1869 = vmatpush.msra.mxu1 %v1432_v5  ;;  %v1451_v3 = vld [vmem:[#allocation12 + $0xd20] sm:$0xff]  ;;  %v1164_v4 = vld [vmem:[#allocation12 + $0x428] sm:$0xff] }
 0x30b   :  { %1801 = vmatpush.msrb.mxu2 %v1125_v6  ;;  %1824 = vmatpush.msrb.mxu3 %v1413_v7  ;;  %v1452_v5 = vld [vmem:[#allocation12 + $0xd28] sm:$0xff]  ;;  %v1145_v6 = vld [vmem:[#allocation12 + $0x390] sm:$0xff] }
 0x30c   :  { %1847 = vmatpush.msra.mxu0 %v1126_v8  ;;  %1870 = vmatpush.msra.mxu1 %v1414_v9  ;;  %v1433_v7 = vld [vmem:[#allocation12 + $0xc90] sm:$0xff]  ;;  %v1146_v8 = vld [vmem:[#allocation12 + $0x398] sm:$0xff] }
 0x30d   :  { %1802 = vmatpush.msrb.mxu2 %v1107_v10  ;;  %1825 = vmatpush.msrb.mxu3 %v1395_v11  ;;  %v1434_v9 = vld [vmem:[#allocation12 + $0xc98] sm:$0xff]  ;;  %v1127_v10 = vld [vmem:[#allocation12 + $0x300] sm:$0xff] }
 0x30e   :  { %1848 = vmatpush.msra.mxu0 %v1108_v12  ;;  %1871 = vmatpush.msra.mxu1 %v1396_v13  ;;  %v1415_v11 = vld [vmem:[#allocation12 + $0xc00] sm:$0xff]  ;;  %v1128_v12 = vld [vmem:[#allocation12 + $0x308] sm:$0xff] }
 0x30f   :  { %1718 = vmatmul.f32.gmra.mxu2 %v3070_v42  ;;  %1741 = vmatmul.f32.gmra.mxu3 %v3072_v43  ;;  %v1416_v13 = vld [vmem:[#allocation12 + $0xc08] sm:$0xff] }
 0x310   :  { %1764 = vmatmul.f32.gmra.mxu0 %v3070_v42  ;;  %1787 = vmatmul.f32.gmra.mxu1 %v3072_v43 }
 0x311   :  { %1803 = vmatpush.msrb.mxu2 %v1089_v14  ;;  %1826 = vmatpush.msrb.mxu3 %v1377_v15  ;;  %v1109_v14 = vld [vmem:[#allocation12 + $0x270] sm:$0xff] }
 0x312   :  { %1849 = vmatpush.msra.mxu0 %v1090_v16  ;;  %1872 = vmatpush.msra.mxu1 %v1378_v17  ;;  %v1397_v15 = vld [vmem:[#allocation12 + $0xb70] sm:$0xff]  ;;  %v1110_v16 = vld [vmem:[#allocation12 + $0x278] sm:$0xff] }
 0x313   :  { %1804 = vmatpush.msrb.mxu2 %v1071_v18  ;;  %1827 = vmatpush.msrb.mxu3 %v1359_v19  ;;  %v1398_v17 = vld [vmem:[#allocation12 + $0xb78] sm:$0xff]  ;;  %v1091_v18 = vld [vmem:[#allocation12 + $0x1e0] sm:$0xff] }
 0x314   :  { %1850 = vmatpush.msra.mxu0 %v1072_v20  ;;  %1873 = vmatpush.msra.mxu1 %v1360_v23  ;;  %v1379_v19 = vld [vmem:[#allocation12 + $0xae0] sm:$0xff]  ;;  %v1092_v20 = vld [vmem:[#allocation12 + $0x1e8] sm:$0xff] }
 0x315   :  { %1805 = vmatpush.msrb.mxu2 %v1053_v24  ;;  %1828 = vmatpush.msrb.mxu3 %v1341_v25  ;;  %v1380_v23 = vld [vmem:[#allocation12 + $0xae8] sm:$0xff]  ;;  %v1073_v24 = vld [vmem:[#allocation12 + $0x150] sm:$0xff] }
 0x316   :  { %1851 = vmatpush.msra.mxu0 %v1054_v26  ;;  %1874 = vmatpush.msra.mxu1 %v1342_v27  ;;  %v1361_v25 = vld [vmem:[#allocation12 + $0xa50] sm:$0xff]  ;;  %v1074_v26 = vld [vmem:[#allocation12 + $0x158] sm:$0xff] }
 0x317   :  { %1806 = vmatpush.msrb.mxu2 %v1035_v28  ;;  %1829 = vmatpush.msrb.mxu3 %v1323_v29  ;;  %v1362_v27 = vld [vmem:[#allocation12 + $0xa58] sm:$0xff]  ;;  %v1055_v28 = vld [vmem:[#allocation12 + $0xc0] sm:$0xff] }
 0x318   :  { %1852 = vmatpush.msra.mxu0 %v1036_v30  ;;  %1875 = vmatpush.msra.mxu1 %v1324_v31  ;;  %v1343_v29 = vld [vmem:[#allocation12 + $0x9c0] sm:$0xff]  ;;  %v1056_v30 = vld [vmem:[#allocation12 + $0xc8] sm:$0xff] }
 0x319   :  { %1883 = vmatpush.msra.mxu2 %v1307_v32  ;;  %1906 = vmatpush.msra.mxu3 %v1595_v33  ;;  %v1344_v31 = vld [vmem:[#allocation12 + $0x9c8] sm:$0xff]  ;;  %v1037_v32 = vld [vmem:[#allocation12 + $0x30] sm:$0xff] }
 0x31a   :  { %1929 = vmatpush.msrb.mxu0 %v1308_v34  ;;  %1952 = vmatpush.msrb.mxu1 %v1596_v35  ;;  %v1325_v33 = vld [vmem:[#allocation12 + $0x930] sm:$0xff]  ;;  %v1038_v34 = vld [vmem:[#allocation12 + $0x38] sm:$0xff] }
 0x31b   :  { %1807 = vmatmul.f32.vlgmr.msrb.gmra.mxu2 %v3062_v21  ;;  %1830 = vmatmul.f32.vlgmr.msrb.gmra.mxu3 %v3064_v22  ;;  %v1326_v35 = vld [vmem:[#allocation12 + $0x938] sm:$0xff] }
 0x31c   :  { %1853 = vmatmul.f32.vlgmr.msra.gmra.mxu0 %v3062_v21  ;;  %1876 = vmatmul.f32.vlgmr.msra.gmra.mxu1 %v3064_v22 }
 0x31d   :  { %1884 = vmatpush.msra.mxu2 %v1289_v36  ;;  %1907 = vmatpush.msra.mxu3 %v1577_v37  ;;  %v1309_v36 = vld [vmem:[#allocation12 + $0x8b0] sm:$0xff] }
 0x31e   :  { %1930 = vmatpush.msrb.mxu0 %v1290_v38  ;;  %1953 = vmatpush.msrb.mxu1 %v1578_v39  ;;  %v1597_v37 = vld [vmem:[#allocation12 + $0x11b0] sm:$0xff]  ;;  %v1310_v38 = vld [vmem:[#allocation12 + $0x8b8] sm:$0xff] }
 0x31f   :  { %1885 = vmatpush.msra.mxu2 %v1271_v40  ;;  %1908 = vmatpush.msra.mxu3 %v1559_v41  ;;  %v1598_v39 = vld [vmem:[#allocation12 + $0x11b8] sm:$0xff]  ;;  %v1291_v40 = vld [vmem:[#allocation12 + $0x820] sm:$0xff] }
 0x320   :  { %1931 = vmatpush.msrb.mxu0 %v1272_v46  ;;  %1954 = vmatpush.msrb.mxu1 %v1560_v47  ;;  %v1579_v41 = vld [vmem:[#allocation12 + $0x1120] sm:$0xff]  ;;  %v1292_v46 = vld [vmem:[#allocation12 + $0x828] sm:$0xff] }
 0x321   :  { %1886 = vmatpush.msra.mxu2 %v1253_v44  ;;  %1909 = vmatpush.msra.mxu3 %v1541_v48  ;;  %v1580_v47 = vld [vmem:[#allocation12 + $0x1128] sm:$0xff]  ;;  %v1273_v44 = vld [vmem:[#allocation12 + $0x790] sm:$0xff] }
 0x322   :  { %1932 = vmatpush.msrb.mxu0 %v1254_v45  ;;  %1955 = vmatpush.msrb.mxu1 %v1542_v49  ;;  %v1561_v48 = vld [vmem:[#allocation12 + $0x1090] sm:$0xff]  ;;  %v1274_v45 = vld [vmem:[#allocation12 + $0x798] sm:$0xff] }
 0x323   :  { %1887 = vmatpush.msra.mxu2 %v1235_v50  ;;  %1910 = vmatpush.msra.mxu3 %v1523_v51  ;;  %v1562_v49 = vld [vmem:[#allocation12 + $0x1098] sm:$0xff]  ;;  %v1255_v50 = vld [vmem:[#allocation12 + $0x700] sm:$0xff] }
 0x324   :  { %1933 = vmatpush.msrb.mxu0 %v1236_v52  ;;  %1956 = vmatpush.msrb.mxu1 %v1524_v53  ;;  %v1543_v51 = vld [vmem:[#allocation12 + $0x1000] sm:$0xff]  ;;  %v1256_v52 = vld [vmem:[#allocation12 + $0x708] sm:$0xff] }
 0x325   :  { %1810 = vmatmul.f32.gmra.mxu2 %v3070_v42  ;;  %1833 = vmatmul.f32.gmra.mxu3 %v3072_v43  ;;  %v1544_v53 = vld [vmem:[#allocation12 + $0x1008] sm:$0xff] }
 0x326   :  { %1856 = vmatmul.f32.gmra.mxu0 %v3070_v42  ;;  %1879 = vmatmul.f32.gmra.mxu1 %v3072_v43 }
 0x327   :  { %1888 = vmatpush.msra.mxu2 %v1217_v54  ;;  %1911 = vmatpush.msra.mxu3 %v1505_v55  ;;  %v1237_v54 = vld [vmem:[#allocation12 + $0x670] sm:$0xff] }
 0x328   :  { %1934 = vmatpush.msrb.mxu0 %v1218_v56  ;;  %1957 = vmatpush.msrb.mxu1 %v1506_v57  ;;  %v1525_v55 = vld [vmem:[#allocation12 + $0xf70] sm:$0xff]  ;;  %v1238_v56 = vld [vmem:[#allocation12 + $0x678] sm:$0xff] }
 0x329   :  { %1889 = vmatpush.msra.mxu2 %v1199_v58  ;;  %1912 = vmatpush.msra.mxu3 %v1487_v59  ;;  %v1526_v57 = vld [vmem:[#allocation12 + $0xf78] sm:$0xff]  ;;  %v1219_v58 = vld [vmem:[#allocation12 + $0x5e0] sm:$0xff] }
 0x32a   :  { %1935 = vmatpush.msrb.mxu0 %v1200_v60  ;;  %1958 = vmatpush.msrb.mxu1 %v1488_v61  ;;  %v1507_v59 = vld [vmem:[#allocation12 + $0xee0] sm:$0xff]  ;;  %v1220_v60 = vld [vmem:[#allocation12 + $0x5e8] sm:$0xff] }
 0x32b   :  { %1890 = vmatpush.msra.mxu2 %v1181_v62  ;;  %1913 = vmatpush.msra.mxu3 %v1469_v63  ;;  %v1508_v61 = vld [vmem:[#allocation12 + $0xee8] sm:$0xff]  ;;  %v1201_v62 = vld [vmem:[#allocation12 + $0x550] sm:$0xff] }
 0x32c   :  { %1936 = vmatpush.msrb.mxu0 %v1182_v0  ;;  %1959 = vmatpush.msrb.mxu1 %v1470_v1  ;;  %v1489_v63 = vld [vmem:[#allocation12 + $0xe50] sm:$0xff]  ;;  %v1202_v0 = vld [vmem:[#allocation12 + $0x558] sm:$0xff] }
 0x32d   :  { %1891 = vmatpush.msra.mxu2 %v1163_v2  ;;  %1914 = vmatpush.msra.mxu3 %v1451_v3  ;;  %v1490_v1 = vld [vmem:[#allocation12 + $0xe58] sm:$0xff]  ;;  %v1183_v2 = vld [vmem:[#allocation12 + $0x4c0] sm:$0xff] }
 0x32e   :  { %1937 = vmatpush.msrb.mxu0 %v1164_v4  ;;  %1960 = vmatpush.msrb.mxu1 %v1452_v5  ;;  %v1471_v3 = vld [vmem:[#allocation12 + $0xdc0] sm:$0xff]  ;;  %v1184_v4 = vld [vmem:[#allocation12 + $0x4c8] sm:$0xff] }
 0x32f   :  { %1892 = vmatpush.msra.mxu2 %v1145_v6  ;;  %1915 = vmatpush.msra.mxu3 %v1433_v7  ;;  %v1472_v5 = vld [vmem:[#allocation12 + $0xdc8] sm:$0xff]  ;;  %v1165_v6 = vld [vmem:[#allocation12 + $0x430] sm:$0xff] }
 0x330   :  { %1938 = vmatpush.msrb.mxu0 %v1146_v8  ;;  %1961 = vmatpush.msrb.mxu1 %v1434_v9  ;;  %v1453_v7 = vld [vmem:[#allocation12 + $0xd30] sm:$0xff]  ;;  %v1166_v8 = vld [vmem:[#allocation12 + $0x438] sm:$0xff] }
 0x331   :  { %1893 = vmatpush.msra.mxu2 %v1127_v10  ;;  %1916 = vmatpush.msra.mxu3 %v1415_v11  ;;  %v1454_v9 = vld [vmem:[#allocation12 + $0xd38] sm:$0xff]  ;;  %v1147_v10 = vld [vmem:[#allocation12 + $0x3a0] sm:$0xff] }
 0x332   :  { %1939 = vmatpush.msrb.mxu0 %v1128_v12  ;;  %1962 = vmatpush.msrb.mxu1 %v1416_v13  ;;  %v1435_v11 = vld [vmem:[#allocation12 + $0xca0] sm:$0xff]  ;;  %v1148_v12 = vld [vmem:[#allocation12 + $0x3a8] sm:$0xff] }
 0x333   :  { %1894 = vmatpush.msra.mxu2 %v1109_v14  ;;  %1917 = vmatpush.msra.mxu3 %v1397_v15  ;;  %v1436_v13 = vld [vmem:[#allocation12 + $0xca8] sm:$0xff]  ;;  %v1129_v14 = vld [vmem:[#allocation12 + $0x310] sm:$0xff] }
 0x334   :  { %1940 = vmatpush.msrb.mxu0 %v1110_v16  ;;  %1963 = vmatpush.msrb.mxu1 %v1398_v17  ;;  %v1417_v15 = vld [vmem:[#allocation12 + $0xc10] sm:$0xff]  ;;  %v1130_v16 = vld [vmem:[#allocation12 + $0x318] sm:$0xff] }
 0x335   :  { %1895 = vmatpush.msra.mxu2 %v1091_v18  ;;  %1918 = vmatpush.msra.mxu3 %v1379_v19  ;;  %v1418_v17 = vld [vmem:[#allocation12 + $0xc18] sm:$0xff]  ;;  %v1111_v18 = vld [vmem:[#allocation12 + $0x280] sm:$0xff] }
 0x336   :  { %1941 = vmatpush.msrb.mxu0 %v1092_v20  ;;  %1964 = vmatpush.msrb.mxu1 %v1380_v23  ;;  %v1399_v19 = vld [vmem:[#allocation12 + $0xb80] sm:$0xff]  ;;  %v1112_v20 = vld [vmem:[#allocation12 + $0x288] sm:$0xff] }
 0x337   :  { %1896 = vmatpush.msra.mxu2 %v1073_v24  ;;  %1919 = vmatpush.msra.mxu3 %v1361_v25  ;;  %v1400_v23 = vld [vmem:[#allocation12 + $0xb88] sm:$0xff]  ;;  %v1093_v24 = vld [vmem:[#allocation12 + $0x1f0] sm:$0xff] }
 0x338   :  { %1942 = vmatpush.msrb.mxu0 %v1074_v26  ;;  %1965 = vmatpush.msrb.mxu1 %v1362_v27  ;;  %v1381_v25 = vld [vmem:[#allocation12 + $0xaf0] sm:$0xff]  ;;  %v1094_v26 = vld [vmem:[#allocation12 + $0x1f8] sm:$0xff] }
 0x339   :  { %1897 = vmatpush.msra.mxu2 %v1055_v28  ;;  %1920 = vmatpush.msra.mxu3 %v1343_v29  ;;  %v1382_v27 = vld [vmem:[#allocation12 + $0xaf8] sm:$0xff]  ;;  %v1075_v28 = vld [vmem:[#allocation12 + $0x160] sm:$0xff] }
 0x33a   :  { %1943 = vmatpush.msrb.mxu0 %v1056_v30  ;;  %1966 = vmatpush.msrb.mxu1 %v1344_v31  ;;  %v1363_v29 = vld [vmem:[#allocation12 + $0xa60] sm:$0xff]  ;;  %v1076_v30 = vld [vmem:[#allocation12 + $0x168] sm:$0xff] }
 0x33b   :  { %1898 = vmatpush.msra.mxu2 %v1037_v32  ;;  %1921 = vmatpush.msra.mxu3 %v1325_v33  ;;  %v1364_v31 = vld [vmem:[#allocation12 + $0xa68] sm:$0xff]  ;;  %v1057_v32 = vld [vmem:[#allocation12 + $0xd0] sm:$0xff] }
 0x33c   :  { %1944 = vmatpush.msrb.mxu0 %v1038_v34  ;;  %1967 = vmatpush.msrb.mxu1 %v1326_v35  ;;  %v1345_v33 = vld [vmem:[#allocation12 + $0x9d0] sm:$0xff]  ;;  %v1058_v34 = vld [vmem:[#allocation12 + $0xd8] sm:$0xff] }
 0x33d   :  { %1899 = vmatmul.f32.vlgmr.msra.gmra.mxu2 %v3062_v21  ;;  %1922 = vmatmul.f32.vlgmr.msra.gmra.mxu3 %v3064_v22  ;;  %v1346_v35 = vld [vmem:[#allocation12 + $0x9d8] sm:$0xff] }
 0x33e   :  { %1945 = vmatmul.f32.vlgmr.msrb.gmra.mxu0 %v3062_v21  ;;  %1968 = vmatmul.f32.vlgmr.msrb.gmra.mxu1 %v3064_v22 }
 0x33f   :  { %1975 = vmatpush.msrb.mxu2 %v1309_v36  ;;  %1998 = vmatpush.msrb.mxu3 %v1597_v37  ;;  %v1039_v36 = vld [vmem:[#allocation12 + $0x40] sm:$0xff] }
 0x340   :  { %2021 = vmatpush.msra.mxu0 %v1310_v38  ;;  %2044 = vmatpush.msra.mxu1 %v1598_v39  ;;  %v1327_v37 = vld [vmem:[#allocation12 + $0x940] sm:$0xff]  ;;  %v1040_v38 = vld [vmem:[#allocation12 + $0x48] sm:$0xff] }
 0x341   :  { %1976 = vmatpush.msrb.mxu2 %v1291_v40  ;;  %1999 = vmatpush.msrb.mxu3 %v1579_v41  ;;  %v1328_v39 = vld [vmem:[#allocation12 + $0x948] sm:$0xff]  ;;  %v1311_v40 = vld [vmem:[#allocation12 + $0x8c0] sm:$0xff] }
 0x342   :  { %2022 = vmatpush.msra.mxu0 %v1292_v46  ;;  %2045 = vmatpush.msra.mxu1 %v1580_v47  ;;  %v1599_v41 = vld [vmem:[#allocation12 + $0x11c0] sm:$0xff]  ;;  %v1312_v46 = vld [vmem:[#allocation12 + $0x8c8] sm:$0xff] }
 0x343   :  { %1977 = vmatpush.msrb.mxu2 %v1273_v44  ;;  %2000 = vmatpush.msrb.mxu3 %v1561_v48  ;;  %v1600_v47 = vld [vmem:[#allocation12 + $0x11c8] sm:$0xff]  ;;  %v1293_v44 = vld [vmem:[#allocation12 + $0x830] sm:$0xff] }
 0x344   :  { %2023 = vmatpush.msra.mxu0 %v1274_v45  ;;  %2046 = vmatpush.msra.mxu1 %v1562_v49  ;;  %v1581_v48 = vld [vmem:[#allocation12 + $0x1130] sm:$0xff]  ;;  %v1294_v45 = vld [vmem:[#allocation12 + $0x838] sm:$0xff] }
 0x345   :  { %1978 = vmatpush.msrb.mxu2 %v1255_v50  ;;  %2001 = vmatpush.msrb.mxu3 %v1543_v51  ;;  %v1582_v49 = vld [vmem:[#allocation12 + $0x1138] sm:$0xff]  ;;  %v1275_v50 = vld [vmem:[#allocation12 + $0x7a0] sm:$0xff] }
 0x346   :  { %2024 = vmatpush.msra.mxu0 %v1256_v52  ;;  %2047 = vmatpush.msra.mxu1 %v1544_v53  ;;  %v1563_v51 = vld [vmem:[#allocation12 + $0x10a0] sm:$0xff]  ;;  %v1276_v52 = vld [vmem:[#allocation12 + $0x7a8] sm:$0xff] }
 0x347   :  { %1902 = vmatmul.f32.gmra.mxu2 %v3070_v42  ;;  %1925 = vmatmul.f32.gmra.mxu3 %v3072_v43  ;;  %v1564_v53 = vld [vmem:[#allocation12 + $0x10a8] sm:$0xff] }
 0x348   :  { %1948 = vmatmul.f32.gmra.mxu0 %v3070_v42  ;;  %1971 = vmatmul.f32.gmra.mxu1 %v3072_v43 }
 0x349   :  { %1979 = vmatpush.msrb.mxu2 %v1237_v54  ;;  %2002 = vmatpush.msrb.mxu3 %v1525_v55  ;;  %v1257_v54 = vld [vmem:[#allocation12 + $0x710] sm:$0xff] }
 0x34a   :  { %2025 = vmatpush.msra.mxu0 %v1238_v56  ;;  %2048 = vmatpush.msra.mxu1 %v1526_v57  ;;  %v1545_v55 = vld [vmem:[#allocation12 + $0x1010] sm:$0xff]  ;;  %v1258_v56 = vld [vmem:[#allocation12 + $0x718] sm:$0xff] }
 0x34b   :  { %1980 = vmatpush.msrb.mxu2 %v1219_v58  ;;  %2003 = vmatpush.msrb.mxu3 %v1507_v59  ;;  %v1546_v57 = vld [vmem:[#allocation12 + $0x1018] sm:$0xff]  ;;  %v1239_v58 = vld [vmem:[#allocation12 + $0x680] sm:$0xff] }
 0x34c   :  { %2026 = vmatpush.msra.mxu0 %v1220_v60  ;;  %2049 = vmatpush.msra.mxu1 %v1508_v61  ;;  %v1527_v59 = vld [vmem:[#allocation12 + $0xf80] sm:$0xff]  ;;  %v1240_v60 = vld [vmem:[#allocation12 + $0x688] sm:$0xff] }
 0x34d   :  { %1981 = vmatpush.msrb.mxu2 %v1201_v62  ;;  %2004 = vmatpush.msrb.mxu3 %v1489_v63  ;;  %v1528_v61 = vld [vmem:[#allocation12 + $0xf88] sm:$0xff]  ;;  %v1221_v62 = vld [vmem:[#allocation12 + $0x5f0] sm:$0xff] }
 0x34e   :  { %2027 = vmatpush.msra.mxu0 %v1202_v0  ;;  %2050 = vmatpush.msra.mxu1 %v1490_v1  ;;  %v1509_v63 = vld [vmem:[#allocation12 + $0xef0] sm:$0xff]  ;;  %v1222_v0 = vld [vmem:[#allocation12 + $0x5f8] sm:$0xff] }
 0x34f   :  { %1982 = vmatpush.msrb.mxu2 %v1183_v2  ;;  %2005 = vmatpush.msrb.mxu3 %v1471_v3  ;;  %v1510_v1 = vld [vmem:[#allocation12 + $0xef8] sm:$0xff]  ;;  %v1203_v2 = vld [vmem:[#allocation12 + $0x560] sm:$0xff] }
 0x350   :  { %2028 = vmatpush.msra.mxu0 %v1184_v4  ;;  %2051 = vmatpush.msra.mxu1 %v1472_v5  ;;  %v1491_v3 = vld [vmem:[#allocation12 + $0xe60] sm:$0xff]  ;;  %v1204_v4 = vld [vmem:[#allocation12 + $0x568] sm:$0xff] }
 0x351   :  { %1983 = vmatpush.msrb.mxu2 %v1165_v6  ;;  %2006 = vmatpush.msrb.mxu3 %v1453_v7  ;;  %v1492_v5 = vld [vmem:[#allocation12 + $0xe68] sm:$0xff] }
 0x352   :  { %2029 = vmatpush.msra.mxu0 %v1166_v8  ;;  %2052 = vmatpush.msra.mxu1 %v1454_v9  ;;  %v1185_v8 = vld [vmem:[#allocation12 + $0x4d0] sm:$0xff] }
 0x353   :  { %1984 = vmatpush.msrb.mxu2 %v1147_v10  ;;  %2007 = vmatpush.msrb.mxu3 %v1435_v11  ;;  %v1473_v9 = vld [vmem:[#allocation12 + $0xdd0] sm:$0xff]  ;;  %v1186_v11 = vld [vmem:[#allocation12 + $0x4d8] sm:$0xff] }
 0x354   :  { %2030 = vmatpush.msra.mxu0 %v1148_v12  ;;  %2053 = vmatpush.msra.mxu1 %v1436_v13  ;;  %v1474_v12 = vld [vmem:[#allocation12 + $0xdd8] sm:$0xff]  ;;  %v1167_v13 = vld [vmem:[#allocation12 + $0x440] sm:$0xff] }
 0x355   :  { %1985 = vmatpush.msrb.mxu2 %v1129_v14  ;;  %2008 = vmatpush.msrb.mxu3 %v1417_v15  ;;  %v1455_v14 = vld [vmem:[#allocation12 + $0xd40] sm:$0xff]  ;;  %v1168_v15 = vld [vmem:[#allocation12 + $0x448] sm:$0xff] }
 0x356   :  { %2031 = vmatpush.msra.mxu0 %v1130_v16  ;;  %2054 = vmatpush.msra.mxu1 %v1418_v17  ;;  %v1456_v16 = vld [vmem:[#allocation12 + $0xd48] sm:$0xff]  ;;  %v1149_v17 = vld [vmem:[#allocation12 + $0x3b0] sm:$0xff] }
 0x357   :  { %1986 = vmatpush.msrb.mxu2 %v1111_v18  ;;  %2009 = vmatpush.msrb.mxu3 %v1399_v19  ;;  %v1437_v18 = vld [vmem:[#allocation12 + $0xcb0] sm:$0xff] }
 0x358   :  { %2032 = vmatpush.msra.mxu0 %v1112_v20  ;;  %2055 = vmatpush.msra.mxu1 %v1400_v23  ;;  %v1150_v23 = vld [vmem:[#allocation12 + $0x3b8] sm:$0xff] }
 0x359   :  { %1987 = vmatpush.msrb.mxu2 %v1093_v24  ;;  %2010 = vmatpush.msrb.mxu3 %v1381_v25  ;;  %v1438_v24 = vld [vmem:[#allocation12 + $0xcb8] sm:$0xff] }
 0x35a   :  { %2033 = vmatpush.msra.mxu0 %v1094_v26  ;;  %2056 = vmatpush.msra.mxu1 %v1382_v27  ;;  %v1131_v26 = vld [vmem:[#allocation12 + $0x320] sm:$0xff] }
 0x35b   :  { %1988 = vmatpush.msrb.mxu2 %v1075_v28  ;;  %2011 = vmatpush.msrb.mxu3 %v1363_v29  ;;  %v1419_v27 = vld [vmem:[#allocation12 + $0xc20] sm:$0xff]  ;;  %v1132_v28 = vld [vmem:[#allocation12 + $0x328] sm:$0xff] }
 0x35c   :  { %2034 = vmatpush.msra.mxu0 %v1076_v30  ;;  %2057 = vmatpush.msra.mxu1 %v1364_v31  ;;  %v1420_v29 = vld [vmem:[#allocation12 + $0xc28] sm:$0xff]  ;;  %v1113_v30 = vld [vmem:[#allocation12 + $0x290] sm:$0xff] }
 0x35d   :  { %1989 = vmatpush.msrb.mxu2 %v1057_v32  ;;  %2012 = vmatpush.msrb.mxu3 %v1345_v33  ;;  %v1401_v31 = vld [vmem:[#allocation12 + $0xb90] sm:$0xff]  ;;  %v1114_v32 = vld [vmem:[#allocation12 + $0x298] sm:$0xff] }
 0x35e   :  { %2035 = vmatpush.msra.mxu0 %v1058_v34  ;;  %2058 = vmatpush.msra.mxu1 %v1346_v35  ;;  %v1402_v33 = vld [vmem:[#allocation12 + $0xb98] sm:$0xff] }
 0x35f   :  { %1990 = vmatpush.msrb.mxu2 %v1039_v36  ;;  %2013 = vmatpush.msrb.mxu3 %v1327_v37  ;;  %v1095_v36 = vld [vmem:[#allocation12 + $0x200] sm:$0xff] }
 0x360   :  { %2036 = vmatpush.msra.mxu0 %v1040_v38  ;;  %2059 = vmatpush.msra.mxu1 %v1328_v39  ;;  %v1383_v37 = vld [vmem:[#allocation12 + $0xb00] sm:$0xff]  ;;  %v1096_v39 = vld [vmem:[#allocation12 + $0x208] sm:$0xff] }
 0x361   :  { %1991 = vmatmul.f32.vlgmr.msrb.gmra.mxu2 %v3062_v21  ;;  %2014 = vmatmul.f32.vlgmr.msrb.gmra.mxu3 %v3064_v22 }
 0x362   :  { %2037 = vmatmul.f32.vlgmr.msra.gmra.mxu0 %v3062_v21  ;;  %2060 = vmatmul.f32.vlgmr.msra.gmra.mxu1 %v3064_v22 }
 0x363   :  { %2067 = vmatpush.msra.mxu2 %v1311_v40  ;;  %2090 = vmatpush.msra.mxu3 %v1599_v41  ;;  %v1384_v40 = vld [vmem:[#allocation12 + $0xb08] sm:$0xff]  ;;  %v1077_v41 = vld [vmem:[#allocation12 + $0x170] sm:$0xff] }
 0x364   :  { %2113 = vmatpush.msrb.mxu0 %v1312_v46  ;;  %2136 = vmatpush.msrb.mxu1 %v1600_v47  ;;  %v1365_v46 = vld [vmem:[#allocation12 + $0xa70] sm:$0xff]  ;;  %v1078_v47 = vld [vmem:[#allocation12 + $0x178] sm:$0xff] }
 0x365   :  { %2068 = vmatpush.msra.mxu2 %v1293_v44  ;;  %2091 = vmatpush.msra.mxu3 %v1581_v48  ;;  %v1366_v44 = vld [vmem:[#allocation12 + $0xa78] sm:$0xff]  ;;  %v1059_v48 = vld [vmem:[#allocation12 + $0xe0] sm:$0xff] }
 0x366   :  { %2114 = vmatpush.msrb.mxu0 %v1294_v45  ;;  %2137 = vmatpush.msrb.mxu1 %v1582_v49  ;;  %v1347_v45 = vld [vmem:[#allocation12 + $0x9e0] sm:$0xff] }
 0x367   :  { %2069 = vmatpush.msra.mxu2 %v1275_v50  ;;  %2092 = vmatpush.msra.mxu3 %v1563_v51  ;;  %v1060_v51 = vld [vmem:[#allocation12 + $0xe8] sm:$0xff] }
 0x368   :  { %2115 = vmatpush.msrb.mxu0 %v1276_v52  ;;  %2138 = vmatpush.msrb.mxu1 %v1564_v53  ;;  %v1348_v52 = vld [vmem:[#allocation12 + $0x9e8] sm:$0xff] }
 0x369   :  { %2070 = vmatpush.msra.mxu2 %v1257_v54  ;;  %2093 = vmatpush.msra.mxu3 %v1545_v55  ;;  %v1041_v54 = vld [vmem:[#allocation12 + $0x50] sm:$0xff] }
 0x36a   :  { %2116 = vmatpush.msrb.mxu0 %v1258_v56  ;;  %2139 = vmatpush.msrb.mxu1 %v1546_v57  ;;  %v1329_v55 = vld [vmem:[#allocation12 + $0x950] sm:$0xff]  ;;  %v1042_v56 = vld [vmem:[#allocation12 + $0x58] sm:$0xff] }
 0x36b   :  { %1994 = vmatmul.f32.gmra.mxu2 %v3070_v42  ;;  %2017 = vmatmul.f32.gmra.mxu3 %v3072_v43  ;;  %v1330_v57 = vld [vmem:[#allocation12 + $0x958] sm:$0xff] }
 0x36c   :  { %2040 = vmatmul.f32.gmra.mxu0 %v3070_v42  ;;  %2063 = vmatmul.f32.gmra.mxu1 %v3072_v43 }
 0x36d   :  { %2071 = vmatpush.msra.mxu2 %v1239_v58  ;;  %2094 = vmatpush.msra.mxu3 %v1527_v59 }
 0x36e   :  { %2117 = vmatpush.msrb.mxu0 %v1240_v60  ;;  %2140 = vmatpush.msrb.mxu1 %v1528_v61  ;;  %v1313_v60 = vld [vmem:[#allocation12 + $0x8d0] sm:$0xff] }
 0x36f   :  { %2072 = vmatpush.msra.mxu2 %v1221_v62  ;;  %2095 = vmatpush.msra.mxu3 %v1509_v63  ;;  %v1670_v6 = vpop.f32.mrf.mxu0  ;;  %v1693_v7 = vpop.f32.mrf.mxu1  ;;  %v1601_v61 = vld [vmem:[#allocation12 + $0x11d0] sm:$0xff]  ;;  %v1314_v63 = vld [vmem:[#allocation12 + $0x8d8] sm:$0xff] }
 0x370   :  { %2118 = vmatpush.msrb.mxu0 %v1222_v0  ;;  %2141 = vmatpush.msrb.mxu1 %v1510_v1  ;;  %v3110_v10 = vadd.f32 %v1693_v7, %v1670_v6  ;;  %v1602_v0 = vld [vmem:[#allocation12 + $0x11d8] sm:$0xff]  ;;  %v1295_v1 = vld [vmem:[#allocation12 + $0x840] sm:$0xff]  ;;  %v1565_v6 = vld [vmem:[#allocation12 + $0x10b0] sm:$0xff] }
 0x371   :  { %2073 = vmatpush.msra.mxu2 %v1203_v2  ;;  %2096 = vmatpush.msra.mxu3 %v1491_v3  ;;  %v1583_v2 = vld [vmem:[#allocation12 + $0x1140] sm:$0xff]  ;;  %v1296_v3 = vld [vmem:[#allocation12 + $0x848] sm:$0xff] }
 0x372   :  { %2119 = vmatpush.msrb.mxu0 %v1204_v4  ;;  %2142 = vmatpush.msrb.mxu1 %v1492_v5  ;;  %v1584_v4 = vld [vmem:[#allocation12 + $0x1148] sm:$0xff]  ;;  %v1277_v5 = vld [vmem:[#allocation12 + $0x7b0] sm:$0xff] }
 0x373   :  { %2074 = vmatpush.msra.mxu2 %v1185_v8  ;;  %2097 = vmatpush.msra.mxu3 %v1473_v9  ;;  %v1278_v9 = vld [vmem:[#allocation12 + $0x7b8] sm:$0xff] }
 0x374   :  { %2120 = vmatpush.msrb.mxu0 %v1186_v11  ;;  %2143 = vmatpush.msrb.mxu1 %v1474_v12  ;;  %v1624_v19 = vpop.f32.mrf.mxu2  ;;  %v1647_v20 = vpop.f32.mrf.mxu3  ;;  %v1566_v11 = vld [vmem:[#allocation12 + $0x10b8] sm:$0xff] }
 0x375   :  { %2075 = vmatpush.msra.mxu2 %v1167_v13  ;;  %2098 = vmatpush.msra.mxu3 %v1455_v14  ;;  %v3112_v25 = vadd.f32 %v1647_v20, %v1624_v19  ;;  %v1259_v13 = vld [vmem:[#allocation12 + $0x720] sm:$0xff]  ;;  %v1241_v19 = vld [vmem:[#allocation12 + $0x690] sm:$0xff] }
 0x376   :  { %2121 = vmatpush.msrb.mxu0 %v1168_v15  ;;  %2144 = vmatpush.msrb.mxu1 %v1456_v16  ;;  %v1547_v14 = vld [vmem:[#allocation12 + $0x1020] sm:$0xff]  ;;  %v1260_v15 = vld [vmem:[#allocation12 + $0x728] sm:$0xff]  ;;  %v1529_v20 = vld [vmem:[#allocation12 + $0xf90] sm:$0xff] }
 0x377   :  { %2076 = vmatpush.msra.mxu2 %v1149_v17  ;;  %2099 = vmatpush.msra.mxu3 %v1437_v18  ;;  %v1548_v16 = vld [vmem:[#allocation12 + $0x1028] sm:$0xff] }
 0x378   :  { %2122 = vmatpush.msrb.mxu0 %v1150_v23  ;;  %2145 = vmatpush.msrb.mxu1 %v1438_v24  ;;  %v1242_v24 = vld [vmem:[#allocation12 + $0x698] sm:$0xff] }
 0x379   :  { %2077 = vmatpush.msra.mxu2 %v1131_v26  ;;  %2100 = vmatpush.msra.mxu3 %v1419_v27  ;;  %v1673_v34 = vpop.f32.mrf.mxu0  ;;  %v1696_v35 = vpop.f32.mrf.mxu1  ;;  %v1530_v26 = vld [vmem:[#allocation12 + $0xf98] sm:$0xff]  ;;  %v1223_v27 = vld [vmem:[#allocation12 + $0x600] sm:$0xff] }
 0x37a   :  { %2123 = vmatpush.msrb.mxu0 %v1132_v28  ;;  %2146 = vmatpush.msrb.mxu1 %v1420_v29  ;;  %v3114_v38 = vadd.f32 %v1696_v35, %v1673_v34  ;;  %v1511_v28 = vld [vmem:[#allocation12 + $0xf00] sm:$0xff]  ;;  %v1224_v29 = vld [vmem:[#allocation12 + $0x608] sm:$0xff]  ;;  %v1206_v35 = vld [vmem:[#allocation12 + $0x578] sm:$0xff] }
 0x37b   :  { %2078 = vmatpush.msra.mxu2 %v1113_v30  ;;  %2101 = vmatpush.msra.mxu3 %v1401_v31  ;;  %v1512_v30 = vld [vmem:[#allocation12 + $0xf08] sm:$0xff]  ;;  %v1205_v31 = vld [vmem:[#allocation12 + $0x570] sm:$0xff] }
 0x37c   :  { %2124 = vmatpush.msrb.mxu0 %v1114_v32  ;;  %2147 = vmatpush.msrb.mxu1 %v1402_v33  ;;  %v1493_v32 = vld [vmem:[#allocation12 + $0xe70] sm:$0xff] }
 0x37d   :  { %2079 = vmatpush.msra.mxu2 %v1095_v36  ;;  %2102 = vmatpush.msra.mxu3 %v1383_v37  ;;  %v1494_v36 = vld [vmem:[#allocation12 + $0xe78] sm:$0xff] }
 0x37e   :  { %2125 = vmatpush.msrb.mxu0 %v1096_v39  ;;  %2148 = vmatpush.msrb.mxu1 %v1384_v40  ;;  %v1627_v49 = vpop.f32.mrf.mxu2  ;;  %v1650_v50 = vpop.f32.mrf.mxu3  ;;  %v1187_v39 = vld [vmem:[#allocation12 + $0x4e0] sm:$0xff] }
 0x37f   :  { %2080 = vmatpush.msra.mxu2 %v1077_v41  ;;  %2103 = vmatpush.msra.mxu3 %v1365_v46  ;;  %v3116_v53 = vadd.f32 %v1650_v50, %v1627_v49  ;;  %v1475_v40 = vld [vmem:[#allocation12 + $0xde0] sm:$0xff]  ;;  %v1188_v41 = vld [vmem:[#allocation12 + $0x4e8] sm:$0xff] }
 0x380   :  { %2126 = vmatpush.msrb.mxu0 %v1078_v47  ;;  %2149 = vmatpush.msrb.mxu1 %v1366_v44  ;;  %v1476_v46 = vld [vmem:[#allocation12 + $0xde8] sm:$0xff]  ;;  %v1169_v47 = vld [vmem:[#allocation12 + $0x450] sm:$0xff]  ;;  %v1151_v49 = vld [vmem:[#allocation12 + $0x3c0] sm:$0xff] }
 0x381   :  { %2081 = vmatpush.msra.mxu2 %v1059_v48  ;;  %2104 = vmatpush.msra.mxu3 %v1347_v45  ;;  %v1457_v44 = vld [vmem:[#allocation12 + $0xd50] sm:$0xff]  ;;  %v1170_v48 = vld [vmem:[#allocation12 + $0x458] sm:$0xff]  ;;  %v1439_v50 = vld [vmem:[#allocation12 + $0xcc0] sm:$0xff] }
 0x382   :  { %2127 = vmatpush.msrb.mxu0 %v1060_v51  ;;  %2150 = vmatpush.msrb.mxu1 %v1348_v52  ;;  %v1458_v45 = vld [vmem:[#allocation12 + $0xd58] sm:$0xff]  ;;  %v1152_v51 = vld [vmem:[#allocation12 + $0x3c8] sm:$0xff] }
 0x383   :  { %2082 = vmatpush.msra.mxu2 %v1041_v54  ;;  %2105 = vmatpush.msra.mxu3 %v1329_v55  ;;  %v1762_v58 = vpop.f32.mrf.mxu0  ;;  %v1785_v59 = vpop.f32.mrf.mxu1  ;;  %v1440_v52 = vld [vmem:[#allocation12 + $0xcc8] sm:$0xff] }
 0x384   :  { %2128 = vmatpush.msrb.mxu0 %v1042_v56  ;;  %2151 = vmatpush.msrb.mxu1 %v1330_v57  ;;  %v3118_v62 = vadd.f32 %v1785_v59, %v1762_v58  ;;  %v1133_v56 = vld [vmem:[#allocation12 + $0x330] sm:$0xff]  ;;  %v1134_v59 = vld [vmem:[#allocation12 + $0x338] sm:$0xff] }
 0x385   :  { %2083 = vmatmul.f32.vlgmr.msra.gmra.mxu2 %v3062_v21  ;;  %2106 = vmatmul.f32.vlgmr.msra.gmra.mxu3 %v3064_v22  ;;  %v1421_v57 = vld [vmem:[#allocation12 + $0xc30] sm:$0xff] }
 0x386   :  { %2129 = vmatmul.f32.vlgmr.msrb.gmra.mxu0 %v3062_v21  ;;  %2152 = vmatmul.f32.vlgmr.msrb.gmra.mxu1 %v3064_v22 }
 0x387   :  { %2159 = vmatpush.msrb.mxu2 %v1313_v60  ;;  %2182 = vmatpush.msrb.mxu3 %v1601_v61  ;;  %v1422_v60 = vld [vmem:[#allocation12 + $0xc38] sm:$0xff]  ;;  %v1115_v61 = vld [vmem:[#allocation12 + $0x2a0] sm:$0xff] }
 0x388   :  { %2205 = vmatpush.msra.mxu0 %v1314_v63  ;;  %2228 = vmatpush.msra.mxu1 %v1602_v0  ;;  %v1716_v7 = vpop.f32.mrf.mxu2  ;;  %v1739_v8 = vpop.f32.mrf.mxu3  ;;  %v1403_v63 = vld [vmem:[#allocation12 + $0xba0] sm:$0xff]  ;;  %v1116_v0 = vld [vmem:[#allocation12 + $0x2a8] sm:$0xff] }
 0x389   :  { %2160 = vmatpush.msrb.mxu2 %v1295_v1  ;;  %2183 = vmatpush.msrb.mxu3 %v1583_v2  ;;  %v3124_v12 = vadd.f32 %v1739_v8, %v1716_v7  ;;  %v1404_v1 = vld [vmem:[#allocation12 + $0xba8] sm:$0xff]  ;;  %v1097_v2 = vld [vmem:[#allocation12 + $0x210] sm:$0xff]  ;;  %v1386_v7 = vld [vmem:[#allocation12 + $0xb18] sm:$0xff] }
 0x38a   :  { %2206 = vmatpush.msra.mxu0 %v1296_v3  ;;  %2229 = vmatpush.msra.mxu1 %v1584_v4  ;;  %v1385_v3 = vld [vmem:[#allocation12 + $0xb10] sm:$0xff] }
 0x38b   :  { %2161 = vmatpush.msrb.mxu2 %v1277_v5  ;;  %2184 = vmatpush.msrb.mxu3 %v1565_v6  ;;  %v1098_v6 = vld [vmem:[#allocation12 + $0x218] sm:$0xff] }
 0x38c   :  { %2207 = vmatpush.msra.mxu0 %v1278_v9  ;;  %2230 = vmatpush.msra.mxu1 %v1566_v11  ;;  %v1079_v9 = vld [vmem:[#allocation12 + $0x180] sm:$0xff] }
 0x38d   :  { %2162 = vmatpush.msrb.mxu2 %v1259_v13  ;;  %2185 = vmatpush.msrb.mxu3 %v1547_v14  ;;  %v1765_v17 = vpop.f32.mrf.mxu0  ;;  %v1788_v18 = vpop.f32.mrf.mxu1  ;;  %v1367_v11 = vld [vmem:[#allocation12 + $0xa80] sm:$0xff]  ;;  %v1080_v13 = vld [vmem:[#allocation12 + $0x188] sm:$0xff] }
 0x38e   :  { %2208 = vmatpush.msra.mxu0 %v1260_v15  ;;  %2231 = vmatpush.msra.mxu1 %v1548_v16  ;;  %v3126_v23 = vadd.f32 %v1788_v18, %v1765_v17  ;;  %v1368_v14 = vld [vmem:[#allocation12 + $0xa88] sm:$0xff]  ;;  %v1061_v15 = vld [vmem:[#allocation12 + $0xf0] sm:$0xff]  ;;  %v1062_v17 = vld [vmem:[#allocation12 + $0xf8] sm:$0xff] }
 0x38f   :  { %2086 = vmatmul.f32.gmra.mxu2 %v3070_v42  ;;  %2109 = vmatmul.f32.gmra.mxu3 %v3072_v43  ;;  %v1349_v16 = vld [vmem:[#allocation12 + $0x9f0] sm:$0xff]  ;;  %v1350_v18 = vld [vmem:[#allocation12 + $0x9f8] sm:$0xff] }
 0x390   :  { %2132 = vmatmul.f32.gmra.mxu0 %v3070_v42  ;;  %2155 = vmatmul.f32.gmra.mxu1 %v3072_v43 }
 0x391   :  { %2163 = vmatpush.msrb.mxu2 %v1241_v19  ;;  %2186 = vmatpush.msrb.mxu3 %v1529_v20 }
 0x392   :  { %2209 = vmatpush.msra.mxu0 %v1242_v24  ;;  %2232 = vmatpush.msra.mxu1 %v1530_v26  ;;  %v1719_v33 = vpop.f32.mrf.mxu2  ;;  %v1742_v34 = vpop.f32.mrf.mxu3  ;;  %v1043_v24 = vld [vmem:[#allocation12 + $0x60] sm:$0xff] }
 0x393   :  { %2164 = vmatpush.msrb.mxu2 %v1223_v27  ;;  %2187 = vmatpush.msrb.mxu3 %v1511_v28  ;;  %v3132_v37 = vadd.f32 %v1742_v34, %v1719_v33  ;;  %v1331_v26 = vld [vmem:[#allocation12 + $0x960] sm:$0xff]  ;;  %v1044_v28 = vld [vmem:[#allocation12 + $0x68] sm:$0xff] }
 0x394   :  { %2210 = vmatpush.msra.mxu0 %v1224_v29  ;;  %2233 = vmatpush.msra.mxu1 %v1512_v30  ;;  %v1332_v29 = vld [vmem:[#allocation12 + $0x968] sm:$0xff]  ;;  %v1315_v30 = vld [vmem:[#allocation12 + $0x8e0] sm:$0xff] }
 0x395   :  { %2165 = vmatpush.msrb.mxu2 %v1205_v31  ;;  %2188 = vmatpush.msrb.mxu3 %v1493_v32  ;;  %v1603_v31 = vld [vmem:[#allocation12 + $0x11e0] sm:$0xff]  ;;  %v1316_v34 = vld [vmem:[#allocation12 + $0x8e8] sm:$0xff] }
 0x396   :  { %2211 = vmatpush.msra.mxu0 %v1206_v35  ;;  %2234 = vmatpush.msra.mxu1 %v1494_v36  ;;  %v1604_v35 = vld [vmem:[#allocation12 + $0x11e8] sm:$0xff] }
 0x397   :  { %2166 = vmatpush.msrb.mxu2 %v1187_v39  ;;  %2189 = vmatpush.msrb.mxu3 %v1475_v40  ;;  %v1297_v39 = vld [vmem:[#allocation12 + $0x850] sm:$0xff] }
 0x398   :  { %2212 = vmatpush.msra.mxu0 %v1188_v41  ;;  %2235 = vmatpush.msra.mxu1 %v1476_v46  ;;  %v1585_v40 = vld [vmem:[#allocation12 + $0x1150] sm:$0xff]  ;;  %v1298_v41 = vld [vmem:[#allocation12 + $0x858] sm:$0xff] }
 0x399   :  { %2167 = vmatpush.msrb.mxu2 %v1169_v47  ;;  %2190 = vmatpush.msrb.mxu3 %v1457_v44  ;;  %v1854_v54 = vpop.f32.mrf.mxu0  ;;  %v1877_v55 = vpop.f32.mrf.mxu1  ;;  %v1586_v46 = vld [vmem:[#allocation12 + $0x1158] sm:$0xff]  ;;  %v1279_v47 = vld [vmem:[#allocation12 + $0x7c0] sm:$0xff] }
 0x39a   :  { %2213 = vmatpush.msra.mxu0 %v1170_v48  ;;  %2236 = vmatpush.msra.mxu1 %v1458_v45  ;;  %v3134_v58 = vadd.f32 %v1877_v55, %v1854_v54  ;;  %v1567_v44 = vld [vmem:[#allocation12 + $0x10c0] sm:$0xff]  ;;  %v1280_v48 = vld [vmem:[#allocation12 + $0x7c8] sm:$0xff] }
 0x39b   :  { %2168 = vmatpush.msrb.mxu2 %v1151_v49  ;;  %2191 = vmatpush.msrb.mxu3 %v1439_v50  ;;  %v1568_v45 = vld [vmem:[#allocation12 + $0x10c8] sm:$0xff]  ;;  %v1261_v49 = vld [vmem:[#allocation12 + $0x730] sm:$0xff]  ;;  %v1243_v54 = vld [vmem:[#allocation12 + $0x6a0] sm:$0xff] }
 0x39c   :  { %2214 = vmatpush.msra.mxu0 %v1152_v51  ;;  %2237 = vmatpush.msra.mxu1 %v1440_v52  ;;  %v1549_v50 = vld [vmem:[#allocation12 + $0x1030] sm:$0xff]  ;;  %v1262_v51 = vld [vmem:[#allocation12 + $0x738] sm:$0xff]  ;;  %v1531_v55 = vld [vmem:[#allocation12 + $0xfa0] sm:$0xff] }
 0x39d   :  { %2169 = vmatpush.msrb.mxu2 %v1133_v56  ;;  %2192 = vmatpush.msrb.mxu3 %v1421_v57  ;;  %v1550_v52 = vld [vmem:[#allocation12 + $0x1038] sm:$0xff]  ;;  %v1244_v56 = vld [vmem:[#allocation12 + $0x6a8] sm:$0xff] }
 0x39e   :  { %2215 = vmatpush.msra.mxu0 %v1134_v59  ;;  %2238 = vmatpush.msra.mxu1 %v1422_v60  ;;  %v1808_v4 = vpop.f32.mrf.mxu2  ;;  %v1831_v5 = vpop.f32.mrf.mxu3  ;;  %v1532_v57 = vld [vmem:[#allocation12 + $0xfa8] sm:$0xff]  ;;  %v1225_v59 = vld [vmem:[#allocation12 + $0x610] sm:$0xff] }
 0x39f   :  { %2170 = vmatpush.msrb.mxu2 %v1115_v61  ;;  %2193 = vmatpush.msrb.mxu3 %v1403_v63  ;;  %v3136_v8 = vadd.f32 %v1831_v5, %v1808_v4  ;;  %v1513_v60 = vld [vmem:[#allocation12 + $0xf10] sm:$0xff]  ;;  %v1226_v61 = vld [vmem:[#allocation12 + $0x618] sm:$0xff] }
 0x3a0   :  { %2216 = vmatpush.msra.mxu0 %v1116_v0  ;;  %2239 = vmatpush.msra.mxu1 %v1404_v1  ;;  %v1514_v63 = vld [vmem:[#allocation12 + $0xf18] sm:$0xff]  ;;  %v1207_v0 = vld [vmem:[#allocation12 + $0x580] sm:$0xff]  ;;  %v1189_v4 = vld [vmem:[#allocation12 + $0x4f0] sm:$0xff] }
 0x3a1   :  { %2171 = vmatpush.msrb.mxu2 %v1097_v2  ;;  %2194 = vmatpush.msrb.mxu3 %v1385_v3  ;;  %v1495_v1 = vld [vmem:[#allocation12 + $0xe80] sm:$0xff]  ;;  %v1208_v2 = vld [vmem:[#allocation12 + $0x588] sm:$0xff]  ;;  %v1477_v5 = vld [vmem:[#allocation12 + $0xdf0] sm:$0xff] }
 0x3a2   :  { %2217 = vmatpush.msra.mxu0 %v1098_v6  ;;  %2240 = vmatpush.msra.mxu1 %v1386_v7  ;;  %v1496_v3 = vld [vmem:[#allocation12 + $0xe88] sm:$0xff]  ;;  %v1190_v6 = vld [vmem:[#allocation12 + $0x4f8] sm:$0xff] }
 0x3a3   :  { %2172 = vmatpush.msrb.mxu2 %v1079_v9  ;;  %2195 = vmatpush.msrb.mxu3 %v1367_v11  ;;  %v1857_v19 = vpop.f32.mrf.mxu0  ;;  %v1880_v20 = vpop.f32.mrf.mxu1  ;;  %v1478_v7 = vld [vmem:[#allocation12 + $0xdf8] sm:$0xff]  ;;  %v1171_v9 = vld [vmem:[#allocation12 + $0x460] sm:$0xff] }
 0x3a4   :  { %2218 = vmatpush.msra.mxu0 %v1080_v13  ;;  %2241 = vmatpush.msra.mxu1 %v1368_v14  ;;  %v3138_v27 = vadd.f32 %v1880_v20, %v1857_v19  ;;  %v1459_v11 = vld [vmem:[#allocation12 + $0xd60] sm:$0xff]  ;;  %v1172_v13 = vld [vmem:[#allocation12 + $0x468] sm:$0xff]  ;;  %v1154_v20 = vld [vmem:[#allocation12 + $0x3d8] sm:$0xff] }
 0x3a5   :  { %2173 = vmatpush.msrb.mxu2 %v1061_v15  ;;  %2196 = vmatpush.msrb.mxu3 %v1349_v16  ;;  %v1460_v14 = vld [vmem:[#allocation12 + $0xd68] sm:$0xff] }
 0x3a6   :  { %2219 = vmatpush.msra.mxu0 %v1062_v17  ;;  %2242 = vmatpush.msra.mxu1 %v1350_v18  ;;  %v1153_v17 = vld [vmem:[#allocation12 + $0x3d0] sm:$0xff] }
 0x3a7   :  { %2174 = vmatpush.msrb.mxu2 %v1043_v24  ;;  %2197 = vmatpush.msrb.mxu3 %v1331_v26  ;;  %v1441_v18 = vld [vmem:[#allocation12 + $0xcd0] sm:$0xff]  ;;  %v1442_v24 = vld [vmem:[#allocation12 + $0xcd8] sm:$0xff]  ;;  %v1135_v26 = vld [vmem:[#allocation12 + $0x340] sm:$0xff] }
 0x3a8   :  { %2220 = vmatpush.msra.mxu0 %v1044_v28  ;;  %2243 = vmatpush.msra.mxu1 %v1332_v29  ;;  %v1811_v32 = vpop.f32.mrf.mxu2  ;;  %v1834_v33 = vpop.f32.mrf.mxu3  ;;  %v1423_v28 = vld [vmem:[#allocation12 + $0xc40] sm:$0xff]  ;;  %v1136_v29 = vld [vmem:[#allocation12 + $0x348] sm:$0xff] }
 0x3a9   :  { %2175 = vmatmul.f32.vlgmr.msrb.gmra.mxu2 %v3062_v21  ;;  %2198 = vmatmul.f32.vlgmr.msrb.gmra.mxu3 %v3064_v22  ;;  %v3142_v36 = vadd.f32 %v1834_v33, %v1811_v32  ;;  %v1405_v32 = vld [vmem:[#allocation12 + $0xbb0] sm:$0xff] }
 0x3aa   :  { %2221 = vmatmul.f32.vlgmr.msra.gmra.mxu0 %v3062_v21  ;;  %2244 = vmatmul.f32.vlgmr.msra.gmra.mxu1 %v3064_v22 }
 0x3ab   :  { %2251 = vmatpush.msra.mxu2 %v1315_v30  ;;  %2274 = vmatpush.msra.mxu3 %v1603_v31  ;;  %v1424_v30 = vld [vmem:[#allocation12 + $0xc48] sm:$0xff]  ;;  %v1117_v31 = vld [vmem:[#allocation12 + $0x2b0] sm:$0xff] }
 0x3ac   :  { %2297 = vmatpush.msrb.mxu0 %v1316_v34  ;;  %2320 = vmatpush.msrb.mxu1 %v1604_v35  ;;  %v1118_v35 = vld [vmem:[#allocation12 + $0x2b8] sm:$0xff] }
 0x3ad   :  { %2252 = vmatpush.msra.mxu2 %v1297_v39  ;;  %2275 = vmatpush.msra.mxu3 %v1585_v40  ;;  %v1406_v39 = vld [vmem:[#allocation12 + $0xbb8] sm:$0xff] }
 0x3ae   :  { %2298 = vmatpush.msrb.mxu0 %v1298_v41  ;;  %2321 = vmatpush.msrb.mxu1 %v1586_v46  ;;  %v1099_v41 = vld [vmem:[#allocation12 + $0x220] sm:$0xff] }
 0x3af   :  { %2253 = vmatpush.msra.mxu2 %v1279_v47  ;;  %2276 = vmatpush.msra.mxu3 %v1567_v44  ;;  %v1387_v46 = vld [vmem:[#allocation12 + $0xb20] sm:$0xff]  ;;  %v1100_v47 = vld [vmem:[#allocation12 + $0x228] sm:$0xff] }
 0x3b0   :  { %2299 = vmatpush.msrb.mxu0 %v1280_v48  ;;  %2322 = vmatpush.msrb.mxu1 %v1568_v45  ;;  %v1388_v44 = vld [vmem:[#allocation12 + $0xb28] sm:$0xff]  ;;  %v1081_v48 = vld [vmem:[#allocation12 + $0x190] sm:$0xff] }
 0x3b1   :  { %2254 = vmatpush.msra.mxu2 %v1261_v49  ;;  %2277 = vmatpush.msra.mxu3 %v1549_v50  ;;  %v1369_v45 = vld [vmem:[#allocation12 + $0xa90] sm:$0xff]  ;;  %v1082_v49 = vld [vmem:[#allocation12 + $0x198] sm:$0xff] }
 0x3b2   :  { %2300 = vmatpush.msrb.mxu0 %v1262_v51  ;;  %2323 = vmatpush.msrb.mxu1 %v1550_v52  ;;  %v1370_v50 = vld [vmem:[#allocation12 + $0xa98] sm:$0xff] }
 0x3b3   :  { %2178 = vmatmul.f32.gmra.mxu2 %v3070_v42  ;;  %2201 = vmatmul.f32.gmra.mxu3 %v3072_v43 }
 0x3b4   :  { %2224 = vmatmul.f32.gmra.mxu0 %v3070_v42  ;;  %2247 = vmatmul.f32.gmra.mxu1 %v3072_v43 }
 0x3b5   :  { %2255 = vmatpush.msra.mxu2 %v1243_v54  ;;  %2278 = vmatpush.msra.mxu3 %v1531_v55  ;;  %v1063_v54 = vld [vmem:[#allocation12 + $0x100] sm:$0xff] }
 0x3b6   :  { %2301 = vmatpush.msrb.mxu0 %v1244_v56  ;;  %2324 = vmatpush.msrb.mxu1 %v1532_v57  ;;  %v1351_v55 = vld [vmem:[#allocation12 + $0xa00] sm:$0xff]  ;;  %v1064_v57 = vld [vmem:[#allocation12 + $0x108] sm:$0xff] }
 0x3b7   :  { %2256 = vmatpush.msra.mxu2 %v1225_v59  ;;  %2279 = vmatpush.msra.mxu3 %v1513_v60  ;;  %v1352_v59 = vld [vmem:[#allocation12 + $0xa08] sm:$0xff]  ;;  %v1045_v60 = vld [vmem:[#allocation12 + $0x70] sm:$0xff] }
 0x3b8   :  { %2302 = vmatpush.msrb.mxu0 %v1226_v61  ;;  %2325 = vmatpush.msrb.mxu1 %v1514_v63  ;;  %v1333_v61 = vld [vmem:[#allocation12 + $0x970] sm:$0xff]  ;;  %v1046_v63 = vld [vmem:[#allocation12 + $0x78] sm:$0xff] }
 0x3b9   :  { %2257 = vmatpush.msra.mxu2 %v1207_v0  ;;  %2280 = vmatpush.msra.mxu3 %v1495_v1  ;;  %v1334_v0 = vld [vmem:[#allocation12 + $0x978] sm:$0xff] }
 0x3ba   :  { %2303 = vmatpush.msrb.mxu0 %v1208_v2  ;;  %2326 = vmatpush.msrb.mxu1 %v1496_v3 }
 0x3bb   :  { %2258 = vmatpush.msra.mxu2 %v1189_v4  ;;  %2281 = vmatpush.msra.mxu3 %v1477_v5  ;;  %v1946_v15 = vpop.f32.mrf.mxu0  ;;  %v1969_v16 = vpop.f32.mrf.mxu1  ;;  %v1317_v4 = vld [vmem:[#allocation12 + $0x8f0] sm:$0xff] }
 0x3bc   :  { %2304 = vmatpush.msrb.mxu0 %v1190_v6  ;;  %2327 = vmatpush.msrb.mxu1 %v1478_v7  ;;  %v3150_v19 = vadd.f32 %v1969_v16, %v1946_v15  ;;  %v1605_v5 = vld [vmem:[#allocation12 + $0x11f0] sm:$0xff]  ;;  %v1318_v6 = vld [vmem:[#allocation12 + $0x8f8] sm:$0xff] }
 0x3bd   :  { %2259 = vmatpush.msra.mxu2 %v1171_v9  ;;  %2282 = vmatpush.msra.mxu3 %v1459_v11  ;;  %v1606_v7 = vld [vmem:[#allocation12 + $0x11f8] sm:$0xff]  ;;  %v1299_v9 = vld [vmem:[#allocation12 + $0x860] sm:$0xff]  ;;  %v1281_v15 = vld [vmem:[#allocation12 + $0x7d0] sm:$0xff] }
 0x3be   :  { %2305 = vmatpush.msrb.mxu0 %v1172_v13  ;;  %2328 = vmatpush.msrb.mxu1 %v1460_v14  ;;  %v1587_v11 = vld [vmem:[#allocation12 + $0x1160] sm:$0xff]  ;;  %v1300_v13 = vld [vmem:[#allocation12 + $0x868] sm:$0xff]  ;;  %v1569_v16 = vld [vmem:[#allocation12 + $0x10d0] sm:$0xff] }
 0x3bf   :  { %2260 = vmatpush.msra.mxu2 %v1153_v17  ;;  %2283 = vmatpush.msra.mxu3 %v1441_v18  ;;  %v1588_v14 = vld [vmem:[#allocation12 + $0x1168] sm:$0xff]  ;;  %v1282_v17 = vld [vmem:[#allocation12 + $0x7d8] sm:$0xff] }
 0x3c0   :  { %2306 = vmatpush.msrb.mxu0 %v1154_v20  ;;  %2329 = vmatpush.msrb.mxu1 %v1442_v24  ;;  %v1900_v33 = vpop.f32.mrf.mxu2  ;;  %v1923_v34 = vpop.f32.mrf.mxu3  ;;  %v1570_v18 = vld [vmem:[#allocation12 + $0x10d8] sm:$0xff]  ;;  %v1263_v20 = vld [vmem:[#allocation12 + $0x740] sm:$0xff] }
 0x3c1   :  { %2261 = vmatpush.msra.mxu2 %v1135_v26  ;;  %2284 = vmatpush.msra.mxu3 %v1423_v28  ;;  %v3152_v40 = vadd.f32 %v1923_v34, %v1900_v33  ;;  %v1551_v24 = vld [vmem:[#allocation12 + $0x1040] sm:$0xff]  ;;  %v1264_v26 = vld [vmem:[#allocation12 + $0x748] sm:$0xff] }
 0x3c2   :  { %2307 = vmatpush.msrb.mxu0 %v1136_v29  ;;  %2330 = vmatpush.msrb.mxu1 %v1424_v30  ;;  %v1552_v28 = vld [vmem:[#allocation12 + $0x1048] sm:$0xff]  ;;  %v1245_v29 = vld [vmem:[#allocation12 + $0x6b0] sm:$0xff]  ;;  %v1227_v33 = vld [vmem:[#allocation12 + $0x620] sm:$0xff] }
 0x3c3   :  { %2262 = vmatpush.msra.mxu2 %v1117_v31  ;;  %2285 = vmatpush.msra.mxu3 %v1405_v32  ;;  %v1533_v30 = vld [vmem:[#allocation12 + $0xfb0] sm:$0xff]  ;;  %v1246_v31 = vld [vmem:[#allocation12 + $0x6b8] sm:$0xff]  ;;  %v1515_v34 = vld [vmem:[#allocation12 + $0xf20] sm:$0xff] }
 0x3c4   :  { %2308 = vmatpush.msrb.mxu0 %v1118_v35  ;;  %2331 = vmatpush.msrb.mxu1 %v1406_v39  ;;  %v1534_v32 = vld [vmem:[#allocation12 + $0xfb8] sm:$0xff]  ;;  %v1228_v35 = vld [vmem:[#allocation12 + $0x628] sm:$0xff] }
 0x3c5   :  { %2263 = vmatpush.msra.mxu2 %v1099_v41  ;;  %2286 = vmatpush.msra.mxu3 %v1387_v46  ;;  %v1949_v51 = vpop.f32.mrf.mxu0  ;;  %v1972_v52 = vpop.f32.mrf.mxu1  ;;  %v1516_v39 = vld [vmem:[#allocation12 + $0xf28] sm:$0xff]  ;;  %v1209_v41 = vld [vmem:[#allocation12 + $0x590] sm:$0xff] }
 0x3c6   :  { %2309 = vmatpush.msrb.mxu0 %v1100_v47  ;;  %2332 = vmatpush.msrb.mxu1 %v1388_v44  ;;  %v3154_v56 = vadd.f32 %v1972_v52, %v1949_v51  ;;  %v1497_v46 = vld [vmem:[#allocation12 + $0xe90] sm:$0xff]  ;;  %v1210_v47 = vld [vmem:[#allocation12 + $0x598] sm:$0xff] }
 0x3c7   :  { %2264 = vmatpush.msra.mxu2 %v1081_v48  ;;  %2287 = vmatpush.msra.mxu3 %v1369_v45  ;;  %v1498_v44 = vld [vmem:[#allocation12 + $0xe98] sm:$0xff]  ;;  %v1191_v48 = vld [vmem:[#allocation12 + $0x500] sm:$0xff]  ;;  %v1173_v51 = vld [vmem:[#allocation12 + $0x470] sm:$0xff] }
 0x3c8   :  { %2310 = vmatpush.msrb.mxu0 %v1082_v49  ;;  %2333 = vmatpush.msrb.mxu1 %v1370_v50  ;;  %v1479_v45 = vld [vmem:[#allocation12 + $0xe00] sm:$0xff]  ;;  %v1192_v49 = vld [vmem:[#allocation12 + $0x508] sm:$0xff]  ;;  %v1461_v52 = vld [vmem:[#allocation12 + $0xd70] sm:$0xff] }
 0x3c9   :  { %2265 = vmatpush.msra.mxu2 %v1063_v54  ;;  %2288 = vmatpush.msra.mxu3 %v1351_v55  ;;  %v1480_v50 = vld [vmem:[#allocation12 + $0xe08] sm:$0xff]  ;;  %v1174_v54 = vld [vmem:[#allocation12 + $0x478] sm:$0xff] }
 0x3ca   :  { %2311 = vmatpush.msrb.mxu0 %v1064_v57  ;;  %2334 = vmatpush.msrb.mxu1 %v1352_v59  ;;  %v1903_v1 = vpop.f32.mrf.mxu2  ;;  %v1926_v2 = vpop.f32.mrf.mxu3  ;;  %v1462_v55 = vld [vmem:[#allocation12 + $0xd78] sm:$0xff] }
 0x3cb   :  { %2266 = vmatpush.msra.mxu2 %v1045_v60  ;;  %2289 = vmatpush.msra.mxu3 %v1333_v61  ;;  %v3156_v3 = vadd.f32 %v1926_v2, %v1903_v1  ;;  %v1155_v60 = vld [vmem:[#allocation12 + $0x3e0] sm:$0xff]  ;;  %v1444_v1 = vld [vmem:[#allocation12 + $0xce8] sm:$0xff]  ;;  %v1137_v2 = vld [vmem:[#allocation12 + $0x350] sm:$0xff] }
 0x3cc   :  { %2312 = vmatpush.msrb.mxu0 %v1046_v63  ;;  %2335 = vmatpush.msrb.mxu1 %v1334_v0  ;;  %v1443_v61 = vld [vmem:[#allocation12 + $0xce0] sm:$0xff]  ;;  %v1156_v0 = vld [vmem:[#allocation12 + $0x3e8] sm:$0xff] }
 0x3cd   :  { %2267 = vmatmul.f32.vlgmr.msra.gmra.mxu2 %v3062_v21  ;;  %2290 = vmatmul.f32.vlgmr.msra.gmra.mxu3 %v3064_v22 }
 0x3ce   :  { %2313 = vmatmul.f32.vlgmr.msrb.gmra.mxu0 %v3062_v21  ;;  %2336 = vmatmul.f32.vlgmr.msrb.gmra.mxu1 %v3064_v22 }
 0x3cf   :  { %2343 = vmatpush.msrb.mxu2 %v1317_v4  ;;  %2366 = vmatpush.msrb.mxu3 %v1605_v5  ;;  %v1425_v4 = vld [vmem:[#allocation12 + $0xc50] sm:$0xff]  ;;  %v1138_v5 = vld [vmem:[#allocation12 + $0x358] sm:$0xff] }
 0x3d0   :  { %2389 = vmatpush.msra.mxu0 %v1318_v6  ;;  %2412 = vmatpush.msra.mxu1 %v1606_v7  ;;  %v1426_v6 = vld [vmem:[#allocation12 + $0xc58] sm:$0xff]  ;;  %v1119_v7 = vld [vmem:[#allocation12 + $0x2c0] sm:$0xff] }
 0x3d1   :  { %2344 = vmatpush.msrb.mxu2 %v1299_v9  ;;  %2367 = vmatpush.msrb.mxu3 %v1587_v11  ;;  %v1407_v9 = vld [vmem:[#allocation12 + $0xbc0] sm:$0xff] }
 0x3d2   :  { %2390 = vmatpush.msra.mxu0 %v1300_v13  ;;  %2413 = vmatpush.msra.mxu1 %v1588_v14  ;;  %v1120_v14 = vld [vmem:[#allocation12 + $0x2c8] sm:$0xff] }
 0x3d3   :  { %2345 = vmatpush.msrb.mxu2 %v1281_v15  ;;  %2368 = vmatpush.msrb.mxu3 %v1569_v16  ;;  %v1408_v15 = vld [vmem:[#allocation12 + $0xbc8] sm:$0xff] }
 0x3d4   :  { %2391 = vmatpush.msra.mxu0 %v1282_v17  ;;  %2414 = vmatpush.msra.mxu1 %v1570_v18  ;;  %v1101_v17 = vld [vmem:[#allocation12 + $0x230] sm:$0xff] }
 0x3d5   :  { %2346 = vmatpush.msrb.mxu2 %v1263_v20  ;;  %2369 = vmatpush.msrb.mxu3 %v1551_v24  ;;  %v1389_v18 = vld [vmem:[#allocation12 + $0xb30] sm:$0xff]  ;;  %v1102_v20 = vld [vmem:[#allocation12 + $0x238] sm:$0xff] }
 0x3d6   :  { %2392 = vmatpush.msra.mxu0 %v1264_v26  ;;  %2415 = vmatpush.msra.mxu1 %v1552_v28  ;;  %v1390_v24 = vld [vmem:[#allocation12 + $0xb38] sm:$0xff]  ;;  %v1083_v26 = vld [vmem:[#allocation12 + $0x1a0] sm:$0xff] }
 0x3d7   :  { %2270 = vmatmul.f32.gmra.mxu2 %v3070_v42  ;;  %2293 = vmatmul.f32.gmra.mxu3 %v3072_v43  ;;  %v1371_v28 = vld [vmem:[#allocation12 + $0xaa0] sm:$0xff] }
 0x3d8   :  { %2316 = vmatmul.f32.gmra.mxu0 %v3070_v42  ;;  %2339 = vmatmul.f32.gmra.mxu1 %v3072_v43 }
 0x3d9   :  { %2347 = vmatpush.msrb.mxu2 %v1245_v29  ;;  %2370 = vmatpush.msrb.mxu3 %v1533_v30  ;;  %v1084_v29 = vld [vmem:[#allocation12 + $0x1a8] sm:$0xff] }
 0x3da   :  { %2393 = vmatpush.msra.mxu0 %v1246_v31  ;;  %2416 = vmatpush.msra.mxu1 %v1534_v32  ;;  %v1372_v30 = vld [vmem:[#allocation12 + $0xaa8] sm:$0xff] }
 0x3db   :  { %2348 = vmatpush.msrb.mxu2 %v1227_v33  ;;  %2371 = vmatpush.msrb.mxu3 %v1515_v34  ;;  %v1065_v33 = vld [vmem:[#allocation12 + $0x110] sm:$0xff] }
 0x3dc   :  { %2394 = vmatpush.msra.mxu0 %v1228_v35  ;;  %2417 = vmatpush.msra.mxu1 %v1516_v39  ;;  %v1353_v34 = vld [vmem:[#allocation12 + $0xa10] sm:$0xff]  ;;  %v1066_v39 = vld [vmem:[#allocation12 + $0x118] sm:$0xff] }
 0x3dd   :  { %2349 = vmatpush.msrb.mxu2 %v1209_v41  ;;  %2372 = vmatpush.msrb.mxu3 %v1497_v46  ;;  %v1354_v41 = vld [vmem:[#allocation12 + $0xa18] sm:$0xff]  ;;  %v1047_v46 = vld [vmem:[#allocation12 + $0x80] sm:$0xff] }
 0x3de   :  { %2395 = vmatpush.msra.mxu0 %v1210_v47  ;;  %2418 = vmatpush.msra.mxu1 %v1498_v44  ;;  %v1335_v47 = vld [vmem:[#allocation12 + $0x980] sm:$0xff]  ;;  %v1048_v44 = vld [vmem:[#allocation12 + $0x88] sm:$0xff] }
 0x3df   :  { %2350 = vmatpush.msrb.mxu2 %v1191_v48  ;;  %2373 = vmatpush.msrb.mxu3 %v1479_v45  ;;  %v2038_v57 = vpop.f32.mrf.mxu0  ;;  %v2061_v59 = vpop.f32.mrf.mxu1  ;;  %v1336_v48 = vld [vmem:[#allocation12 + $0x988] sm:$0xff] }
 0x3e0   :  { %2396 = vmatpush.msra.mxu0 %v1192_v49  ;;  %2419 = vmatpush.msra.mxu1 %v1480_v50  ;;  %v3166_v63 = vadd.f32 %v2061_v59, %v2038_v57 }
 0x3e1   :  { %2351 = vmatpush.msrb.mxu2 %v1173_v51  ;;  %2374 = vmatpush.msrb.mxu3 %v1461_v52 }
 0x3e2   :  { %2397 = vmatpush.msra.mxu0 %v1174_v54  ;;  %2420 = vmatpush.msra.mxu1 %v1462_v55 }
 0x3e3   :  { %2352 = vmatpush.msrb.mxu2 %v1155_v60  ;;  %2375 = vmatpush.msrb.mxu3 %v1443_v61 }
 0x3e4   :  { %2398 = vmatpush.msra.mxu0 %v1156_v0  ;;  %2421 = vmatpush.msra.mxu1 %v1444_v1  ;;  %v1992_v11 = vpop.f32.mrf.mxu2  ;;  %v2015_v13 = vpop.f32.mrf.mxu3 }
 0x3e5   :  { %2353 = vmatpush.msrb.mxu2 %v1137_v2  ;;  %2376 = vmatpush.msrb.mxu3 %v1425_v4  ;;  %v3168_v16 = vadd.f32 %v2015_v13, %v1992_v11 }
 0x3e6   :  { %2399 = vmatpush.msra.mxu0 %v1138_v5  ;;  %2422 = vmatpush.msra.mxu1 %v1426_v6 }
 0x3e7   :  { %2354 = vmatpush.msrb.mxu2 %v1119_v7  ;;  %2377 = vmatpush.msrb.mxu3 %v1407_v9 }
 0x3e8   :  { %2400 = vmatpush.msra.mxu0 %v1120_v14  ;;  %2423 = vmatpush.msra.mxu1 %v1408_v15 }
 0x3e9   :  { %2355 = vmatpush.msrb.mxu2 %v1101_v17  ;;  %2378 = vmatpush.msrb.mxu3 %v1389_v18  ;;  %v2041_v31 = vpop.f32.mrf.mxu0  ;;  %v2064_v32 = vpop.f32.mrf.mxu1 }
 0x3ea   :  { %2401 = vmatpush.msra.mxu0 %v1102_v20  ;;  %2424 = vmatpush.msra.mxu1 %v1390_v24  ;;  %v3170_v35 = vadd.f32 %v2064_v32, %v2041_v31 }
 0x3eb   :  { %2356 = vmatpush.msrb.mxu2 %v1083_v26  ;;  %2379 = vmatpush.msrb.mxu3 %v1371_v28 }
 0x3ec   :  { %2402 = vmatpush.msra.mxu0 %v1084_v29  ;;  %2425 = vmatpush.msra.mxu1 %v1372_v30 }
 0x3ed   :  { %2357 = vmatpush.msrb.mxu2 %v1065_v33  ;;  %2380 = vmatpush.msrb.mxu3 %v1353_v34 }
 0x3ee   :  { %2403 = vmatpush.msra.mxu0 %v1066_v39  ;;  %2426 = vmatpush.msra.mxu1 %v1354_v41  ;;  %v1995_v51 = vpop.f32.mrf.mxu2  ;;  %v2018_v52 = vpop.f32.mrf.mxu3 }
 0x3ef   :  { %2358 = vmatpush.msrb.mxu2 %v1047_v46  ;;  %2381 = vmatpush.msrb.mxu3 %v1335_v47  ;;  %v2019_v26 = vadd.f32 %v2018_v52, %v1995_v51 }
 0x3f0   :  { %2404 = vmatpush.msra.mxu0 %v1048_v44  ;;  %2427 = vmatpush.msra.mxu1 %v1336_v48  ;;  %v2441_v48 = vpop.permute.xlu0 %2440 }
 0x3f1   :  { %2359 = vmatmul.f32.vlgmr.msrb.gmra.mxu2 %v3062_v21  ;;  %2382 = vmatmul.f32.vlgmr.msrb.gmra.mxu3 %v3064_v22 }
 0x3f2   :  { %2405 = vmatmul.f32.vlgmr.msra.gmra.mxu0 %v3062_v21  ;;  %2428 = vmatmul.f32.vlgmr.msra.gmra.mxu1 %v3064_v22 }
 0x3f9   :  { %2362 = vmatmul.f32.gmra.mxu2 %v3070_v42  ;;  %2385 = vmatmul.f32.gmra.mxu3 %v3072_v43 }
 0x3fa   :  { %2408 = vmatmul.f32.gmra.mxu0 %v3070_v42  ;;  %2431 = vmatmul.f32.gmra.mxu1 %v3072_v43 }
 0x403   :  { %v2130_v45 = vpop.f32.mrf.mxu0  ;;  %v2153_v49 = vpop.f32.mrf.mxu1 }
 0x404   :  { %v3180_v50 = vadd.f32 %v2153_v49, %v2130_v45 }
 0x408   :  { %v2084_v54 = vpop.f32.mrf.mxu2  ;;  %v2107_v55 = vpop.f32.mrf.mxu3 }
 0x409   :  { %v2108_v24 = vadd.f32 %v2107_v55, %v2084_v54 }
 0x40d   :  { %v3182_v60 = vpop.f32.mrf.mxu0  ;;  %v3184_v61 = vpop.f32.mrf.mxu1 }
 0x40e   :  { %v2157_v44 = vadd.f32 %v3184_v61, %v3182_v60 }
 0x412   :  { %v2087_v57 = vpop.f32.mrf.mxu2  ;;  %v2110_v21 = vpop.f32.mrf.mxu3 }
 0x413   :  { %v2111_v20 = vadd.f32 %v2110_v21, %v2087_v57 }
 0x427   :  { %v2222_v1 = vpop.f32.mrf.mxu0  ;;  %v2245_v43 = vpop.f32.mrf.mxu1 }
 0x42c   :  { %v2176_v59 = vpop.f32.mrf.mxu2  ;;  %v2199_v22 = vpop.f32.mrf.mxu3 }
 0x42d   :  { %v2200_v18 = vadd.f32 %v2199_v22, %v2176_v59 }
 0x431   :  { %v2225_v5 = vpop.f32.mrf.mxu0  ;;  %v2248_v6 = vpop.f32.mrf.mxu1 }
 0x436   :  { %v2179_v0 = vpop.f32.mrf.mxu2  ;;  %v2202_v42 = vpop.f32.mrf.mxu3 }
 0x437   :  { %v2203_v17 = vadd.f32 %v2202_v42, %v2179_v0 }
 0x44b   :  { %v2314_v13 = vpop.f32.mrf.mxu0  ;;  %v2337_v14 = vpop.f32.mrf.mxu1 }
 0x450   :  { %v2268_v2 = vpop.f32.mrf.mxu2  ;;  %v2291_v4 = vpop.f32.mrf.mxu3 }
 0x451   :  { %v2292_v15 = vadd.f32 %v2291_v4, %v2268_v2 }
 0x455   :  { %v2317_v28 = vpop.f32.mrf.mxu0  ;;  %v2340_v29 = vpop.f32.mrf.mxu1 }
 0x456   :  { %v2341_v47 = vadd.f32 %v2340_v29, %v2317_v28 }
 0x45a   :  { %v2271_v7 = vpop.f32.mrf.mxu2  ;;  %v2294_v9 = vpop.f32.mrf.mxu3 }
 0x45b   :  { %v2295_v11 = vadd.f32 %v2294_v9, %v2271_v7 }
 0x45d   :  { %2446 = vmatpush.msra.mxu2 %v2295_v11 }
 0x45f   :  { %2447 = vmatpush.msra.mxu2 %v2292_v15 }
 0x461   :  { %2448 = vmatpush.msra.mxu2 %v2203_v17 }
 0x463   :  { %2449 = vmatpush.msra.mxu2 %v2200_v18 }
 0x465   :  { %2450 = vmatpush.msra.mxu2 %v2111_v20 }
 0x467   :  { %2451 = vmatpush.msra.mxu2 %v2108_v24 }
 0x469   :  { %2452 = vmatpush.msra.mxu2 %v2019_v26 }
 0x46b   :  { %2453 = vmatpush.msra.mxu2 %v3168_v16  ;;  %v2435_v16 = vld [vmem:[#allocation13] sm:$0xff] }
 0x46d   :  { %2454 = vmatpush.msra.mxu2 %v3156_v3 }
 0x46f   :  { %v2406_v30 = vpop.f32.mrf.mxu0  ;;  %v2429_v31 = vpop.f32.mrf.mxu1  ;;  %2455 = vmatpush.msra.mxu2 %v3152_v40 }
 0x471   :  { %2456 = vmatpush.msra.mxu2 %v3142_v36  ;;  %v2430_v36 = vadd.f32 %v2429_v31, %v2406_v30 }
 0x473   :  { %2457 = vmatpush.msra.mxu2 %v3136_v8 }
 0x474   :  { %v2360_v32 = vpop.f32.mrf.mxu2  ;;  %v2383_v33 = vpop.f32.mrf.mxu3 }
 0x475   :  { %2458 = vmatpush.msra.mxu2 %v3132_v37  ;;  %v2384_v8 = vadd.f32 %v2383_v33, %v2360_v32  ;;  %v2436_v37 = vld [vmem:[#allocation13 + $0x8] sm:$0xff] }
 0x477   :  { %2459 = vmatpush.msra.mxu2 %v3124_v12  ;;  %v2409_v34 = vpop.f32.mrf.mxu0  ;;  %v2432_v39 = vpop.f32.mrf.mxu1  ;;  %v2338_v12 = vadd.f32 %v2337_v14, %v2314_v13 }
 0x478   :  { %v2433_v3 = vadd.f32 %v2432_v39, %v2409_v34 }
 0x479   :  { %2460 = vmatpush.msra.mxu2 %v3116_v53  ;;  %v2249_v53 = vadd.f32 %v2248_v6, %v2225_v5 }
 0x47b   :  { %2461 = vmatpush.msra.mxu2 %v3112_v25  ;;  %v2246_v25 = vadd.f32 %v2245_v43, %v2222_v1 }
 0x47c   :  { %v2363_v41 = vpop.f32.mrf.mxu2  ;;  %v2386_v40 = vpop.f32.mrf.mxu3  ;;  %2462 = vmatmul.f32.vlgmr.msra.gmra.mxu2 %v2435_v16 }
 0x47d   :  { %v2387_v46 = vadd.f32 %v2386_v40, %v2363_v41  ;;  %2520 = vmatpush.msrb.mxu2 %v2433_v3 }
 0x47f   :  { %2480 = vmatpush.msra.mxu3 %v2387_v46  ;;  %2521 = vmatpush.msrb.mxu2 %v2430_v36 }
 0x481   :  { %2481 = vmatpush.msra.mxu3 %v2384_v8 }
 0x482   :  { %2587 = vmatmul.msk.f32.vlgmr.msra.gmra.mxu3 %vm193_vm0, %v2436_v37 }
 0x483   :  { %2486 = vmatpush.msrb.mxu3 %v2341_v47 }
 0x484   :  { %2588 = vmatmul.msk.f32.vlgmr.msrb.gmra.mxu2 %vm193_vm0, %v2436_v37 }
 0x485   :  { %2487 = vmatpush.msrb.mxu3 %v2338_v12 }
 0x487   :  { %2488 = vmatpush.msrb.mxu3 %v2249_v53 }
 0x489   :  { %2489 = vmatpush.msrb.mxu3 %v2246_v25 }
 0x48b   :  { %2490 = vmatpush.msrb.mxu3 %v2157_v44 }
 0x48d   :  { %2491 = vmatpush.msrb.mxu3 %v3180_v50 }
 0x48f   :  { %2492 = vmatpush.msrb.mxu3 %v3170_v35 }
 0x491   :  { %2493 = vmatpush.msrb.mxu3 %v3166_v63 }
 0x493   :  { %2494 = vmatpush.msrb.mxu3 %v3154_v56 }
 0x495   :  { %2495 = vmatpush.msrb.mxu3 %v3150_v19 }
 0x497   :  { %2496 = vmatpush.msrb.mxu3 %v3138_v27 }
 0x499   :  { %2497 = vmatpush.msrb.mxu3 %v3134_v58 }
 0x49b   :  { %2498 = vmatpush.msrb.mxu3 %v3126_v23 }
 0x49d   :  { %2499 = vmatpush.msrb.mxu3 %v3118_v62 }
 0x49f   :  { %2500 = vmatpush.msrb.mxu3 %v3114_v38 }
 0x4a1   :  { %2501 = vmatpush.msrb.mxu3 %v3110_v10 }
 0x4a2   :  { %2502 = vmatmul.f32.vlgmr.msrb.gmra.mxu3 %v2435_v16 }
 0x4ff   :  { %v2463_v35 = vpop.f32.mrf.mxu2 }
 0x500   :  { %v2464_v63 = vadd.f32 %v2463_v35, %v2441_v48 }
 0x505   :  { %v2483_v45 = vpop.f32.mrf.mxu3 }
 0x506   :  { %v2484_v56 = vadd.f32 %v2483_v45, %v2464_v63 }
 0x507   :  { %v2523_v62 = vpop.f32.mrf.mxu2 }
 0x508   :  { %v2526_v49 = vsub.f32 0.0, %v2484_v56 }
 0x50a   :  { %v2528_v19 = vmul.f32 1.442695, %v2526_v49 }
 0x50c   :  { %2612 = vpow2.f32 %v2528_v19 }
 0x512   :  { %v2613_v27 = vpop.eup %2612 }
 0x513   :  { %v2532_v50 = vadd.f32 1.0, %v2613_v27 }
 0x515   :  { %2614 = vrcp.f32 %v2532_v50 }
 0x51b   :  { %v2615_v58 = vpop.eup %2614 }
 0x51c   :  { %2536 = vst [vmem:[%s3226_s10] sm:$0xff] %v2615_v58 }
 0x525   :  { %v2503_v38 = vpop.f32.mrf.mxu3 }
 0x526   :  { %v2504_v10 = vadd.f32 %v2503_v38, %v2441_v48 }
 0x528   :  { %v2524_v23 = vadd.f32 %v2523_v62, %v2504_v10 }
 0x52a   :  { %v2527_v51 = vsub.f32 0.0, %v2524_v23 }
 0x52c   :  { %v2530_v52 = vmul.f32 1.442695, %v2527_v51 }
 0x52e   :  { %2616 = vpow2.f32 %v2530_v52 }
 0x534   :  { %v2617_v54 = vpop.eup %2616 }
 0x535   :  { %v2533_v55 = vadd.f32 1.0, %v2617_v54 }
 0x537   :  { %2618 = vrcp.f32 %v2533_v55 }
 0x53d   :  { %v2619_v57 = vpop.eup %2618 }
 0x53e   :  { %2537 = vst [vmem:[%s3226_s10 + $0x8] sm:$0xff] %v2619_v57 }
 0x53f   :  { %2542 = vsyncpa [#allocation3], 1 }
 0x540   :  { %2543 = vsyncpa [#allocation5], 1 }
 0x541   :  { %2544 = vsyncpa [#allocation8], 1 }
 0x542   :  { %2545 = vsyncpa [#allocation11], 1 }
 0x543   :  { %2546 = vsyncpa [#allocation14], 1 }

</bundles_post_ra>
